<compile_context>
chip_gen: v7x
topology: tpu7x:2x2x1
jax: 0.10.0
libtpu: 0.0.40
codegen_flags: <defaults>
</compile_context>

<pallas_src>
from functools import partial

import jax
import jax.numpy as jnp
from jax import lax
from jax.experimental import pallas as pl
from jax.experimental.pallas import tpu as pltpu

_TRANS_B = (((1,), (1,)), ((), ()))  # q @ k^T: contract last dims, no batch dims


# ---------------------------------------------------------------------------
# Per-chip VMEM budget, tile selection, Buffered(1) capability probe
# ---------------------------------------------------------------------------
_VMEM_LIMIT = None


def _vmem_limit():
    """Per-generation scoped-VMEM limit with ~25% headroom.

    v7x (64 MiB physical)  -> ~48 MiB;  v5e/v6e (128 MiB) -> ~96 MiB.
    """
    global _VMEM_LIMIT
    if _VMEM_LIMIT is None:
        try:
            cap = int(pltpu.get_tpu_info().vmem_capacity_bytes)
        except Exception:
            cap = 64 * 1024 * 1024  # conservative fallback: v7x physical size
        _VMEM_LIMIT = int(min((cap * 3) // 4, 100 * 1024 * 1024))
    return _VMEM_LIMIT


def _compiler_params(semantics):
    return pltpu.CompilerParams(
        dimension_semantics=semantics,
        vmem_limit_bytes=_vmem_limit(),
    )


def _pick_tiles(m, c_in, c_out):
    """Row/col tiles for the (m, c_in) @ (c_in, c_out) projections.

    Col tile is 512 (multiple of the 256-wide MXU) or the full width; the row
    tile shrinks from 512 until the (roughly) double-buffered working set fits
    the per-chip VMEM budget (matters for the (C, 4C) ff weight on v7x).
    Grids use pl.cdiv, so tiles need not divide the array sizes — edge blocks
    are masked by Pallas and every row/column is computed independently.
    """
    tn = c_out if c_out <= 512 else 512
    tm = min(512, m)
    if tm < m:
        budget = _vmem_limit() // 2
        while tm > 128 and 2 * (tm * c_in * 4 + c_in * tn * 2 + 2 * tm * tn * 4) > budget:
            tm //= 2
    return tm, tn


_BUFFERED_OK = None


def _probe_copy_kernel(x_ref, o_ref):
    o_ref[...] = x_ref[...]


def _buffered_ok():
    """True iff this JAX/Mosaic build accepts pipeline_mode=pl.Buffered(1)."""
    global _BUFFERED_OK
    if _BUFFERED_OK is None:
        try:
            with jax.ensure_compile_time_eval():
                out = pl.pallas_call(
                    _probe_copy_kernel,
                    out_shape=jax.ShapeDtypeStruct((8, 128), jnp.float32),
                    grid_spec=pltpu.PrefetchScalarGridSpec(
                        num_scalar_prefetch=0,
                        grid=(1,),
                        in_specs=[pl.BlockSpec((8, 128), lambda i: (0, 0),
                                               pipeline_mode=pl.Buffered(1))],
                        out_specs=pl.BlockSpec((8, 128), lambda i: (0, 0)),
                    ),
                )(jnp.zeros((8, 128), jnp.float32))
                jax.block_until_ready(out)
            _BUFFERED_OK = True
        except Exception:
            _BUFFERED_OK = False
    return _BUFFERED_OK


def _const_spec(shape, index_map):
    """BlockSpec for a block whose index never changes across the grid:
    single-buffer it (halves its VMEM footprint) when supported."""
    if _buffered_ok():
        return pl.BlockSpec(shape, index_map, pipeline_mode=pl.Buffered(1))
    return pl.BlockSpec(shape, index_map)


# ---------------------------------------------------------------------------
# Kernels
# ---------------------------------------------------------------------------
def _gelu_tanh(x):
    # TODO(synk): PyTorch nn.GELU() defaults to the exact erf form; the tanh
    # approximation is used here (and mirrored in the in-file reference).
    c = 0.7978845608028654  # sqrt(2/pi)
    return 0.5 * x * (1.0 + jnp.tanh(c * (x + 0.044715 * x * x * x)))


def _ln_proj_kernel(x_ref, g_ref, b_ref, w_ref, *rest, eps, act, has_bias):
    """Fused channel-LayerNorm + 1x1-conv matmul (+bias, +gelu) on a row tile."""
    if has_bias:
        bias_ref, o_ref = rest
    else:
        (o_ref,) = rest
    x = x_ref[...].astype(jnp.float32)                    # (TM, C)
    mean = jnp.mean(x, axis=-1, keepdims=True)
    xc = x - mean
    var = jnp.mean(xc * xc, axis=-1, keepdims=True)       # two-pass: no cancellation
    xn = xc * lax.rsqrt(var + eps) * g_ref[...] + b_ref[...]
    # bf16 MXU operands, f32 accumulation.
    y = jnp.dot(xn.astype(w_ref.dtype), w_ref[...],
                preferred_element_type=jnp.float32)        # (TM, TN)
    if has_bias:
        y = y + bias_ref[...]
    if act == "gelu":
        y = _gelu_tanh(y)
    o_ref[...] = y.astype(o_ref.dtype)


def _proj_res_kernel(x_ref, w_ref, bias_ref, r_ref, o_ref):
    """1x1-conv matmul + bias + residual add on a row tile."""
    y = jnp.dot(x_ref[...].astype(w_ref.dtype), w_ref[...],
                preferred_element_type=jnp.float32)
    o_ref[...] = (y + bias_ref[...] + r_ref[...].astype(jnp.float32)).astype(o_ref.dtype)


def _attention_kernel(qkv_ref, o_ref, *, heads, dim_head, scale):
    """All heads of one batch element: softmax(q k^T * scale) v.

    Consumes the (S, 3*inner) qkv slab (no JAX-side head transposes) and does
    one lane-dense (S, inner) store instead of per-(batch, head) masked stores.

    TODO(synk): for large S, switch to a KV-tiled online-softmax (flash)
    variant; the full SxS score matrix is fine at spatial sequence lengths.
    """
    inner = heads * dim_head
    qkv = qkv_ref[...]                                    # (S, 3*inner), bf16
    outs = []
    for h in range(heads):
        lo = h * dim_head
        hi = lo + dim_head
        q = qkv[:, lo:hi]
        k = qkv[:, inner + lo:inner + hi]
        v = qkv[:, 2 * inner + lo:2 * inner + hi]
        dots = lax.dot_general(q, k, _TRANS_B,
                               preferred_element_type=jnp.float32) * scale
        m = jnp.max(dots, axis=-1, keepdims=True)
        p = jnp.exp(dots - m)
        inv = pl.reciprocal(jnp.sum(p, axis=-1, keepdims=True), approx=True)
        outs.append(jnp.dot((p * inv).astype(v.dtype), v,
                            preferred_element_type=jnp.float32))
    o_ref[...] = jnp.concatenate(outs, axis=-1).astype(o_ref.dtype)


# ---------------------------------------------------------------------------
# pallas_call wrappers
# ---------------------------------------------------------------------------
def ln_proj(x, g, b, w, bias=None, *, eps, act=None, out_dtype=None):
    """y = LayerNorm(x; g, b) @ w [+ bias] [gelu].  x: (M, C), w: (C, Cout)."""
    M, C = x.shape
    Cout = w.shape[1]
    out_dtype = x.dtype if out_dtype is None else out_dtype
    has_bias = bias is not None
    tm, tn = _pick_tiles(M, C, Cout)
    gm, gn = pl.cdiv(M, tm), pl.cdiv(Cout, tn)

    col_map = lambda i, j: (0, j)
    zero_map = lambda i, j: (0, 0)
    w_spec = (_const_spec((C, tn), col_map) if gn == 1
              else pl.BlockSpec((C, tn), col_map))
    in_specs = [
        pl.BlockSpec((tm, C), lambda i, j: (i, 0)),   # activations
        _const_spec((1, C), zero_map),                # gamma (VMEM resident)
        _const_spec((1, C), zero_map),                # beta
        w_spec,                                       # weight (bf16)
    ]
    args = [x, g, b, w]
    if has_bias:
        in_specs.append(_const_spec((1, tn), col_map) if gn == 1
                        else pl.BlockSpec((1, tn), col_map))
        args.append(bias)

    return pl.pallas_call(
        partial(_ln_proj_kernel, eps=eps, act=act, has_bias=has_bias),
        out_shape=jax.ShapeDtypeStruct((M, Cout), out_dtype),
        grid_spec=pltpu.PrefetchScalarGridSpec(
            num_scalar_prefetch=0,
            grid=(gm, gn),
            in_specs=in_specs,
            out_specs=pl.BlockSpec((tm, tn), lambda i, j: (i, j)),
        ),
        compiler_params=_compiler_params(("parallel", "parallel")),
    )(*args)


def proj_residual(x, w, bias, res):
    """y = x @ w + bias + res.  x: (M, Cin), w: (Cin, Cout), res: (M, Cout)."""
    M, Cin = x.shape
    Cout = w.shape[1]
    tm, tn = _pick_tiles(M, Cin, Cout)
    gm, gn = pl.cdiv(M, tm), pl.cdiv(Cout, tn)

    col_map = lambda i, j: (0, j)
    w_spec = (_const_spec((Cin, tn), col_map) if gn == 1
              else pl.BlockSpec((Cin, tn), col_map))
    b_spec = (_const_spec((1, tn), col_map) if gn == 1
              else pl.BlockSpec((1, tn), col_map))

    return pl.pallas_call(
        _proj_res_kernel,
        out_shape=jax.ShapeDtypeStruct((M, Cout), res.dtype),
        grid_spec=pltpu.PrefetchScalarGridSpec(
            num_scalar_prefetch=0,
            grid=(gm, gn),
            in_specs=[
                pl.BlockSpec((tm, Cin), lambda i, j: (i, 0)),
                w_spec,
                b_spec,
                pl.BlockSpec((tm, tn), lambda i, j: (i, j)),
            ],
            out_specs=pl.BlockSpec((tm, tn), lambda i, j: (i, j)),
        ),
        compiler_params=_compiler_params(("parallel", "parallel")),
    )(x, w, bias, res)


def attention(qkv, *, heads, dim_head, scale, out_dtype):
    """qkv: (N, S, 3*inner) -> (N, S, inner); one grid step per batch element."""
    N, S, _ = qkv.shape
    inner = heads * dim_head
    return pl.pallas_call(
        partial(_attention_kernel, heads=heads, dim_head=dim_head, scale=scale),
        out_shape=jax.ShapeDtypeStruct((N, S, inner), out_dtype),
        grid_spec=pltpu.PrefetchScalarGridSpec(
            num_scalar_prefetch=0,
            grid=(N,),
            in_specs=[pl.BlockSpec((None, S, 3 * inner), lambda n: (n, 0, 0))],
            out_specs=pl.BlockSpec((None, S, inner), lambda n: (n, 0, 0)),
        ),
        compiler_params=_compiler_params(("parallel",)),
    )(qkv)


# ---------------------------------------------------------------------------
# Parameter preparation (once, outside the forward pass)
# ---------------------------------------------------------------------------
def prepare_params(params, compute_dtype=jnp.bfloat16):
    """Pre-transpose 1x1-conv weights to (Cin, Cout) and cast them to the MXU
    compute dtype (bf16 halves weight DMA bytes); lay LN/bias params out
    lane-dense as (1, C) f32.  Done once, not per forward call."""
    _buffered_ok()  # run the Buffered(1) probe eagerly, outside any jit trace
    out = {"pos_emb": jnp.asarray(params["pos_emb"], jnp.float32), "layers": []}
    for L in params["layers"]:
        out["layers"].append({
            "ln1_g": L["ln1_g"].reshape(1, -1).astype(jnp.float32),
            "ln1_b": L["ln1_b"].reshape(1, -1).astype(jnp.float32),
            "w_qkv": L["w_qkv"].T.astype(compute_dtype),   # (dim, 3*inner)
            "w_out": L["w_out"].T.astype(compute_dtype),   # (inner, dim)
            "b_out": L["b_out"].reshape(1, -1).astype(jnp.float32),
            "ln2_g": L["ln2_g"].reshape(1, -1).astype(jnp.float32),
            "ln2_b": L["ln2_b"].reshape(1, -1).astype(jnp.float32),
            "w_ff1": L["w_ff1"].T.astype(compute_dtype),   # (dim, hidden)
            "b_ff1": L["b_ff1"].reshape(1, -1).astype(jnp.float32),
            "w_ff2": L["w_ff2"].T.astype(compute_dtype),   # (hidden, dim)
            "b_ff2": L["b_ff2"].reshape(1, -1).astype(jnp.float32),
        })
    return out


# ---------------------------------------------------------------------------
# Full Transformer forward (Pallas path, token-major lane-dense layout)
# ---------------------------------------------------------------------------
def transformer_forward(x, params, *, heads, eps=1e-5):
    N, C, H, W = x.shape
    S = H * W
    dim_head = C // heads
    inner = dim_head * heads
    scale = dim_head ** (-0.5)
    cdt = params["layers"][0]["w_qkv"].dtype  # matmul / intermediate dtype (bf16)

    # Pos-embedding add, fused by XLA with the NCHW -> token-major transpose.
    pos = params["pos_emb"][:S].astype(jnp.float32)
    tokens = x.reshape(N, C, S).transpose(0, 2, 1) + pos.reshape(1, S, 1)
    flat = tokens.reshape(N * S, C)               # f32 residual stream, lane-dense

    # TODO(synk): longer term, fuse prenorm+qkv, attention and out-proj+residual
    # of a layer into a single pallas_call to remove the remaining HBM round
    # trips of the intermediate activations.
    for layer in params["layers"]:
        # --- PreNorm + Attention (to_qkv has no bias) ------------------------
        qkv = ln_proj(flat, layer["ln1_g"], layer["ln1_b"], layer["w_qkv"],
                      eps=eps, out_dtype=cdt)                     # (M, 3*inner)
        attn = attention(qkv.reshape(N, S, 3 * inner),
                         heads=heads, dim_head=dim_head, scale=scale,
                         out_dtype=cdt)                           # (N, S, inner)
        flat = proj_residual(attn.reshape(N * S, inner),
                             layer["w_out"], layer["b_out"], flat)

        # --- PreNorm + FeedForward ------------------------------------------
        h1 = ln_proj(flat, layer["ln2_g"], layer["ln2_b"], layer["w_ff1"],
                     layer["b_ff1"], eps=eps, act="gelu", out_dtype=cdt)
        flat = proj_residual(h1, layer["w_ff2"], layer["b_ff2"], flat)

    return flat.reshape(N, S, C).transpose(0, 2, 1).reshape(N, C, H, W)


# ---------------------------------------------------------------------------
# Plain-JAX reference (follows the PyTorch code in NCHW layout, all f32)
# ---------------------------------------------------------------------------
def _reference_forward(x, params, *, heads, eps=1e-5):
    N, C, H, W = x.shape
    S = H * W
    dim_head = C // heads
    inner = dim_head * heads
    scale = dim_head ** (-0.5)

    x = x + params["pos_emb"][:S].reshape(1, 1, H, W)

    def layer_norm(t, g, b):
        mean = jnp.mean(t, axis=1, keepdims=True)
        var = jnp.mean((t - mean) ** 2, axis=1, keepdims=True)
        return (t - mean) / jnp.sqrt(var + eps) * g.reshape(1, -1, 1, 1) \
            + b.reshape(1, -1, 1, 1)

    def conv1x1(t, w, b=None):
        y = jnp.einsum("nchw,oc->nohw", t, w)
        if b is not None:
            y = y + b.reshape(1, -1, 1, 1)
        return y

    for layer in params["layers"]:
        xn = layer_norm(x, layer["ln1_g"], layer["ln1_b"])
        qkv = conv1x1(xn, layer["w_qkv"])
        q, k, v = jnp.split(qkv, 3, axis=1)

        def to_heads(t):
            return t.reshape(N, heads, dim_head, S).transpose(0, 1, 3, 2)

        q, k, v = map(to_heads, (q, k, v))
        dots = jnp.einsum("bhid,bhjd->bhij", q, k) * scale
        attn = jax.nn.softmax(dots, axis=-1)
        out = jnp.einsum("bhij,bhjd->bhid", attn, v)
        out = out.transpose(0, 1, 3, 2).reshape(N, inner, H, W)
        out = conv1x1(out, layer["w_out"], layer["b_out"])
        x = out + x

        xn = layer_norm(x, layer["ln2_g"], layer["ln2_b"])
        h1 = _gelu_tanh(conv1x1(xn, layer["w_ff1"], layer["b_ff1"]))
        h2 = conv1x1(h1, layer["w_ff2"], layer["b_ff2"])
        x = h2 + x
    return x


# ---------------------------------------------------------------------------
# Deterministic parameter init (matches the nn.Module parameter shapes)
# ---------------------------------------------------------------------------
def init_params(key, *, dim, seq_len, depth, heads, mlp_mult):
    dim_head = dim // heads
    inner = dim_head * heads
    hidden = dim * mlp_mult
    keys = jax.random.split(key, depth + 1)
    params = {
        "pos_emb": jax.random.normal(keys[0], (seq_len,), jnp.float32),
        "layers": [],
    }
    for l in range(depth):
        k = jax.random.split(keys[l + 1], 8)
        params["layers"].append({
            "ln1_g": jnp.ones((dim,), jnp.float32),
            "ln1_b": jnp.zeros((dim,), jnp.float32),
            "w_qkv": jax.random.normal(k[0], (3 * inner, dim), jnp.float32) * dim ** -0.5,
            "w_out": jax.random.normal(k[1], (dim, inner), jnp.float32) * inner ** -0.5,
            "b_out": jax.random.normal(k[2], (dim,), jnp.float32) * 0.02,
            "ln2_g": jnp.ones((dim,), jnp.float32),
            "ln2_b": jnp.zeros((dim,), jnp.float32),
            "w_ff1": jax.random.normal(k[3], (hidden, dim), jnp.float32) * dim ** -0.5,
            "b_ff1": jax.random.normal(k[4], (hidden,), jnp.float32) * 0.02,
            "w_ff2": jax.random.normal(k[5], (dim, hidden), jnp.float32) * hidden ** -0.5,
            "b_ff2": jax.random.normal(k[6], (dim,), jnp.float32) * 0.02,
        })
    return params


if __name__ == "__main__":
    key = jax.random.PRNGKey(0)
    N, dim, H, W = 2, 64, 8, 8
    heads, depth, mlp_mult = 4, 2, 4
    seq_len = H * W

    kx, kp = jax.random.split(key)
    x = jax.random.normal(kx, (N, dim, H, W), dtype=jnp.float32)
    params = init_params(kp, dim=dim, seq_len=seq_len, depth=depth,
                         heads=heads, mlp_mult=mlp_mult)

    # TODO(synk): nn.Dropout with p=0.0 is an identity at inference and is omitted.
    kparams = prepare_params(params)  # bf16, pre-transposed, lane-dense params

    fwd = jax.jit(partial(transformer_forward, heads=heads))
    out = jax.block_until_ready(fwd(x, kparams))

    ref = _reference_forward(x, params, heads=heads)
    assert out.shape == ref.shape

    # bf16 MXU operands + approx-reciprocal softmax vs an all-f32 reference:
    # check the max error relative to the output scale.
    max_err = float(jnp.max(jnp.abs(out - ref)))
    ref_scale = float(jnp.max(jnp.abs(ref)))
    assert max_err <= 4e-2 * ref_scale + 5e-2, (max_err, ref_scale)

    print("KERNEL_OK")
</pallas_src>

<mosaic_0001>
module attributes {stable_mosaic.version = 11 : i64} {
  func.func @_probe_copy_kernel(%arg0: i32, %arg1: memref<8x128xf32, #tpu.memory_space<vmem>>, %arg2: memref<8x128xf32, #tpu.memory_space<vmem>>) attributes {dimension_semantics = [#tpu.dimension_semantics<arbitrary>], iteration_bounds = array<i64: 1>, scalar_prefetch = 0 : i64, scratch_operands = 0 : i64, tpu.core_type = #tpu.core_type<tc>, window_params = [{pipeline_mode = #tpu.pipeline_mode<synchronous>, transform_indices = @transform_0, window_bounds = array<i64: 8, 128>}, {pipeline_mode = #tpu.pipeline_mode<synchronous>, transform_indices = @transform_1, window_bounds = array<i64: 8, 128>}]} {
    %c0 = arith.constant 0 : index
    %c0_0 = arith.constant 0 : index
    %0 = vector.load %arg1[%c0, %c0_0] : memref<8x128xf32, #tpu.memory_space<vmem>>, vector<8x128xf32>
    %c0_1 = arith.constant 0 : index
    %c0_2 = arith.constant 0 : index
    %1 = vector.load %arg2[%c0_1, %c0_2] : memref<8x128xf32, #tpu.memory_space<vmem>>, vector<8x128xf32>
    tpu.vector_store %arg2[%c0_1, %c0_2], %0 {strides = array<i32>} : memref<8x128xf32, #tpu.memory_space<vmem>>, vector<8x128xf32>,
    return
  }
  func.func @transform_0(%arg0: i32) -> (i32, i32) {
    %c0_i32 = arith.constant 0 : i32
    %c0_i32_0 = arith.constant 0 : i32
    %c0_i32_1 = arith.constant 0 : i32
    return %c0_i32, %c0_i32_0 : i32, i32
  }
  func.func @transform_1(%arg0: i32) -> (i32, i32) {
    %c0_i32 = arith.constant 0 : i32
    %c0_i32_0 = arith.constant 0 : i32
    %c0_i32_1 = arith.constant 0 : i32
    return %c0_i32, %c0_i32_0 : i32, i32
  }
}

module attributes {stable_mosaic.version = 11 : i64} {
  func.func @_proj_res_kernel(%arg0: i32, %arg1: i32, %arg2: memref<128x64xbf16, #tpu.memory_space<vmem>>, %arg3: memref<64x64xbf16, #tpu.memory_space<vmem>>, %arg4: memref<1x64xf32, #tpu.memory_space<vmem>>, %arg5: memref<128x64xf32, #tpu.memory_space<vmem>>, %arg6: memref<128x64xf32, #tpu.memory_space<vmem>>) attributes {dimension_semantics = [#tpu.dimension_semantics<parallel>, #tpu.dimension_semantics<parallel>], iteration_bounds = array<i64: 1, 1>, scalar_prefetch = 0 : i64, scratch_operands = 0 : i64, tpu.core_type = #tpu.core_type<tc>, window_params = [{transform_indices = @transform_0, window_bounds = array<i64: 128, 64>}, {transform_indices = @transform_1, window_bounds = array<i64: 64, 64>}, {transform_indices = @transform_2, window_bounds = array<i64: 1, 64>}, {transform_indices = @transform_3, window_bounds = array<i64: 128, 64>}, {transform_indices = @transform_4, window_bounds = array<i64: 128, 64>}]} {
    %c0 = arith.constant 0 : index
    %c0_0 = arith.constant 0 : index
    %0 = vector.load %arg2[%c0, %c0_0] : memref<128x64xbf16, #tpu.memory_space<vmem>>, vector<128x64xbf16>
    %c0_1 = arith.constant 0 : index
    %c0_2 = arith.constant 0 : index
    %1 = vector.load %arg3[%c0_1, %c0_2] : memref<64x64xbf16, #tpu.memory_space<vmem>>, vector<64x64xbf16>
    %cst = arith.constant dense<0.000000e+00> : vector<128x64xf32>
    %2 = tpu.matmul %0, %1, %cst {dimension_numbers = #tpu.dot_dimension_numbers<[1], [0], [0], [1], [0, 0, 1, 1], [], []>} : vector<128x64xbf16>, vector<64x64xbf16>, vector<128x64xf32> -> vector<128x64xf32>
    %c0_3 = arith.constant 0 : index
    %c0_4 = arith.constant 0 : index
    %3 = vector.load %arg4[%c0_3, %c0_4] : memref<1x64xf32, #tpu.memory_space<vmem>>, vector<1x64xf32>
    %4 = vector.broadcast %3 : vector<1x64xf32> to vector<128x64xf32>
    %5 = arith.addf %2, %4 : vector<128x64xf32>
    %c0_5 = arith.constant 0 : index
    %c0_6 = arith.constant 0 : index
    %6 = vector.load %arg5[%c0_5, %c0_6] : memref<128x64xf32, #tpu.memory_space<vmem>>, vector<128x64xf32>
    %7 = arith.addf %5, %6 : vector<128x64xf32>
    %c0_7 = arith.constant 0 : index
    %c0_8 = arith.constant 0 : index
    %8 = vector.load %arg6[%c0_7, %c0_8] : memref<128x64xf32, #tpu.memory_space<vmem>>, vector<128x64xf32>
    tpu.vector_store %arg6[%c0_7, %c0_8], %7 {strides = array<i32>} : memref<128x64xf32, #tpu.memory_space<vmem>>, vector<128x64xf32>,
    return
  }
  func.func @transform_0(%arg0: i32, %arg1: i32) -> (i32, i32) {
    %c0_i32 = arith.constant 0 : i32
    %c0_i32_0 = arith.constant 0 : i32
    return %arg0, %c0_i32 : i32, i32
  }
  func.func @transform_1(%arg0: i32, %arg1: i32) -> (i32, i32) {
    %c0_i32 = arith.constant 0 : i32
    %c0_i32_0 = arith.constant 0 : i32
    return %c0_i32, %arg1 : i32, i32
  }
  func.func @transform_2(%arg0: i32, %arg1: i32) -> (i32, i32) {
    %c0_i32 = arith.constant 0 : i32
    %c0_i32_0 = arith.constant 0 : i32
    return %c0_i32, %arg1 : i32, i32
  }
  func.func @transform_3(%arg0: i32, %arg1: i32) -> (i32, i32) {
    %c0_i32 = arith.constant 0 : i32
    return %arg0, %arg1 : i32, i32
  }
  func.func @transform_4(%arg0: i32, %arg1: i32) -> (i32, i32) {
    %c0_i32 = arith.constant 0 : i32
    return %arg0, %arg1 : i32, i32
  }
}

module attributes {stable_mosaic.version = 11 : i64} {
  func.func @_ln_proj_kernel(%arg0: i32, %arg1: i32, %arg2: memref<128x64xf32, #tpu.memory_space<vmem>>, %arg3: memref<1x64xf32, #tpu.memory_space<vmem>>, %arg4: memref<1x64xf32, #tpu.memory_space<vmem>>, %arg5: memref<64x192xbf16, #tpu.memory_space<vmem>>, %arg6: memref<128x192xbf16, #tpu.memory_space<vmem>>) attributes {dimension_semantics = [#tpu.dimension_semantics<parallel>, #tpu.dimension_semantics<parallel>], iteration_bounds = array<i64: 1, 1>, scalar_prefetch = 0 : i64, scratch_operands = 0 : i64, tpu.core_type = #tpu.core_type<tc>, window_params = [{transform_indices = @transform_0, window_bounds = array<i64: 128, 64>}, {pipeline_mode = #tpu.pipeline_mode<synchronous>, transform_indices = @transform_1, window_bounds = array<i64: 1, 64>}, {pipeline_mode = #tpu.pipeline_mode<synchronous>, transform_indices = @transform_2, window_bounds = array<i64: 1, 64>}, {transform_indices = @transform_3, window_bounds = array<i64: 64, 192>}, {transform_indices = @transform_4, window_bounds = array<i64: 128, 192>}]} {
    %c0 = arith.constant 0 : index
    %c0_0 = arith.constant 0 : index
    %0 = vector.load %arg2[%c0, %c0_0] : memref<128x64xf32, #tpu.memory_space<vmem>>, vector<128x64xf32>
    %cst = arith.constant dense<0.000000e+00> : vector<128xf32>
    %1 = vector.multi_reduction <add>, %0, %cst [1] : vector<128x64xf32> to vector<128xf32>
    %2 = vector.shape_cast %1 : vector<128xf32> to vector<128x1xf32>
    %cst_1 = arith.constant 6.400000e+01 : f32
    %3 = vector.broadcast %cst_1 : f32 to vector<128x1xf32>
    %4 = arith.divf %2, %3 : vector<128x1xf32>
    %5 = vector.broadcast %4 : vector<128x1xf32> to vector<128x64xf32>
    %6 = arith.subf %0, %5 : vector<128x64xf32>
    %7 = arith.mulf %6, %6 : vector<128x64xf32>
    %cst_2 = arith.constant dense<0.000000e+00> : vector<128xf32>
    %8 = vector.multi_reduction <add>, %7, %cst_2 [1] : vector<128x64xf32> to vector<128xf32>
    %9 = vector.shape_cast %8 : vector<128xf32> to vector<128x1xf32>
    %cst_3 = arith.constant 6.400000e+01 : f32
    %10 = vector.broadcast %cst_3 : f32 to vector<128x1xf32>
    %11 = arith.divf %9, %10 : vector<128x1xf32>
    %cst_4 = arith.constant 9.99999974E-6 : f32
    %12 = vector.broadcast %cst_4 : f32 to vector<128x1xf32>
    %13 = arith.addf %11, %12 : vector<128x1xf32>
    %14 = math.rsqrt %13 : vector<128x1xf32>
    %15 = vector.broadcast %14 : vector<128x1xf32> to vector<128x64xf32>
    %16 = arith.mulf %6, %15 : vector<128x64xf32>
    %c0_5 = arith.constant 0 : index
    %c0_6 = arith.constant 0 : index
    %17 = vector.load %arg3[%c0_5, %c0_6] : memref<1x64xf32, #tpu.memory_space<vmem>>, vector<1x64xf32>
    %18 = vector.broadcast %17 : vector<1x64xf32> to vector<128x64xf32>
    %19 = arith.mulf %16, %18 : vector<128x64xf32>
    %c0_7 = arith.constant 0 : index
    %c0_8 = arith.constant 0 : index
    %20 = vector.load %arg4[%c0_7, %c0_8] : memref<1x64xf32, #tpu.memory_space<vmem>>, vector<1x64xf32>
    %21 = vector.broadcast %20 : vector<1x64xf32> to vector<128x64xf32>
    %22 = arith.addf %19, %21 : vector<128x64xf32>
    %23 = arith.truncf %22 : vector<128x64xf32> to vector<128x64xbf16>
    %c0_9 = arith.constant 0 : index
    %c0_10 = arith.constant 0 : index
    %24 = vector.load %arg5[%c0_9, %c0_10] : memref<64x192xbf16, #tpu.memory_space<vmem>>, vector<64x192xbf16>
    %cst_11 = arith.constant dense<0.000000e+00> : vector<128x192xf32>
    %25 = tpu.matmul %23, %24, %cst_11 {dimension_numbers = #tpu.dot_dimension_numbers<[1], [0], [0], [1], [0, 0, 1, 1], [], []>} : vector<128x64xbf16>, vector<64x192xbf16>, vector<128x192xf32> -> vector<128x192xf32>
    %26 = arith.truncf %25 : vector<128x192xf32> to vector<128x192xbf16>
    %c0_12 = arith.constant 0 : index
    %c0_13 = arith.constant 0 : index
    %27 = vector.load %arg6[%c0_12, %c0_13] : memref<128x192xbf16, #tpu.memory_space<vmem>>, vector<128x192xbf16>
    tpu.vector_store %arg6[%c0_12, %c0_13], %26 {strides = array<i32>} : memref<128x192xbf16, #tpu.memory_space<vmem>>, vector<128x192xbf16>,
    return
  }
  func.func @transform_0(%arg0: i32, %arg1: i32) -> (i32, i32) {
    %c0_i32 = arith.constant 0 : i32
    %c0_i32_0 = arith.constant 0 : i32
    return %arg0, %c0_i32 : i32, i32
  }
  func.func @transform_1(%arg0: i32, %arg1: i32) -> (i32, i32) {
    %c0_i32 = arith.constant 0 : i32
    %c0_i32_0 = arith.constant 0 : i32
    %c0_i32_1 = arith.constant 0 : i32
    return %c0_i32, %c0_i32_0 : i32, i32
  }
  func.func @transform_2(%arg0: i32, %arg1: i32) -> (i32, i32) {
    %c0_i32 = arith.constant 0 : i32
    %c0_i32_0 = arith.constant 0 : i32
    %c0_i32_1 = arith.constant 0 : i32
    return %c0_i32, %c0_i32_0 : i32, i32
  }
  func.func @transform_3(%arg0: i32, %arg1: i32) -> (i32, i32) {
    %c0_i32 = arith.constant 0 : i32
    %c0_i32_0 = arith.constant 0 : i32
    return %c0_i32, %arg1 : i32, i32
  }
  func.func @transform_4(%arg0: i32, %arg1: i32) -> (i32, i32) {
    %c0_i32 = arith.constant 0 : i32
    return %arg0, %arg1 : i32, i32
  }
}

module attributes {stable_mosaic.version = 11 : i64} {
  func.func @_attention_kernel(%arg0: i32, %arg1: memref<1x64x192xbf16, #tpu.memory_space<vmem>>, %arg2: memref<1x64x64xbf16, #tpu.memory_space<vmem>>) attributes {dimension_semantics = [#tpu.dimension_semantics<parallel>], iteration_bounds = array<i64: 2>, scalar_prefetch = 0 : i64, scratch_operands = 0 : i64, tpu.core_type = #tpu.core_type<tc>, window_params = [{transform_indices = @transform_0, window_bounds = array<i64: 1, 64, 192>}, {transform_indices = @transform_1, window_bounds = array<i64: 1, 64, 64>}]} {
    %c0 = arith.constant 0 : index
    %c0_0 = arith.constant 0 : index
    %c0_1 = arith.constant 0 : index
    %0 = vector.load %arg1[%c0, %c0_0, %c0_1] : memref<1x64x192xbf16, #tpu.memory_space<vmem>>, vector<1x64x192xbf16>
    %1 = vector.shape_cast %0 : vector<1x64x192xbf16> to vector<64x192xbf16>
    %2 = vector.extract_strided_slice %1 {offsets = [0, 0], sizes = [64, 16], strides = [1, 1]} : vector<64x192xbf16> to vector<64x16xbf16>
    %3 = vector.extract_strided_slice %1 {offsets = [0, 64], sizes = [64, 16], strides = [1, 1]} : vector<64x192xbf16> to vector<64x16xbf16>
    %4 = vector.extract_strided_slice %1 {offsets = [0, 128], sizes = [64, 16], strides = [1, 1]} : vector<64x192xbf16> to vector<64x16xbf16>
    %cst = arith.constant dense<0.000000e+00> : vector<64x64xf32>
    %5 = tpu.matmul %2, %3, %cst {dimension_numbers = #tpu.dot_dimension_numbers<[1], [1], [0], [0], [0, 0, 1, 0], [], []>} : vector<64x16xbf16>, vector<64x16xbf16>, vector<64x64xf32> -> vector<64x64xf32>
    %cst_2 = arith.constant 2.500000e-01 : f32
    %6 = vector.broadcast %cst_2 : f32 to vector<64x64xf32>
    %7 = arith.mulf %5, %6 : vector<64x64xf32>
    %cst_3 = arith.constant dense<0xFF800000> : vector<64xf32>
    %8 = vector.multi_reduction <maximumf>, %7, %cst_3 [1] : vector<64x64xf32> to vector<64xf32>
    %9 = vector.shape_cast %8 : vector<64xf32> to vector<64x1xf32>
    %10 = vector.broadcast %9 : vector<64x1xf32> to vector<64x64xf32>
    %11 = arith.subf %7, %10 : vector<64x64xf32>
    %12 = math.exp %11 : vector<64x64xf32>
    %cst_4 = arith.constant dense<0.000000e+00> : vector<64xf32>
    %13 = vector.multi_reduction <add>, %12, %cst_4 [1] : vector<64x64xf32> to vector<64xf32>
    %14 = vector.shape_cast %13 : vector<64xf32> to vector<64x1xf32>
    %15 = tpu.reciprocal %14 {approx = true} : vector<64x1xf32> -> vector<64x1xf32>
    %16 = vector.broadcast %15 : vector<64x1xf32> to vector<64x64xf32>
    %17 = arith.mulf %12, %16 : vector<64x64xf32>
    %18 = arith.truncf %17 : vector<64x64xf32> to vector<64x64xbf16>
    %cst_5 = arith.constant dense<0.000000e+00> : vector<64x16xf32>
    %19 = tpu.matmul %18, %4, %cst_5 {dimension_numbers = #tpu.dot_dimension_numbers<[1], [0], [0], [1], [0, 0, 1, 1], [], []>} : vector<64x64xbf16>, vector<64x16xbf16>, vector<64x16xf32> -> vector<64x16xf32>
    %20 = vector.extract_strided_slice %1 {offsets = [0, 16], sizes = [64, 16], strides = [1, 1]} : vector<64x192xbf16> to vector<64x16xbf16>
    %21 = vector.extract_strided_slice %1 {offsets = [0, 80], sizes = [64, 16], strides = [1, 1]} : vector<64x192xbf16> to vector<64x16xbf16>
    %22 = vector.extract_strided_slice %1 {offsets = [0, 144], sizes = [64, 16], strides = [1, 1]} : vector<64x192xbf16> to vector<64x16xbf16>
    %cst_6 = arith.constant dense<0.000000e+00> : vector<64x64xf32>
    %23 = tpu.matmul %20, %21, %cst_6 {dimension_numbers = #tpu.dot_dimension_numbers<[1], [1], [0], [0], [0, 0, 1, 0], [], []>} : vector<64x16xbf16>, vector<64x16xbf16>, vector<64x64xf32> -> vector<64x64xf32>
    %cst_7 = arith.constant 2.500000e-01 : f32
    %24 = vector.broadcast %cst_7 : f32 to vector<64x64xf32>
    %25 = arith.mulf %23, %24 : vector<64x64xf32>
    %cst_8 = arith.constant dense<0xFF800000> : vector<64xf32>
    %26 = vector.multi_reduction <maximumf>, %25, %cst_8 [1] : vector<64x64xf32> to vector<64xf32>
    %27 = vector.shape_cast %26 : vector<64xf32> to vector<64x1xf32>
    %28 = vector.broadcast %27 : vector<64x1xf32> to vector<64x64xf32>
    %29 = arith.subf %25, %28 : vector<64x64xf32>
    %30 = math.exp %29 : vector<64x64xf32>
    %cst_9 = arith.constant dense<0.000000e+00> : vector<64xf32>
    %31 = vector.multi_reduction <add>, %30, %cst_9 [1] : vector<64x64xf32> to vector<64xf32>
    %32 = vector.shape_cast %31 : vector<64xf32> to vector<64x1xf32>
    %33 = tpu.reciprocal %32 {approx = true} : vector<64x1xf32> -> vector<64x1xf32>
    %34 = vector.broadcast %33 : vector<64x1xf32> to vector<64x64xf32>
    %35 = arith.mulf %30, %34 : vector<64x64xf32>
    %36 = arith.truncf %35 : vector<64x64xf32> to vector<64x64xbf16>
    %cst_10 = arith.constant dense<0.000000e+00> : vector<64x16xf32>
    %37 = tpu.matmul %36, %22, %cst_10 {dimension_numbers = #tpu.dot_dimension_numbers<[1], [0], [0], [1], [0, 0, 1, 1], [], []>} : vector<64x64xbf16>, vector<64x16xbf16>, vector<64x16xf32> -> vector<64x16xf32>
    %38 = vector.extract_strided_slice %1 {offsets = [0, 32], sizes = [64, 16], strides = [1, 1]} : vector<64x192xbf16> to vector<64x16xbf16>
    %39 = vector.extract_strided_slice %1 {offsets = [0, 96], sizes = [64, 16], strides = [1, 1]} : vector<64x192xbf16> to vector<64x16xbf16>
    %40 = vector.extract_strided_slice %1 {offsets = [0, 160], sizes = [64, 16], strides = [1, 1]} : vector<64x192xbf16> to vector<64x16xbf16>
    %cst_11 = arith.constant dense<0.000000e+00> : vector<64x64xf32>
    %41 = tpu.matmul %38, %39, %cst_11 {dimension_numbers = #tpu.dot_dimension_numbers<[1], [1], [0], [0], [0, 0, 1, 0], [], []>} : vector<64x16xbf16>, vector<64x16xbf16>, vector<64x64xf32> -> vector<64x64xf32>
    %cst_12 = arith.constant 2.500000e-01 : f32
    %42 = vector.broadcast %cst_12 : f32 to vector<64x64xf32>
    %43 = arith.mulf %41, %42 : vector<64x64xf32>
    %cst_13 = arith.constant dense<0xFF800000> : vector<64xf32>
    %44 = vector.multi_reduction <maximumf>, %43, %cst_13 [1] : vector<64x64xf32> to vector<64xf32>
    %45 = vector.shape_cast %44 : vector<64xf32> to vector<64x1xf32>
    %46 = vector.broadcast %45 : vector<64x1xf32> to vector<64x64xf32>
    %47 = arith.subf %43, %46 : vector<64x64xf32>
    %48 = math.exp %47 : vector<64x64xf32>
    %cst_14 = arith.constant dense<0.000000e+00> : vector<64xf32>
    %49 = vector.multi_reduction <add>, %48, %cst_14 [1] : vector<64x64xf32> to vector<64xf32>
    %50 = vector.shape_cast %49 : vector<64xf32> to vector<64x1xf32>
    %51 = tpu.reciprocal %50 {approx = true} : vector<64x1xf32> -> vector<64x1xf32>
    %52 = vector.broadcast %51 : vector<64x1xf32> to vector<64x64xf32>
    %53 = arith.mulf %48, %52 : vector<64x64xf32>
    %54 = arith.truncf %53 : vector<64x64xf32> to vector<64x64xbf16>
    %cst_15 = arith.constant dense<0.000000e+00> : vector<64x16xf32>
    %55 = tpu.matmul %54, %40, %cst_15 {dimension_numbers = #tpu.dot_dimension_numbers<[1], [0], [0], [1], [0, 0, 1, 1], [], []>} : vector<64x64xbf16>, vector<64x16xbf16>, vector<64x16xf32> -> vector<64x16xf32>
    %56 = vector.extract_strided_slice %1 {offsets = [0, 48], sizes = [64, 16], strides = [1, 1]} : vector<64x192xbf16> to vector<64x16xbf16>
    %57 = vector.extract_strided_slice %1 {offsets = [0, 112], sizes = [64, 16], strides = [1, 1]} : vector<64x192xbf16> to vector<64x16xbf16>
    %58 = vector.extract_strided_slice %1 {offsets = [0, 176], sizes = [64, 16], strides = [1, 1]} : vector<64x192xbf16> to vector<64x16xbf16>
    %cst_16 = arith.constant dense<0.000000e+00> : vector<64x64xf32>
    %59 = tpu.matmul %56, %57, %cst_16 {dimension_numbers = #tpu.dot_dimension_numbers<[1], [1], [0], [0], [0, 0, 1, 0], [], []>} : vector<64x16xbf16>, vector<64x16xbf16>, vector<64x64xf32> -> vector<64x64xf32>
    %cst_17 = arith.constant 2.500000e-01 : f32
    %60 = vector.broadcast %cst_17 : f32 to vector<64x64xf32>
    %61 = arith.mulf %59, %60 : vector<64x64xf32>
    %cst_18 = arith.constant dense<0xFF800000> : vector<64xf32>
    %62 = vector.multi_reduction <maximumf>, %61, %cst_18 [1] : vector<64x64xf32> to vector<64xf32>
    %63 = vector.shape_cast %62 : vector<64xf32> to vector<64x1xf32>
    %64 = vector.broadcast %63 : vector<64x1xf32> to vector<64x64xf32>
    %65 = arith.subf %61, %64 : vector<64x64xf32>
    %66 = math.exp %65 : vector<64x64xf32>
    %cst_19 = arith.constant dense<0.000000e+00> : vector<64xf32>
    %67 = vector.multi_reduction <add>, %66, %cst_19 [1] : vector<64x64xf32> to vector<64xf32>
    %68 = vector.shape_cast %67 : vector<64xf32> to vector<64x1xf32>
    %69 = tpu.reciprocal %68 {approx = true} : vector<64x1xf32> -> vector<64x1xf32>
    %70 = vector.broadcast %69 : vector<64x1xf32> to vector<64x64xf32>
    %71 = arith.mulf %66, %70 : vector<64x64xf32>
    %72 = arith.truncf %71 : vector<64x64xf32> to vector<64x64xbf16>
    %cst_20 = arith.constant dense<0.000000e+00> : vector<64x16xf32>
    %73 = tpu.matmul %72, %58, %cst_20 {dimension_numbers = #tpu.dot_dimension_numbers<[1], [0], [0], [1], [0, 0, 1, 1], [], []>} : vector<64x64xbf16>, vector<64x16xbf16>, vector<64x16xf32> -> vector<64x16xf32>
    %74 = tpu.concatenate %19, %37, %55, %73 in 1 : vector<64x16xf32>, vector<64x16xf32>, vector<64x16xf32>, vector<64x16xf32> -> vector<64x64xf32>
    %75 = arith.truncf %74 : vector<64x64xf32> to vector<64x64xbf16>
    %c0_21 = arith.constant 0 : index
    %c0_22 = arith.constant 0 : index
    %c0_23 = arith.constant 0 : index
    %76 = vector.load %arg2[%c0_21, %c0_22, %c0_23] : memref<1x64x64xbf16, #tpu.memory_space<vmem>>, vector<1x64x64xbf16>
    %77 = vector.shape_cast %76 : vector<1x64x64xbf16> to vector<64x64xbf16>
    %78 = vector.shape_cast %75 : vector<64x64xbf16> to vector<1x64x64xbf16>
    tpu.vector_store %arg2[%c0_21, %c0_22, %c0_23], %78 {strides = array<i32>} : memref<1x64x64xbf16, #tpu.memory_space<vmem>>, vector<1x64x64xbf16>,
    return
  }
  func.func @transform_0(%arg0: i32) -> (i32, i32, i32) {
    %c0_i32 = arith.constant 0 : i32
    %c0_i32_0 = arith.constant 0 : i32
    %c0_i32_1 = arith.constant 0 : i32
    return %arg0, %c0_i32, %c0_i32_0 : i32, i32, i32
  }
  func.func @transform_1(%arg0: i32) -> (i32, i32, i32) {
    %c0_i32 = arith.constant 0 : i32
    %c0_i32_0 = arith.constant 0 : i32
    %c0_i32_1 = arith.constant 0 : i32
    return %arg0, %c0_i32, %c0_i32_0 : i32, i32, i32
  }
}

module attributes {stable_mosaic.version = 11 : i64} {
  func.func @_ln_proj_kernel(%arg0: i32, %arg1: i32, %arg2: memref<128x64xf32, #tpu.memory_space<vmem>>, %arg3: memref<1x64xf32, #tpu.memory_space<vmem>>, %arg4: memref<1x64xf32, #tpu.memory_space<vmem>>, %arg5: memref<64x256xbf16, #tpu.memory_space<vmem>>, %arg6: memref<1x256xf32, #tpu.memory_space<vmem>>, %arg7: memref<128x256xbf16, #tpu.memory_space<vmem>>) attributes {dimension_semantics = [#tpu.dimension_semantics<parallel>, #tpu.dimension_semantics<parallel>], iteration_bounds = array<i64: 1, 1>, scalar_prefetch = 0 : i64, scratch_operands = 0 : i64, tpu.core_type = #tpu.core_type<tc>, window_params = [{transform_indices = @transform_0, window_bounds = array<i64: 128, 64>}, {pipeline_mode = #tpu.pipeline_mode<synchronous>, transform_indices = @transform_1, window_bounds = array<i64: 1, 64>}, {pipeline_mode = #tpu.pipeline_mode<synchronous>, transform_indices = @transform_2, window_bounds = array<i64: 1, 64>}, {transform_indices = @transform_3, window_bounds = array<i64: 64, 256>}, {transform_indices = @transform_4, window_bounds = array<i64: 1, 256>}, {transform_indices = @transform_5, window_bounds = array<i64: 128, 256>}]} {
    %c0 = arith.constant 0 : index
    %c0_0 = arith.constant 0 : index
    %0 = vector.load %arg2[%c0, %c0_0] : memref<128x64xf32, #tpu.memory_space<vmem>>, vector<128x64xf32>
    %cst = arith.constant dense<0.000000e+00> : vector<128xf32>
    %1 = vector.multi_reduction <add>, %0, %cst [1] : vector<128x64xf32> to vector<128xf32>
    %2 = vector.shape_cast %1 : vector<128xf32> to vector<128x1xf32>
    %cst_1 = arith.constant 6.400000e+01 : f32
    %3 = vector.broadcast %cst_1 : f32 to vector<128x1xf32>
    %4 = arith.divf %2, %3 : vector<128x1xf32>
    %5 = vector.broadcast %4 : vector<128x1xf32> to vector<128x64xf32>
    %6 = arith.subf %0, %5 : vector<128x64xf32>
    %7 = arith.mulf %6, %6 : vector<128x64xf32>
    %cst_2 = arith.constant dense<0.000000e+00> : vector<128xf32>
    %8 = vector.multi_reduction <add>, %7, %cst_2 [1] : vector<128x64xf32> to vector<128xf32>
    %9 = vector.shape_cast %8 : vector<128xf32> to vector<128x1xf32>
    %cst_3 = arith.constant 6.400000e+01 : f32
    %10 = vector.broadcast %cst_3 : f32 to vector<128x1xf32>
    %11 = arith.divf %9, %10 : vector<128x1xf32>
    %cst_4 = arith.constant 9.99999974E-6 : f32
    %12 = vector.broadcast %cst_4 : f32 to vector<128x1xf32>
    %13 = arith.addf %11, %12 : vector<128x1xf32>
    %14 = math.rsqrt %13 : vector<128x1xf32>
    %15 = vector.broadcast %14 : vector<128x1xf32> to vector<128x64xf32>
    %16 = arith.mulf %6, %15 : vector<128x64xf32>
    %c0_5 = arith.constant 0 : index
    %c0_6 = arith.constant 0 : index
    %17 = vector.load %arg3[%c0_5, %c0_6] : memref<1x64xf32, #tpu.memory_space<vmem>>, vector<1x64xf32>
    %18 = vector.broadcast %17 : vector<1x64xf32> to vector<128x64xf32>
    %19 = arith.mulf %16, %18 : vector<128x64xf32>
    %c0_7 = arith.constant 0 : index
    %c0_8 = arith.constant 0 : index
    %20 = vector.load %arg4[%c0_7, %c0_8] : memref<1x64xf32, #tpu.memory_space<vmem>>, vector<1x64xf32>
    %21 = vector.broadcast %20 : vector<1x64xf32> to vector<128x64xf32>
    %22 = arith.addf %19, %21 : vector<128x64xf32>
    %23 = arith.truncf %22 : vector<128x64xf32> to vector<128x64xbf16>
    %c0_9 = arith.constant 0 : index
    %c0_10 = arith.constant 0 : index
    %24 = vector.load %arg5[%c0_9, %c0_10] : memref<64x256xbf16, #tpu.memory_space<vmem>>, vector<64x256xbf16>
    %cst_11 = arith.constant dense<0.000000e+00> : vector<128x256xf32>
    %25 = tpu.matmul %23, %24, %cst_11 {dimension_numbers = #tpu.dot_dimension_numbers<[1], [0], [0], [1], [0, 0, 1, 1], [], []>} : vector<128x64xbf16>, vector<64x256xbf16>, vector<128x256xf32> -> vector<128x256xf32>
    %c0_12 = arith.constant 0 : index
    %c0_13 = arith.constant 0 : index
    %26 = vector.load %arg6[%c0_12, %c0_13] : memref<1x256xf32, #tpu.memory_space<vmem>>, vector<1x256xf32>
    %27 = vector.broadcast %26 : vector<1x256xf32> to vector<128x256xf32>
    %28 = arith.addf %25, %27 : vector<128x256xf32>
    %cst_14 = arith.constant 5.000000e-01 : f32
    %29 = vector.broadcast %cst_14 : f32 to vector<128x256xf32>
    %30 = arith.mulf %29, %28 : vector<128x256xf32>
    %cst_15 = arith.constant 4.471500e-02 : f32
    %31 = vector.broadcast %cst_15 : f32 to vector<128x256xf32>
    %32 = arith.mulf %31, %28 : vector<128x256xf32>
    %33 = arith.mulf %32, %28 : vector<128x256xf32>
    %34 = arith.mulf %33, %28 : vector<128x256xf32>
    %35 = arith.addf %28, %34 : vector<128x256xf32>
    %cst_16 = arith.constant 0.797884583 : f32
    %36 = vector.broadcast %cst_16 : f32 to vector<128x256xf32>
    %37 = arith.mulf %36, %35 : vector<128x256xf32>
    %38 = math.tanh %37 : vector<128x256xf32>
    %cst_17 = arith.constant 1.000000e+00 : f32
    %39 = vector.broadcast %cst_17 : f32 to vector<128x256xf32>
    %40 = arith.addf %39, %38 : vector<128x256xf32>
    %41 = arith.mulf %30, %40 : vector<128x256xf32>
    %42 = arith.truncf %41 : vector<128x256xf32> to vector<128x256xbf16>
    %c0_18 = arith.constant 0 : index
    %c0_19 = arith.constant 0 : index
    %43 = vector.load %arg7[%c0_18, %c0_19] : memref<128x256xbf16, #tpu.memory_space<vmem>>, vector<128x256xbf16>
    tpu.vector_store %arg7[%c0_18, %c0_19], %42 {strides = array<i32>} : memref<128x256xbf16, #tpu.memory_space<vmem>>, vector<128x256xbf16>,
    return
  }
  func.func @transform_0(%arg0: i32, %arg1: i32) -> (i32, i32) {
    %c0_i32 = arith.constant 0 : i32
    %c0_i32_0 = arith.constant 0 : i32
    return %arg0, %c0_i32 : i32, i32
  }
  func.func @transform_1(%arg0: i32, %arg1: i32) -> (i32, i32) {
    %c0_i32 = arith.constant 0 : i32
    %c0_i32_0 = arith.constant 0 : i32
    %c0_i32_1 = arith.constant 0 : i32
    return %c0_i32, %c0_i32_0 : i32, i32
  }
  func.func @transform_2(%arg0: i32, %arg1: i32) -> (i32, i32) {
    %c0_i32 = arith.constant 0 : i32
    %c0_i32_0 = arith.constant 0 : i32
    %c0_i32_1 = arith.constant 0 : i32
    return %c0_i32, %c0_i32_0 : i32, i32
  }
  func.func @transform_3(%arg0: i32, %arg1: i32) -> (i32, i32) {
    %c0_i32 = arith.constant 0 : i32
    %c0_i32_0 = arith.constant 0 : i32
    return %c0_i32, %arg1 : i32, i32
  }
  func.func @transform_4(%arg0: i32, %arg1: i32) -> (i32, i32) {
    %c0_i32 = arith.constant 0 : i32
    %c0_i32_0 = arith.constant 0 : i32
    return %c0_i32, %arg1 : i32, i32
  }
  func.func @transform_5(%arg0: i32, %arg1: i32) -> (i32, i32) {
    %c0_i32 = arith.constant 0 : i32
    return %arg0, %arg1 : i32, i32
  }
}

module attributes {stable_mosaic.version = 11 : i64} {
  func.func @_proj_res_kernel(%arg0: i32, %arg1: i32, %arg2: memref<128x256xbf16, #tpu.memory_space<vmem>>, %arg3: memref<256x64xbf16, #tpu.memory_space<vmem>>, %arg4: memref<1x64xf32, #tpu.memory_space<vmem>>, %arg5: memref<128x64xf32, #tpu.memory_space<vmem>>, %arg6: memref<128x64xf32, #tpu.memory_space<vmem>>) attributes {dimension_semantics = [#tpu.dimension_semantics<parallel>, #tpu.dimension_semantics<parallel>], iteration_bounds = array<i64: 1, 1>, scalar_prefetch = 0 : i64, scratch_operands = 0 : i64, tpu.core_type = #tpu.core_type<tc>, window_params = [{transform_indices = @transform_0, window_bounds = array<i64: 128, 256>}, {transform_indices = @transform_1, window_bounds = array<i64: 256, 64>}, {transform_indices = @transform_2, window_bounds = array<i64: 1, 64>}, {transform_indices = @transform_3, window_bounds = array<i64: 128, 64>}, {transform_indices = @transform_4, window_bounds = array<i64: 128, 64>}]} {
    %c0 = arith.constant 0 : index
    %c0_0 = arith.constant 0 : index
    %0 = vector.load %arg2[%c0, %c0_0] : memref<128x256xbf16, #tpu.memory_space<vmem>>, vector<128x256xbf16>
    %c0_1 = arith.constant 0 : index
    %c0_2 = arith.constant 0 : index
    %1 = vector.load %arg3[%c0_1, %c0_2] : memref<256x64xbf16, #tpu.memory_space<vmem>>, vector<256x64xbf16>
    %cst = arith.constant dense<0.000000e+00> : vector<128x64xf32>
    %2 = tpu.matmul %0, %1, %cst {dimension_numbers = #tpu.dot_dimension_numbers<[1], [0], [0], [1], [0, 0, 1, 1], [], []>} : vector<128x256xbf16>, vector<256x64xbf16>, vector<128x64xf32> -> vector<128x64xf32>
    %c0_3 = arith.constant 0 : index
    %c0_4 = arith.constant 0 : index
    %3 = vector.load %arg4[%c0_3, %c0_4] : memref<1x64xf32, #tpu.memory_space<vmem>>, vector<1x64xf32>
    %4 = vector.broadcast %3 : vector<1x64xf32> to vector<128x64xf32>
    %5 = arith.addf %2, %4 : vector<128x64xf32>
    %c0_5 = arith.constant 0 : index
    %c0_6 = arith.constant 0 : index
    %6 = vector.load %arg5[%c0_5, %c0_6] : memref<128x64xf32, #tpu.memory_space<vmem>>, vector<128x64xf32>
    %7 = arith.addf %5, %6 : vector<128x64xf32>
    %c0_7 = arith.constant 0 : index
    %c0_8 = arith.constant 0 : index
    %8 = vector.load %arg6[%c0_7, %c0_8] : memref<128x64xf32, #tpu.memory_space<vmem>>, vector<128x64xf32>
    tpu.vector_store %arg6[%c0_7, %c0_8], %7 {strides = array<i32>} : memref<128x64xf32, #tpu.memory_space<vmem>>, vector<128x64xf32>,
    return
  }
  func.func @transform_0(%arg0: i32, %arg1: i32) -> (i32, i32) {
    %c0_i32 = arith.constant 0 : i32
    %c0_i32_0 = arith.constant 0 : i32
    return %arg0, %c0_i32 : i32, i32
  }
  func.func @transform_1(%arg0: i32, %arg1: i32) -> (i32, i32) {
    %c0_i32 = arith.constant 0 : i32
    %c0_i32_0 = arith.constant 0 : i32
    return %c0_i32, %arg1 : i32, i32
  }
  func.func @transform_2(%arg0: i32, %arg1: i32) -> (i32, i32) {
    %c0_i32 = arith.constant 0 : i32
    %c0_i32_0 = arith.constant 0 : i32
    return %c0_i32, %arg1 : i32, i32
  }
  func.func @transform_3(%arg0: i32, %arg1: i32) -> (i32, i32) {
    %c0_i32 = arith.constant 0 : i32
    return %arg0, %arg1 : i32, i32
  }
  func.func @transform_4(%arg0: i32, %arg1: i32) -> (i32, i32) {
    %c0_i32 = arith.constant 0 : i32
    return %arg0, %arg1 : i32, i32
  }
}

module attributes {stable_mosaic.version = 11 : i64} {
  func.func @_proj_res_kernel(%arg0: i32, %arg1: i32, %arg2: memref<128x256xbf16, #tpu.memory_space<vmem>>, %arg3: memref<256x64xbf16, #tpu.memory_space<vmem>>, %arg4: memref<1x64xf32, #tpu.memory_space<vmem>>, %arg5: memref<128x64xf32, #tpu.memory_space<vmem>>, %arg6: memref<128x64xf32, #tpu.memory_space<vmem>>) attributes {dimension_semantics = [#tpu.dimension_semantics<parallel>, #tpu.dimension_semantics<parallel>], iteration_bounds = array<i64: 1, 1>, scalar_prefetch = 0 : i64, scratch_operands = 0 : i64, tpu.core_type = #tpu.core_type<tc>, window_params = [{transform_indices = @transform_0, window_bounds = array<i64: 128, 256>}, {transform_indices = @transform_1, window_bounds = array<i64: 256, 64>}, {transform_indices = @transform_2, window_bounds = array<i64: 1, 64>}, {transform_indices = @transform_3, window_bounds = array<i64: 128, 64>}, {transform_indices = @transform_4, window_bounds = array<i64: 128, 64>}]} {
    %c0 = arith.constant 0 : index
    %c0_0 = arith.constant 0 : index
    %0 = vector.load %arg2[%c0, %c0_0] : memref<128x256xbf16, #tpu.memory_space<vmem>>, vector<128x256xbf16>
    %c0_1 = arith.constant 0 : index
    %c0_2 = arith.constant 0 : index
    %1 = vector.load %arg3[%c0_1, %c0_2] : memref<256x64xbf16, #tpu.memory_space<vmem>>, vector<256x64xbf16>
    %cst = arith.constant dense<0.000000e+00> : vector<128x64xf32>
    %2 = tpu.matmul %0, %1, %cst {dimension_numbers = #tpu.dot_dimension_numbers<[1], [0], [0], [1], [0, 0, 1, 1], [], []>} : vector<128x256xbf16>, vector<256x64xbf16>, vector<128x64xf32> -> vector<128x64xf32>
    %c0_3 = arith.constant 0 : index
    %c0_4 = arith.constant 0 : index
    %3 = vector.load %arg4[%c0_3, %c0_4] : memref<1x64xf32, #tpu.memory_space<vmem>>, vector<1x64xf32>
    %4 = vector.broadcast %3 : vector<1x64xf32> to vector<128x64xf32>
    %5 = arith.addf %2, %4 : vector<128x64xf32>
    %c0_5 = arith.constant 0 : index
    %c0_6 = arith.constant 0 : index
    %6 = vector.load %arg5[%c0_5, %c0_6] : memref<128x64xf32, #tpu.memory_space<vmem>>, vector<128x64xf32>
    %7 = arith.addf %5, %6 : vector<128x64xf32>
    %c0_7 = arith.constant 0 : index
    %c0_8 = arith.constant 0 : index
    %8 = vector.load %arg6[%c0_7, %c0_8] : memref<128x64xf32, #tpu.memory_space<vmem>>, vector<128x64xf32>
    tpu.vector_store %arg6[%c0_7, %c0_8], %7 {strides = array<i32>} : memref<128x64xf32, #tpu.memory_space<vmem>>, vector<128x64xf32>,
    return
  }
  func.func @transform_0(%arg0: i32, %arg1: i32) -> (i32, i32) {
    %c0_i32 = arith.constant 0 : i32
    %c0_i32_0 = arith.constant 0 : i32
    return %arg0, %c0_i32 : i32, i32
  }
  func.func @transform_1(%arg0: i32, %arg1: i32) -> (i32, i32) {
    %c0_i32 = arith.constant 0 : i32
    %c0_i32_0 = arith.constant 0 : i32
    return %c0_i32, %arg1 : i32, i32
  }
  func.func @transform_2(%arg0: i32, %arg1: i32) -> (i32, i32) {
    %c0_i32 = arith.constant 0 : i32
    %c0_i32_0 = arith.constant 0 : i32
    return %c0_i32, %arg1 : i32, i32
  }
  func.func @transform_3(%arg0: i32, %arg1: i32) -> (i32, i32) {
    %c0_i32 = arith.constant 0 : i32
    return %arg0, %arg1 : i32, i32
  }
  func.func @transform_4(%arg0: i32, %arg1: i32) -> (i32, i32) {
    %c0_i32 = arith.constant 0 : i32
    return %arg0, %arg1 : i32, i32
  }
}

</mosaic_0001>

<bundles_post_ra>
// kernel: tpu_custom_call.1
= control target key start
LH: loop header
LB: loop body
LE: loop exit
PB: predicated region body
PF: predicated region fallthrough
CT: control target
= control target key end

     0   :  { %6 = vsyncpa [#allocation3], 0  ;;  %s124_s0 = inlined_call_operand.hbm [shape: f32[8,128], index: 0, kind: input, shape index: {}]   ;;  %s125_s1 = inlined_call_operand.hbm [shape: f32[8,128], index: 1, kind: output, shape index: {}]  }
   0x1   :  { %7 = vsyncpa [#allocation4], 0  ;;  %s88_s6 = smov [#allocation2]   ;;  %s40_s10 = scalar_lea.hbm %s124_s0, 128 }
   0x2   :  { %s14_s7 = sshll.u32 %s88_s6, 4  ;;  %p41_p0 = scmp.ne.s32.totalorder %s124_s0, %s40_s10  ;;  %s15_s7 = int_to_ptr.vmem [resolvable:$true] %s14_s7 }
   0x3   :  { %p44_p1 = scmp.lt.u32.totalorder %s40_s10, %s124_s0 }
   0x5   :  { %p46_p2 = pnand %p44_p1, %p41_p0 }
   0x7   :  { %49 = shalt.err (!%p46_p2)
}
   0x8   :  { %s50_s15 = scalar_lea.vmem %s15_s7, 128  ;;  %p55_p4 = scmp.lt.s32.totalorder %s15_s7, %s15_s7 }
   0x9   :  { %p51_p3 = scmp.ne.s32.totalorder %s15_s7, %s50_s15  ;;  %p56_p5 = scmp.lt.s32.totalorder %s50_s15, %s50_s15 }
   0xb   :  { %p57_p6 = por %p56_p5, %p55_p4 }
   0xd   :  { %p58_p7 = pnand %p57_p6, %p51_p3 }
   0xf   :  { %61 = shalt.err (!%p58_p7)
}
  0x10   :  { %17 = dma.hbm_to_vmem [thread:$0]  %s124_s0, 128, %s15_s7, [#allocation3]  }
  0x11   :  { %84 = dma.done.wait [#allocation3], 128  }
  0x12   :  { %85 = vsyncadd [#allocation3], 4294967168  ;;  %s89_s18 = smov [#allocation5]   ;;  %v21_v0 = vld [vmem:[#allocation2] sm:$0xff] }
  0x13   :  { %s29_s19 = sshll.u32 %s89_s18, 4  ;;  %22 = vst [vmem:[#allocation5] sm:$0xff] %v21_v0  ;;  %s30_s19 = int_to_ptr.vmem [resolvable:$true] %s29_s19 }
  0x14   :  { %s62_s20 = scalar_lea.vmem %s30_s19, 128  ;;  %p67_p9 = scmp.lt.s32.totalorder %s30_s19, %s30_s19 }
  0x15   :  { %p63_p8 = scmp.ne.s32.totalorder %s30_s19, %s62_s20  ;;  %p68_p10 = scmp.lt.s32.totalorder %s62_s20, %s62_s20 }
  0x17   :  { %p69_p11 = por %p68_p10, %p67_p9 }
  0x19   :  { %p70_p12 = pnand %p69_p11, %p63_p8 }
  0x1b   :  { %73 = shalt.err (!%p70_p12)
}
  0x1c   :  { %s74_s23 = scalar_lea.hbm %s125_s1, 128 }
  0x1d   :  { %p75_p13 = scmp.ne.s32.totalorder %s125_s1, %s74_s23  ;;  %p78_p0 = scmp.lt.u32.totalorder %s74_s23, %s125_s1 }
  0x1f   :  { %p80_p1 = pnand %p78_p0, %p75_p13 }
  0x21   :  { %83 = shalt.err (!%p80_p1)
}
  0x22   :  { %32 = dma.vmem_to_hbm [thread:$0]  %s30_s19, 128, %s125_s1, [#allocation4]  }
  0x23   :  { %86 = dma.done.wait [#allocation4], 128  }
  0x24   :  { %87 = vsyncadd [#allocation4], 4294967168 }
  0x25   :  { %36 = vsyncpa [#allocation3], 1 }
  0x26   :  { %37 = vsyncpa [#allocation4], 1 }

// kernel: transformer_forward.12
= control target key start
LH: loop header
LB: loop body
LE: loop exit
PB: predicated region body
PF: predicated region fallthrough
CT: control target
= control target key end

     0   :  { %vm113_vm0 = vcmask 523264   ;;  %s566_s1 = inlined_call_operand.vmem [shape: bf16[64,64], index: 1, kind: input, shape index: {}]   ;;  %s567_s0 = inlined_call_operand.vmem [shape: bf16[128,64], index: 0, kind: input, shape index: {}]   ;;  %s568_s2 = inlined_call_operand.vmem [shape: f32[1,64], index: 2, kind: input, shape index: {}]   ;;  %s569_s3 = inlined_call_operand.vmem [shape: f32[128,64], index: 3, kind: input, shape index: {}]   ;;  %s570_s4 = inlined_call_operand.vmem [shape: f32[128,64], index: 4, kind: output, shape index: {}]  }
   0x1   :  { %v352_v0 = vld [vmem:[%s566_s1] sm:$0xff]   ;;  %v353_v1 = vld [vmem:[%s566_s1 + $0x8] sm:$0xff]   ;;  %v354_v2 = vld [vmem:[%s566_s1 + $0x10] sm:$0xff]  }
   0x2   :  { %320 = vmatprep.subr.bf16.mxu0 %v352_v0  ;;  %344 = vmatprep.subr.bf16.mxu1 %v352_v0  ;;  %v356_v3 = vld [vmem:[%s567_s0] sm:$0xff]   ;;  %v355_v5 = vld [vmem:[%s566_s1 + $0x18] sm:$0xff]   ;;  %v358_v6 = vld [vmem:[%s567_s0 + $0x8] sm:$0xff]  }
   0x3   :  { %321 = vmatpush3.bf16.msra.mxu0 %v352_v0  ;;  %348 = vmatpush3.bf16.msra.mxu1 %v352_v0  ;;  %v357_v4 = vld [vmem:[%s567_s0 + $0x20] sm:$0xff]   ;;  %v359_v7 = vld [vmem:[%s567_s0 + $0x28] sm:$0xff]   ;;  %v360_v8 = vld [vmem:[%s567_s0 + $0x10] sm:$0xff]  }
   0x4   :  { %322 = vmatprep.subr.bf16.mxu0 %v353_v1  ;;  %345 = vmatprep.subr.bf16.mxu1 %v353_v1  ;;  %v361_v9 = vld [vmem:[%s567_s0 + $0x30] sm:$0xff]   ;;  %v362_v10 = vld [vmem:[%s567_s0 + $0x18] sm:$0xff]   ;;  %v436_v12 = vld [vmem:[%s568_s2] ss:$0 sm:$0xff] }
   0x5   :  { %328 = vmatprep.mubr.msk.bf16.mxu0 %vm113_vm0, %v356_v3  ;;  %336 = vmatprep.mubr.msk.bf16.mxu1 %vm113_vm0, %v357_v4  ;;  %v363_v11 = vld [vmem:[%s567_s0 + $0x38] sm:$0xff]   ;;  %v237_v14 = vld [vmem:[%s569_s3 + $0x10] sm:$0xff]  ;;  %v235_v20 = vld [vmem:[%s569_s3] sm:$0xff] }
   0x6   :  { %v245_v16 = vld [vmem:[%s569_s3 + $0x50] sm:$0xff]  ;;  %v243_v22 = vld [vmem:[%s569_s3 + $0x40] sm:$0xff]  ;;  %v238_v26 = vld [vmem:[%s569_s3 + $0x18] sm:$0xff] }
   0x7   :  { %323 = vmatpush3.bf16.msra.mxu0 %v353_v1  ;;  %349 = vmatpush3.bf16.msra.mxu1 %v353_v1  ;;  %v246_v28 = vld [vmem:[%s569_s3 + $0x58] sm:$0xff]  ;;  %v236_v34 = vld [vmem:[%s569_s3 + $0x8] sm:$0xff]  ;;  %v241_v46 = vld [vmem:[%s569_s3 + $0x30] sm:$0xff] }
   0x8   :  { %324 = vmatprep.subr.bf16.mxu0 %v354_v2  ;;  %346 = vmatprep.subr.bf16.mxu1 %v354_v2  ;;  %v244_v36 = vld [vmem:[%s569_s3 + $0x48] sm:$0xff]  ;;  %v249_v48 = vld [vmem:[%s569_s3 + $0x70] sm:$0xff]  ;;  %v239_v52 = vld [vmem:[%s569_s3 + $0x20] sm:$0xff] }
   0x9   :  { %v247_v54 = vld [vmem:[%s569_s3 + $0x60] sm:$0xff]  ;;  %v242_v58 = vld [vmem:[%s569_s3 + $0x38] sm:$0xff]  ;;  %v248_v4 = vld [vmem:[%s569_s3 + $0x68] sm:$0xff] }
   0xa   :  { %v250_v60 = vld [vmem:[%s569_s3 + $0x78] sm:$0xff] }
   0xb   :  { %325 = vmatpush3.bf16.msra.mxu0 %v354_v2  ;;  %350 = vmatpush3.bf16.msra.mxu1 %v354_v2  ;;  %v240_v2 = vld [vmem:[%s569_s3 + $0x28] sm:$0xff] }
   0xc   :  { %326 = vmatprep.subr.bf16.mxu0 %v355_v5  ;;  %347 = vmatprep.subr.bf16.mxu1 %v355_v5 }
   0xf   :  { %327 = vmatpush3.bf16.msra.mxu0 %v355_v5  ;;  %351 = vmatpush3.bf16.msra.mxu1 %v355_v5 }
  0x12   :  { %329 = vmatmul.mubr.msk.bf16.vlgmr.msra.gmra.mrb[0].mxu0 %vm113_vm0, %v358_v6  ;;  %337 = vmatmul.mubr.msk.bf16.vlgmr.msra.gmra.mrb[0].mxu1 %vm113_vm0, %v359_v7 }
  0x13   :  { %332 = vmatprep.mubr.msk.bf16.mxu0 %vm113_vm0, %v360_v8  ;;  %340 = vmatprep.mubr.msk.bf16.mxu1 %vm113_vm0, %v361_v9 }
  0x1a   :  { %333 = vmatmul.mubr.msk.bf16.gmra.mrb[4].mxu0 %vm113_vm0, %v362_v10  ;;  %341 = vmatmul.mubr.msk.bf16.gmra.mrb[4].mxu1 %vm113_vm0, %v363_v11 }
  0xe5   :  { %v330_v13 = vpop.f32.mrb[0].mxu0  ;;  %v338_v15 = vpop.f32.mrb[0].mxu1 }
  0xe6   :  { %v181_v17 = vadd.f32 %v330_v13, %v436_v12  ;;  %v213_v18 = vadd.f32 %v338_v15, %v436_v12  ;;  %v172_v19 = vpop.f32.mrb[1].mxu0  ;;  %v204_v21 = vpop.f32.mrb[1].mxu1 }
  0xe7   :  { %v173_v23 = vadd.f32 %v436_v12, %v172_v19  ;;  %v205_v24 = vadd.f32 %v436_v12, %v204_v21  ;;  %v331_v25 = vpop.f32.mrb[2].mxu0  ;;  %v339_v27 = vpop.f32.mrb[2].mxu1 }
  0xe8   :  { %v253_v29 = vadd.f32 %v237_v14, %v181_v17  ;;  %v261_v30 = vadd.f32 %v245_v16, %v213_v18  ;;  %v184_v31 = vadd.f32 %v331_v25, %v436_v12  ;;  %v216_v32 = vadd.f32 %v339_v27, %v436_v12  ;;  %v175_v33 = vpop.f32.mrb[3].mxu0  ;;  %v207_v35 = vpop.f32.mrb[3].mxu1 }
  0xe9   :  { %v251_v37 = vadd.f32 %v235_v20, %v173_v23  ;;  %v259_v38 = vadd.f32 %v243_v22, %v205_v24  ;;  %v176_v39 = vadd.f32 %v436_v12, %v175_v33  ;;  %v208_v40 = vadd.f32 %v436_v12, %v207_v35 }
  0xea   :  { %269 = vst.msk [vmem:[%s570_s4 + $0x10] sm:$0xff] %vm113_vm0, %v253_v29  ;;  %277 = vst.msk [vmem:[%s570_s4 + $0x50] sm:$0xff] %vm113_vm0, %v261_v30  ;;  %v254_v41 = vadd.f32 %v238_v26, %v184_v31  ;;  %v262_v42 = vadd.f32 %v246_v28, %v216_v32 }
  0xeb   :  { %267 = vst.msk [vmem:[%s570_s4] sm:$0xff] %vm113_vm0, %v251_v37  ;;  %275 = vst.msk [vmem:[%s570_s4 + $0x40] sm:$0xff] %vm113_vm0, %v259_v38  ;;  %v252_v43 = vadd.f32 %v236_v34, %v176_v39  ;;  %v260_v44 = vadd.f32 %v244_v36, %v208_v40 }
  0xec   :  { %270 = vst.msk [vmem:[%s570_s4 + $0x18] sm:$0xff] %vm113_vm0, %v254_v41  ;;  %278 = vst.msk [vmem:[%s570_s4 + $0x58] sm:$0xff] %vm113_vm0, %v262_v42 }
  0xed   :  { %268 = vst.msk [vmem:[%s570_s4 + $0x8] sm:$0xff] %vm113_vm0, %v252_v43  ;;  %276 = vst.msk [vmem:[%s570_s4 + $0x48] sm:$0xff] %vm113_vm0, %v260_v44  ;;  %v334_v45 = vpop.f32.mrb[4].mxu0  ;;  %v342_v47 = vpop.f32.mrb[4].mxu1 }
  0xee   :  { %v197_v49 = vadd.f32 %v334_v45, %v436_v12  ;;  %v229_v50 = vadd.f32 %v342_v47, %v436_v12  ;;  %v188_v51 = vpop.f32.mrb[5].mxu0  ;;  %v220_v53 = vpop.f32.mrb[5].mxu1 }
  0xef   :  { %v189_v55 = vadd.f32 %v436_v12, %v188_v51  ;;  %v221_v56 = vadd.f32 %v436_v12, %v220_v53  ;;  %v335_v57 = vpop.f32.mrb[6].mxu0  ;;  %v343_v59 = vpop.f32.mrb[6].mxu1 }
  0xf0   :  { %v257_v61 = vadd.f32 %v241_v46, %v197_v49  ;;  %v265_v62 = vadd.f32 %v249_v48, %v229_v50  ;;  %v200_v63 = vadd.f32 %v335_v57, %v436_v12  ;;  %v232_v0 = vadd.f32 %v343_v59, %v436_v12  ;;  %v191_v1 = vpop.f32.mrb[7].mxu0  ;;  %v223_v3 = vpop.f32.mrb[7].mxu1 }
  0xf1   :  { %v255_v5 = vadd.f32 %v239_v52, %v189_v55  ;;  %v263_v6 = vadd.f32 %v247_v54, %v221_v56  ;;  %v192_v7 = vadd.f32 %v436_v12, %v191_v1  ;;  %v224_v8 = vadd.f32 %v436_v12, %v223_v3 }
  0xf2   :  { %273 = vst.msk [vmem:[%s570_s4 + $0x30] sm:$0xff] %vm113_vm0, %v257_v61  ;;  %281 = vst.msk [vmem:[%s570_s4 + $0x70] sm:$0xff] %vm113_vm0, %v265_v62  ;;  %v258_v9 = vadd.f32 %v242_v58, %v200_v63  ;;  %v266_v10 = vadd.f32 %v250_v60, %v232_v0 }
  0xf3   :  { %271 = vst.msk [vmem:[%s570_s4 + $0x20] sm:$0xff] %vm113_vm0, %v255_v5  ;;  %279 = vst.msk [vmem:[%s570_s4 + $0x60] sm:$0xff] %vm113_vm0, %v263_v6  ;;  %v256_v11 = vadd.f32 %v240_v2, %v192_v7  ;;  %v264_v12 = vadd.f32 %v248_v4, %v224_v8 }
  0xf4   :  { %274 = vst.msk [vmem:[%s570_s4 + $0x38] sm:$0xff] %vm113_vm0, %v258_v9  ;;  %282 = vst.msk [vmem:[%s570_s4 + $0x78] sm:$0xff] %vm113_vm0, %v266_v10 }
  0xf5   :  { %272 = vst.msk [vmem:[%s570_s4 + $0x28] sm:$0xff] %vm113_vm0, %v256_v11  ;;  %280 = vst.msk [vmem:[%s570_s4 + $0x68] sm:$0xff] %vm113_vm0, %v264_v12 }

// kernel: transformer_forward.10
= control target key start
LH: loop header
LB: loop body
LE: loop exit
PB: predicated region body
PF: predicated region fallthrough
CT: control target
= control target key end

     0   :  { %vm34_vm0 = vcmask 523264   ;;  %vm579_vm1 = vcmask 1043456   ;;  %vm580_vm2 = vcmask 523268   ;;  %s1097_s0 = inlined_call_operand.vmem [shape: f32[128,64], index: 0, kind: input, shape index: {}]   ;;  %s1098_s3 = inlined_call_operand.vmem [shape: bf16[64,192], index: 3, kind: input, shape index: {}]   ;;  %s1099_s1 = inlined_call_operand.vmem [shape: f32[1,64], index: 1, kind: input, shape index: {}]   ;;  %s1100_s2 = inlined_call_operand.vmem [shape: f32[1,64], index: 2, kind: input, shape index: {}]   ;;  %s1101_s4 = inlined_call_operand.vmem [shape: bf16[128,192], index: 4, kind: output, shape index: {}]  }
   0x1   :  { %v18_v0 = vld [vmem:[%s1097_s0] sm:$0xff]  ;;  %v19_v2 = vld [vmem:[%s1097_s0 + $0x8] sm:$0xff]  ;;  %v20_v8 = vld [vmem:[%s1097_s0 + $0x10] sm:$0xff] }
   0x2   :  { %v26_v1 = vld [vmem:[%s1097_s0 + $0x40] sm:$0xff]  ;;  %v35_v3 = vsel %vm34_vm0, %v18_v0, 0.0  ;;  %v27_v5 = vld [vmem:[%s1097_s0 + $0x48] sm:$0xff]  ;;  %v38_v6 = vsel %vm34_vm0, %v19_v2, 0.0  ;;  %v21_v9 = vld [vmem:[%s1097_s0 + $0x18] sm:$0xff]  ;;  %v41_v10 = vsel %vm34_vm0, %v20_v8, 0.0 }
   0x3   :  { %v59_v4 = vsel %vm34_vm0, %v26_v1, 0.0  ;;  %36 = vadd.xlane.f32.xlu0 %v35_v3  ;;  %v62_v7 = vsel %vm34_vm0, %v27_v5, 0.0  ;;  %v44_v11 = vsel %vm34_vm0, %v21_v9, 0.0  ;;  %v758_v12 = vld [vmem:[%s1097_s0 + $0x50] sm:$0xff]  ;;  %v763_v13 = vld [vmem:[%s1097_s0 + $0x58] sm:$0xff]  ;;  %v772_v16 = vld [vmem:[%s1097_s0 + $0x20] sm:$0xff] }
   0x4   :  { %60 = vadd.xlane.f32.xlu1 %v59_v4  ;;  %v65_v14 = vsel %vm34_vm0, %v758_v12, 0.0  ;;  %v68_v15 = vsel %vm34_vm0, %v763_v13, 0.0  ;;  %v777_v17 = vld [vmem:[%s1097_s0 + $0x28] sm:$0xff]  ;;  %v47_v18 = vsel %vm34_vm0, %v772_v16, 0.0  ;;  %v786_v20 = vld [vmem:[%s1097_s0 + $0x60] sm:$0xff]  ;;  %v800_v24 = vld [vmem:[%s1097_s0 + $0x30] sm:$0xff] }
   0x5   :  { %v50_v19 = vsel %vm34_vm0, %v777_v17, 0.0  ;;  %v791_v21 = vld [vmem:[%s1097_s0 + $0x68] sm:$0xff]  ;;  %v71_v22 = vsel %vm34_vm0, %v786_v20, 0.0  ;;  %v805_v25 = vld [vmem:[%s1097_s0 + $0x38] sm:$0xff]  ;;  %v53_v26 = vsel %vm34_vm0, %v800_v24, 0.0  ;;  %v814_v28 = vld [vmem:[%s1097_s0 + $0x70] sm:$0xff] }
   0x6   :  { %v74_v23 = vsel %vm34_vm0, %v791_v21, 0.0  ;;  %v56_v27 = vsel %vm34_vm0, %v805_v25, 0.0  ;;  %v819_v29 = vld [vmem:[%s1097_s0 + $0x78] sm:$0xff]  ;;  %v77_v30 = vsel %vm34_vm0, %v814_v28, 0.0  ;;  %vm1013_vm3 = vmor %vm580_vm2, %vm579_vm1 }
   0x7   :  { %39 = vadd.xlane.f32.xlu0 %v38_v6  ;;  %v80_v31 = vsel %vm34_vm0, %v819_v29, 0.0 }
   0x8   :  { %63 = vadd.xlane.f32.xlu1 %v62_v7 }
   0xb   :  { %42 = vadd.xlane.f32.xlu0 %v41_v10 }
   0xc   :  { %45 = vadd.xlane.f32.xlu1 %v44_v11 }
   0xf   :  { %66 = vadd.xlane.f32.xlu0 %v65_v14 }
  0x10   :  { %69 = vadd.xlane.f32.xlu1 %v68_v15 }
  0x13   :  { %48 = vadd.xlane.f32.xlu0 %v47_v18 }
  0x14   :  { %51 = vadd.xlane.f32.xlu1 %v50_v19 }
  0x17   :  { %72 = vadd.xlane.f32.xlu0 %v71_v22 }
  0x18   :  { %75 = vadd.xlane.f32.xlu1 %v74_v23 }
  0x1b   :  { %54 = vadd.xlane.f32.xlu0 %v53_v26 }
  0x1c   :  { %57 = vadd.xlane.f32.xlu1 %v56_v27 }
  0x1f   :  { %78 = vadd.xlane.f32.xlu0 %v77_v30 }
  0x20   :  { %81 = vadd.xlane.f32.xlu1 %v80_v31 }
  0x90   :  { %v37_v32 = vpop.xlane.xlu0 %36 }
  0x91   :  { %v61_v33 = vpop.xlane.xlu1 %60  ;;  %v84_v34 = vmul.f32 0.015625, %v37_v32 }
  0x92   :  { %v92_v35 = vmul.f32 0.015625, %v61_v33 }
  0x93   :  { %v825_v36 = vsub.f32 %v18_v0, %v84_v34 }
  0x94   :  { %v827_v37 = vsub.f32 %v26_v1, %v92_v35  ;;  %v40_v38 = vpop.xlane.xlu0 %39 }
  0x95   :  { %v64_v39 = vpop.xlane.xlu1 %63  ;;  %v85_v40 = vmul.f32 0.015625, %v40_v38  ;;  %v116_v42 = vmul.f32 %v825_v36, %v825_v36 }
  0x96   :  { %v93_v41 = vmul.f32 0.015625, %v64_v39  ;;  %v124_v43 = vmul.f32 %v827_v37, %v827_v37 }
  0x97   :  { %v833_v44 = vsub.f32 %v19_v2, %v85_v40  ;;  %v132_v46 = vsel %vm34_vm0, %v116_v42, 0.0 }
  0x98   :  { %v835_v45 = vsub.f32 %v27_v5, %v93_v41  ;;  %133 = vadd.xlane.f32.xlu0 %v132_v46  ;;  %v43_v47 = vpop.xlane.xlu0 %42  ;;  %v156_v49 = vsel %vm34_vm0, %v124_v43, 0.0 }
  0x99   :  { %v46_v48 = vpop.xlane.xlu1 %45  ;;  %v86_v50 = vmul.f32 0.015625, %v43_v47  ;;  %v117_v52 = vmul.f32 %v833_v44, %v833_v44 }
  0x9a   :  { %v87_v51 = vmul.f32 0.015625, %v46_v48  ;;  %v125_v53 = vmul.f32 %v835_v45, %v835_v45 }
  0x9b   :  { %v843_v54 = vsub.f32 %v20_v8, %v86_v50  ;;  %v135_v56 = vsel %vm34_vm0, %v117_v52, 0.0 }
  0x9c   :  { %v845_v55 = vsub.f32 %v21_v9, %v87_v51  ;;  %157 = vadd.xlane.f32.xlu0 %v156_v49  ;;  %136 = vadd.xlane.f32.xlu1 %v135_v56  ;;  %v67_v57 = vpop.xlane.xlu0 %66  ;;  %v159_v59 = vsel %vm34_vm0, %v125_v53, 0.0  ;;  %v661_v49 = vld [vmem:[%s1098_s3 + $0x4] ss:$8 sps:$4 sm:$0xff]   ;;  %v664_v53 = vld [vmem:[%s1098_s3 + $0x14] ss:$8 sps:$4 sm:$0xff]  }
  0x9d   :  { %v70_v58 = vpop.xlane.xlu1 %69  ;;  %v94_v60 = vmul.f32 0.015625, %v67_v57  ;;  %v118_v62 = vmul.f32 %v843_v54, %v843_v54  ;;  %370 = vmatprep.subr.bf16.mxu0 %v661_v49  ;;  %652 = vmatprep.subr.bf16.mxu1 %v661_v49  ;;  %v666_v57 = vld [vmem:[%s1098_s3 + $0x10] ss:$8 sps:$4 sm:$0xff]  }
  0x9e   :  { %v95_v61 = vmul.f32 0.015625, %v70_v58  ;;  %v119_v63 = vmul.f32 %v845_v55, %v845_v55  ;;  %v667_v58 = vld [vmem:[%s1098_s3 + $0x24] ss:$8 sps:$4 sm:$0xff]  }
  0x9f   :  { %v854_v0 = vsub.f32 %v758_v12, %v94_v60  ;;  %v138_v2 = vsel %vm34_vm0, %v118_v62, 0.0  ;;  %v670_v60 = vld [vmem:[%s1098_s3 + $0x34] ss:$8 sps:$4 sm:$0xff]   ;;  %v705_v62 = vmov 0  }
  0xa0   :  { %v857_v1 = vsub.f32 %v763_v13, %v95_v61  ;;  %160 = vadd.xlane.f32.xlu1 %v159_v59  ;;  %139 = vadd.xlane.f32.xlu0 %v138_v2  ;;  %v49_v3 = vpop.xlane.xlu0 %48  ;;  %v141_v5 = vsel %vm34_vm0, %v119_v63, 0.0  ;;  %v669_v59 = vld [vmem:[%s1098_s3 + $0x20] ss:$8 sps:$4 sm:$0xff]   ;;  %v672_v61 = vld [vmem:[%s1098_s3 + $0x30] ss:$8 sps:$4 sm:$0xff]  }
  0xa1   :  { %v52_v4 = vpop.xlane.xlu1 %51  ;;  %v88_v6 = vmul.f32 0.015625, %v49_v3  ;;  %v126_v8 = vmul.f32 %v854_v0, %v854_v0  ;;  %402 = vmatprep.mubr.bf16.mxu0 %v705_v62  ;;  %442 = vmatprep.mubr.bf16.mxu1 %v705_v62 }
  0xa2   :  { %v89_v7 = vmul.f32 0.015625, %v52_v4  ;;  %v127_v9 = vmul.f32 %v857_v1, %v857_v1 }
  0xa3   :  { %v866_v10 = vsub.f32 %v772_v16, %v88_v6  ;;  %v162_v12 = vsel %vm34_vm0, %v126_v8, 0.0 }
  0xa4   :  { %v869_v11 = vsub.f32 %v777_v17, %v89_v7  ;;  %142 = vadd.xlane.f32.xlu1 %v141_v5  ;;  %163 = vadd.xlane.f32.xlu0 %v162_v12  ;;  %v73_v13 = vpop.xlane.xlu0 %72  ;;  %v165_v15 = vsel %vm34_vm0, %v127_v9, 0.0 }
  0xa5   :  { %v76_v14 = vpop.xlane.xlu1 %75  ;;  %v96_v18 = vmul.f32 0.015625, %v73_v13  ;;  %v120_v22 = vmul.f32 %v866_v10, %v866_v10 }
  0xa6   :  { %v97_v19 = vmul.f32 0.015625, %v76_v14  ;;  %v121_v16 = vmul.f32 %v869_v11, %v869_v11 }
  0xa7   :  { %v878_v23 = vsub.f32 %v786_v20, %v96_v18  ;;  %v144_v26 = vsel %vm34_vm0, %v120_v22, 0.0 }
  0xa8   :  { %v881_v17 = vsub.f32 %v791_v21, %v97_v19  ;;  %166 = vadd.xlane.f32.xlu1 %v165_v15  ;;  %145 = vadd.xlane.f32.xlu0 %v144_v26  ;;  %v55_v27 = vpop.xlane.xlu0 %54  ;;  %v147_v31 = vsel %vm34_vm0, %v121_v16, 0.0 }
  0xa9   :  { %v58_v30 = vpop.xlane.xlu1 %57  ;;  %v90_v32 = vmul.f32 0.015625, %v55_v27  ;;  %v128_v34 = vmul.f32 %v878_v23, %v878_v23 }
  0xaa   :  { %v91_v33 = vmul.f32 0.015625, %v58_v30  ;;  %v129_v20 = vmul.f32 %v881_v17, %v881_v17 }
  0xab   :  { %v890_v35 = vsub.f32 %v800_v24, %v90_v32  ;;  %v168_v38 = vsel %vm34_vm0, %v128_v34, 0.0 }
  0xac   :  { %v893_v21 = vsub.f32 %v805_v25, %v91_v33  ;;  %148 = vadd.xlane.f32.xlu1 %v147_v31  ;;  %169 = vadd.xlane.f32.xlu0 %v168_v38  ;;  %v79_v39 = vpop.xlane.xlu0 %78  ;;  %v171_v41 = vsel %vm34_vm0, %v129_v20, 0.0 }
  0xad   :  { %v82_v40 = vpop.xlane.xlu1 %81  ;;  %v98_v42 = vmul.f32 0.015625, %v79_v39  ;;  %v122_v46 = vmul.f32 %v890_v35, %v890_v35 }
  0xae   :  { %v99_v43 = vmul.f32 0.015625, %v82_v40  ;;  %v123_v24 = vmul.f32 %v893_v21, %v893_v21  ;;  %v945_v40 = vld [vmem:[%s1099_s1] ss:$0 sm:$0xff] }
  0xaf   :  { %v902_v47 = vsub.f32 %v814_v28, %v98_v42  ;;  %v150_v48 = vsel %vm34_vm0, %v122_v46, 0.0 }
  0xb0   :  { %v905_v25 = vsub.f32 %v819_v29, %v99_v43  ;;  %172 = vadd.xlane.f32.xlu1 %v171_v41  ;;  %151 = vadd.xlane.f32.xlu0 %v150_v48  ;;  %v153_v50 = vsel %vm34_vm0, %v123_v24, 0.0  ;;  %v663_v29 = vld [vmem:[%s1098_s3] ss:$8 sps:$4 sm:$0xff]  }
  0xb1   :  { %v130_v51 = vmul.f32 %v902_v47, %v902_v47  ;;  %371 = vmatpush1.bf16.msra.mxu0 %v663_v29  ;;  %656 = vmatpush1.bf16.msra.mxu1 %v663_v29  ;;  %v953_v29 = vld [vmem:[%s1100_s2] ss:$0 sm:$0xff] }
  0xb2   :  { %v131_v28 = vmul.f32 %v905_v25, %v905_v25  ;;  %372 = vmatprep.subr.bf16.mxu0 %v664_v53  ;;  %653 = vmatprep.subr.bf16.mxu1 %v664_v53 }
  0xb3   :  { %v174_v52 = vsel %vm34_vm0, %v130_v51, 0.0 }
  0xb4   :  { %154 = vadd.xlane.f32.xlu1 %v153_v50  ;;  %175 = vadd.xlane.f32.xlu0 %v174_v52  ;;  %v177_v56 = vsel %vm34_vm0, %v131_v28, 0.0 }
  0xb5   :  { %373 = vmatpush1.bf16.msra.mxu0 %v666_v57  ;;  %657 = vmatpush1.bf16.msra.mxu1 %v666_v57 }
  0xb6   :  { %374 = vmatprep.subr.bf16.mxu0 %v667_v58  ;;  %654 = vmatprep.subr.bf16.mxu1 %v667_v58 }
  0xb8   :  { %178 = vadd.xlane.f32.xlu1 %v177_v56 }
  0xb9   :  { %375 = vmatpush1.bf16.msra.mxu0 %v669_v59  ;;  %658 = vmatpush1.bf16.msra.mxu1 %v669_v59 }
  0xba   :  { %376 = vmatprep.subr.bf16.mxu0 %v670_v60  ;;  %655 = vmatprep.subr.bf16.mxu1 %v670_v60 }
  0xbd   :  { %377 = vmatpush1.bf16.msra.mxu0 %v672_v61  ;;  %659 = vmatpush1.bf16.msra.mxu1 %v672_v61 }
 0x125   :  { %v134_v63 = vpop.xlane.xlu0 %133 }
 0x126   :  { %v180_v2 = vmul.f32 0.015625, %v134_v63 }
 0x128   :  { %v196_v3 = vadd.f32 1e-05, %v180_v2 }
 0x129   :  { %v137_v4 = vpop.xlane.xlu1 %136  ;;  %v158_v5 = vpop.xlane.xlu0 %157 }
 0x12a   :  { %673 = vrsqrt.f32 %v196_v3  ;;  %v181_v6 = vmul.f32 0.015625, %v137_v4  ;;  %v188_v7 = vmul.f32 0.015625, %v158_v5 }
 0x12c   :  { %v197_v8 = vadd.f32 1e-05, %v181_v6  ;;  %v204_v9 = vadd.f32 1e-05, %v188_v7 }
 0x12d   :  { %v161_v12 = vpop.xlane.xlu1 %160  ;;  %v140_v13 = vpop.xlane.xlu0 %139 }
 0x12e   :  { %675 = vrsqrt.f32 %v197_v8  ;;  %v189_v14 = vmul.f32 0.015625, %v161_v12  ;;  %v182_v15 = vmul.f32 0.015625, %v140_v13 }
 0x12f   :  { %677 = vrsqrt.f32 %v204_v9 }
 0x130   :  { %v205_v18 = vadd.f32 1e-05, %v189_v14  ;;  %v198_v19 = vadd.f32 1e-05, %v182_v15 }
 0x131   :  { %v143_v22 = vpop.xlane.xlu1 %142  ;;  %v164_v16 = vpop.xlane.xlu0 %163 }
 0x132   :  { %679 = vrsqrt.f32 %v205_v18  ;;  %v183_v26 = vmul.f32 0.015625, %v143_v22  ;;  %v190_v27 = vmul.f32 0.015625, %v164_v16 }
 0x133   :  { %681 = vrsqrt.f32 %v198_v19 }
 0x134   :  { %v674_v30 = vpop.eup %673  ;;  %v199_v31 = vadd.f32 1e-05, %v183_v26  ;;  %v206_v32 = vadd.f32 1e-05, %v190_v27 }
 0x135   :  { %v228_v33 = vmul.f32 %v674_v30, %v825_v36  ;;  %v167_v34 = vpop.xlane.xlu1 %166  ;;  %v146_v20 = vpop.xlane.xlu0 %145 }
 0x136   :  { %683 = vrsqrt.f32 %v199_v31  ;;  %v191_v38 = vmul.f32 0.015625, %v167_v34  ;;  %v184_v39 = vmul.f32 0.015625, %v146_v20 }
 0x137   :  { %685 = vrsqrt.f32 %v206_v32  ;;  %v251_v36 = vmul.f32 %v945_v40, %v228_v33 }
 0x138   :  { %v676_v41 = vpop.eup %675  ;;  %v207_v42 = vadd.f32 1e-05, %v191_v38  ;;  %v200_v43 = vadd.f32 1e-05, %v184_v39 }
 0x139   :  { %v678_v46 = vpop.eup %677  ;;  %v229_v24 = vmul.f32 %v676_v41, %v833_v44  ;;  %v149_v48 = vpop.xlane.xlu1 %148 }
 0x13a   :  { %v170_v49 = vpop.xlane.xlu0 %169  ;;  %v236_v50 = vmul.f32 %v678_v46, %v827_v37  ;;  %687 = vrsqrt.f32 %v207_v42  ;;  %v185_v51 = vmul.f32 0.015625, %v149_v48  ;;  %v274_v37 = vadd.f32 %v953_v29, %v251_v36 }
 0x13b   :  { %v192_v28 = vmul.f32 0.015625, %v170_v49  ;;  %689 = vrsqrt.f32 %v200_v43  ;;  %v252_v52 = vmul.f32 %v945_v40, %v229_v24 }
 0x13c   :  { %v680_v53 = vpop.eup %679  ;;  %v201_v56 = vadd.f32 1e-05, %v185_v51  ;;  %v259_v63 = vmul.f32 %v945_v40, %v236_v50 }
 0x13d   :  { %v208_v44 = vadd.f32 1e-05, %v192_v28  ;;  %v682_v57 = vpop.eup %681  ;;  %v237_v58 = vmul.f32 %v680_v53, %v835_v45  ;;  %v173_v59 = vpop.xlane.xlu1 %172  ;;  %v275_v61 = vadd.f32 %v953_v29, %v252_v52 }
 0x13e   :  { %v152_v60 = vpop.xlane.xlu0 %151  ;;  %v230_v2 = vmul.f32 %v682_v57, %v843_v54  ;;  %691 = vrsqrt.f32 %v201_v56  ;;  %v193_v3 = vmul.f32 0.015625, %v173_v59  ;;  %v282_v15 = vadd.f32 %v953_v29, %v259_v63 }
 0x13f   :  { %v186_v4 = vmul.f32 0.015625, %v152_v60  ;;  %693 = vrsqrt.f32 %v208_v44  ;;  %v290_v5 = vpack.c.bf16 %v275_v61, %v274_v37  ;;  %v260_v6 = vmul.f32 %v945_v40, %v237_v58 }
 0x140   :  { %v684_v7 = vpop.eup %683  ;;  %v209_v8 = vadd.f32 1e-05, %v193_v3  ;;  %v253_v18 = vmul.f32 %v945_v40, %v230_v2 }
 0x141   :  { %v202_v45 = vadd.f32 1e-05, %v186_v4  ;;  %v686_v9 = vpop.eup %685  ;;  %v231_v12 = vmul.f32 %v684_v7, %v845_v55  ;;  %v155_v13 = vpop.xlane.xlu1 %154  ;;  %612 = vmatmul.mubr.msk.bf16.vlgmr.msra.gmra.mrb[0].mxu0 %vm34_vm0, %v290_v5  ;;  %v283_v54 = vadd.f32 %v953_v29, %v260_v6 }
 0x142   :  { %v176_v14 = vpop.xlane.xlu0 %175  ;;  %v238_v19 = vmul.f32 %v686_v9, %v854_v0  ;;  %695 = vrsqrt.f32 %v209_v8  ;;  %v187_v22 = vmul.f32 0.015625, %v155_v13  ;;  %412 = vmatprep.mubr.bf16.mxu0 %v705_v62  ;;  %v276_v0 = vadd.f32 %v953_v29, %v253_v18 }
 0x143   :  { %v194_v16 = vmul.f32 0.015625, %v176_v14  ;;  %697 = vrsqrt.f32 %v202_v45  ;;  %v294_v26 = vpack.c.bf16 %v283_v54, %v282_v15  ;;  %v254_v55 = vmul.f32 %v945_v40, %v231_v12 }
 0x144   :  { %v688_v27 = vpop.eup %687  ;;  %v203_v30 = vadd.f32 1e-05, %v187_v22  ;;  %v261_v38 = vmul.f32 %v945_v40, %v238_v19 }
 0x145   :  { %v210_v31 = vadd.f32 1e-05, %v194_v16  ;;  %v690_v32 = vpop.eup %689  ;;  %v239_v33 = vmul.f32 %v688_v27, %v857_v1  ;;  %v179_v34 = vpop.xlane.xlu1 %178  ;;  %616 = vmatmul.mubr.msk.bf16.vlgmr.msra.gmra.mrb[0].mxu1 %vm34_vm0, %v294_v26  ;;  %v277_v20 = vadd.f32 %v953_v29, %v254_v55 }
 0x146   :  { %v232_v39 = vmul.f32 %v690_v32, %v866_v10  ;;  %699 = vrsqrt.f32 %v203_v30  ;;  %v195_v41 = vmul.f32 0.015625, %v179_v34  ;;  %452 = vmatprep.mubr.bf16.mxu1 %v705_v62  ;;  %v284_v49 = vadd.f32 %v953_v29, %v261_v38 }
 0x147   :  { %701 = vrsqrt.f32 %v210_v31  ;;  %v291_v42 = vpack.c.bf16 %v277_v20, %v276_v0  ;;  %v262_v43 = vmul.f32 %v945_v40, %v239_v33 }
 0x148   :  { %v692_v1 = vpop.eup %691  ;;  %v211_v46 = vadd.f32 1e-05, %v195_v41  ;;  %v255_v10 = vmul.f32 %v945_v40, %v232_v39 }
 0x149   :  { %v694_v24 = vpop.eup %693  ;;  %v233_v48 = vmul.f32 %v692_v1, %v869_v11  ;;  %613 = vmatmul.mubr.msk.bf16.gmra.mrb[4].mxu0 %vm34_vm0, %v291_v42  ;;  %v285_v36 = vadd.f32 %v953_v29, %v262_v43 }
 0x14a   :  { %v240_v50 = vmul.f32 %v694_v24, %v878_v23  ;;  %703 = vrsqrt.f32 %v211_v46  ;;  %422 = vmatprep.mubr.bf16.mxu0 %v705_v62  ;;  %v278_v56 = vadd.f32 %v953_v29, %v255_v10 }
 0x14b   :  { %v295_v51 = vpack.c.bf16 %v285_v36, %v284_v49  ;;  %v256_v28 = vmul.f32 %v945_v40, %v233_v48 }
 0x14c   :  { %v696_v52 = vpop.eup %695  ;;  %v263_v57 = vmul.f32 %v945_v40, %v240_v50 }
 0x14d   :  { %v698_v53 = vpop.eup %697  ;;  %v241_v11 = vmul.f32 %v696_v52, %v881_v17  ;;  %617 = vmatmul.mubr.msk.bf16.gmra.mrb[4].mxu1 %vm34_vm0, %v295_v51  ;;  %v279_v44 = vadd.f32 %v953_v29, %v256_v28 }
 0x14e   :  { %v234_v23 = vmul.f32 %v698_v53, %v890_v35  ;;  %462 = vmatprep.mubr.bf16.mxu1 %v705_v62  ;;  %v286_v17 = vadd.f32 %v953_v29, %v263_v57 }
 0x14f   :  { %v292_v58 = vpack.c.bf16 %v279_v44, %v278_v56  ;;  %v264_v59 = vmul.f32 %v945_v40, %v241_v11 }
 0x150   :  { %v700_v60 = vpop.eup %699  ;;  %v257_v2 = vmul.f32 %v945_v40, %v234_v23 }
 0x151   :  { %v702_v37 = vpop.eup %701  ;;  %v235_v61 = vmul.f32 %v700_v60, %v893_v21  ;;  %614 = vmatmul.mubr.msk.bf16.gmra.mrb[8].mxu0 %vm34_vm0, %v292_v58  ;;  %v287_v63 = vadd.f32 %v953_v29, %v264_v59 }
 0x152   :  { %v242_v3 = vmul.f32 %v702_v37, %v902_v47  ;;  %432 = vmatprep.mubr.bf16.mxu0 %v705_v62  ;;  %v280_v21 = vadd.f32 %v953_v29, %v257_v2 }
 0x153   :  { %v296_v35 = vpack.c.bf16 %v287_v63, %v286_v17  ;;  %v258_v4 = vmul.f32 %v945_v40, %v235_v61 }
 0x154   :  { %v704_v5 = vpop.eup %703  ;;  %v265_v8 = vmul.f32 %v945_v40, %v242_v3 }
 0x155   :  { %v243_v6 = vmul.f32 %v704_v5, %v905_v25  ;;  %618 = vmatmul.mubr.msk.bf16.gmra.mrb[8].mxu1 %vm34_vm0, %v296_v35  ;;  %v281_v7 = vadd.f32 %v953_v29, %v258_v4 }
 0x156   :  { %472 = vmatprep.mubr.bf16.mxu1 %v705_v62  ;;  %v288_v9 = vadd.f32 %v953_v29, %v265_v8 }
 0x157   :  { %v293_v45 = vpack.c.bf16 %v281_v7, %v280_v21  ;;  %v266_v47 = vmul.f32 %v945_v40, %v243_v6 }
 0x159   :  { %615 = vmatmul.mubr.msk.bf16.gmra.mrb[12].mxu0 %vm34_vm0, %v293_v45  ;;  %v289_v12 = vadd.f32 %v953_v29, %v266_v47 }
 0x15b   :  { %v297_v25 = vpack.c.bf16 %v289_v12, %v288_v9 }
 0x15d   :  { %619 = vmatmul.mubr.msk.bf16.gmra.mrb[12].mxu1 %vm34_vm0, %v297_v25 }
 0x214   :  { %v404_v13 = vpop.f32.mrb[0].mxu0 }
 0x215   :  { %v406_v14 = vpop.f32.mrb[1].mxu0 }
 0x216   :  { %v636_v62 = vpack.c.bf16 %v406_v14, %v404_v13  ;;  %v408_v54 = vpop.f32.mrb[2].mxu0 }
 0x217   :  { %v410_v40 = vpop.f32.mrb[3].mxu0 }
 0x218   :  { %582 = vst.msk [vmem:[%s1101_s4] sm:$0xff] %vm1013_vm3, %v636_v62  ;;  %v637_v29 = vpack.c.bf16 %v410_v40, %v408_v54  ;;  %v444_v18 = vpop.f32.mrb[0].mxu1 }
 0x219   :  { %v446_v19 = vpop.f32.mrb[1].mxu1 }
 0x21a   :  { %583 = vst.msk [vmem:[%s1101_s4 + $0x8] sm:$0xff] %vm1013_vm3, %v637_v29  ;;  %v644_v22 = vpack.c.bf16 %v446_v19, %v444_v18  ;;  %v448_v16 = vpop.f32.mrb[2].mxu1 }
 0x21b   :  { %v450_v26 = vpop.f32.mrb[3].mxu1 }
 0x21c   :  { %590 = vst.msk [vmem:[%s1101_s4 + $0x40] sm:$0xff] %vm1013_vm3, %v644_v22  ;;  %v645_v55 = vpack.c.bf16 %v450_v26, %v448_v16  ;;  %v414_v27 = vpop.f32.mrb[4].mxu0 }
 0x21d   :  { %v416_v30 = vpop.f32.mrb[5].mxu0 }
 0x21e   :  { %591 = vst.msk [vmem:[%s1101_s4 + $0x48] sm:$0xff] %vm1013_vm3, %v645_v55  ;;  %v638_v31 = vpack.c.bf16 %v416_v30, %v414_v27  ;;  %v418_v32 = vpop.f32.mrb[6].mxu0 }
 0x21f   :  { %v420_v33 = vpop.f32.mrb[7].mxu0 }
 0x220   :  { %584 = vst.msk [vmem:[%s1101_s4 + $0x10] sm:$0xff] %vm1013_vm3, %v638_v31  ;;  %v639_v34 = vpack.c.bf16 %v420_v33, %v418_v32  ;;  %v454_v0 = vpop.f32.mrb[4].mxu1 }
 0x221   :  { %v456_v20 = vpop.f32.mrb[5].mxu1 }
 0x222   :  { %585 = vst.msk [vmem:[%s1101_s4 + $0x18] sm:$0xff] %vm1013_vm3, %v639_v34  ;;  %v646_v38 = vpack.c.bf16 %v456_v20, %v454_v0  ;;  %v458_v39 = vpop.f32.mrb[6].mxu1 }
 0x223   :  { %v460_v41 = vpop.f32.mrb[7].mxu1 }
 0x224   :  { %592 = vst.msk [vmem:[%s1101_s4 + $0x50] sm:$0xff] %vm1013_vm3, %v646_v38  ;;  %v647_v42 = vpack.c.bf16 %v460_v41, %v458_v39  ;;  %v424_v43 = vpop.f32.mrb[8].mxu0 }
 0x225   :  { %v426_v1 = vpop.f32.mrb[9].mxu0 }
 0x226   :  { %593 = vst.msk [vmem:[%s1101_s4 + $0x58] sm:$0xff] %vm1013_vm3, %v647_v42  ;;  %v640_v46 = vpack.c.bf16 %v426_v1, %v424_v43  ;;  %v428_v24 = vpop.f32.mrb[10].mxu0 }
 0x227   :  { %v430_v48 = vpop.f32.mrb[11].mxu0 }
 0x228   :  { %586 = vst.msk [vmem:[%s1101_s4 + $0x20] sm:$0xff] %vm1013_vm3, %v640_v46  ;;  %v641_v49 = vpack.c.bf16 %v430_v48, %v428_v24  ;;  %v464_v36 = vpop.f32.mrb[8].mxu1 }
 0x229   :  { %v466_v10 = vpop.f32.mrb[9].mxu1 }
 0x22a   :  { %587 = vst.msk [vmem:[%s1101_s4 + $0x28] sm:$0xff] %vm1013_vm3, %v641_v49  ;;  %v648_v50 = vpack.c.bf16 %v466_v10, %v464_v36  ;;  %v468_v51 = vpop.f32.mrb[10].mxu1 }
 0x22b   :  { %v470_v28 = vpop.f32.mrb[11].mxu1 }
 0x22c   :  { %594 = vst.msk [vmem:[%s1101_s4 + $0x60] sm:$0xff] %vm1013_vm3, %v648_v50  ;;  %v649_v52 = vpack.c.bf16 %v470_v28, %v468_v51  ;;  %v434_v53 = vpop.f32.mrb[12].mxu0 }
 0x22d   :  { %v436_v11 = vpop.f32.mrb[13].mxu0 }
 0x22e   :  { %595 = vst.msk [vmem:[%s1101_s4 + $0x68] sm:$0xff] %vm1013_vm3, %v649_v52  ;;  %v642_v56 = vpack.c.bf16 %v436_v11, %v434_v53  ;;  %v438_v44 = vpop.f32.mrb[14].mxu0 }
 0x22f   :  { %v440_v57 = vpop.f32.mrb[15].mxu0 }
 0x230   :  { %588 = vst.msk [vmem:[%s1101_s4 + $0x30] sm:$0xff] %vm1013_vm3, %v642_v56  ;;  %v643_v23 = vpack.c.bf16 %v440_v57, %v438_v44  ;;  %v474_v58 = vpop.f32.mrb[12].mxu1 }
 0x231   :  { %v476_v59 = vpop.f32.mrb[13].mxu1 }
 0x232   :  { %589 = vst.msk [vmem:[%s1101_s4 + $0x38] sm:$0xff] %vm1013_vm3, %v643_v23  ;;  %v650_v60 = vpack.c.bf16 %v476_v59, %v474_v58  ;;  %v478_v37 = vpop.f32.mrb[14].mxu1 }
 0x233   :  { %v480_v61 = vpop.f32.mrb[15].mxu1 }
 0x234   :  { %596 = vst.msk [vmem:[%s1101_s4 + $0x70] sm:$0xff] %vm1013_vm3, %v650_v60  ;;  %v651_v17 = vpack.c.bf16 %v480_v61, %v478_v37 }
 0x236   :  { %597 = vst.msk [vmem:[%s1101_s4 + $0x78] sm:$0xff] %vm1013_vm3, %v651_v17 }

// kernel: transformer_forward.13
= control target key start
LH: loop header
LB: loop body
LE: loop exit
PB: predicated region body
PF: predicated region fallthrough
CT: control target
= control target key end

     0   :  { %vm37_vm0 = vcmask 523264   ;;  %s1729_s0 = inlined_call_operand.vmem [shape: f32[128,64], index: 0, kind: input, shape index: {}]   ;;  %s1730_s3 = inlined_call_operand.vmem [shape: bf16[64,256], index: 3, kind: input, shape index: {}]   ;;  %s1731_s1 = inlined_call_operand.vmem [shape: f32[1,64], index: 1, kind: input, shape index: {}]   ;;  %s1732_s2 = inlined_call_operand.vmem [shape: f32[1,64], index: 2, kind: input, shape index: {}]   ;;  %s1733_s4 = inlined_call_operand.vmem [shape: f32[1,256], index: 4, kind: input, shape index: {}]   ;;  %s1734_s5 = inlined_call_operand.vmem [shape: bf16[128,256], index: 5, kind: output, shape index: {}]  }
   0x1   :  { %v21_v0 = vld [vmem:[%s1729_s0] sm:$0xff]  ;;  %v22_v2 = vld [vmem:[%s1729_s0 + $0x8] sm:$0xff]  ;;  %v23_v8 = vld [vmem:[%s1729_s0 + $0x10] sm:$0xff] }
   0x2   :  { %v29_v1 = vld [vmem:[%s1729_s0 + $0x40] sm:$0xff]  ;;  %v38_v3 = vsel %vm37_vm0, %v21_v0, 0.0  ;;  %v30_v5 = vld [vmem:[%s1729_s0 + $0x48] sm:$0xff]  ;;  %v41_v6 = vsel %vm37_vm0, %v22_v2, 0.0  ;;  %v24_v9 = vld [vmem:[%s1729_s0 + $0x18] sm:$0xff]  ;;  %v44_v10 = vsel %vm37_vm0, %v23_v8, 0.0 }
   0x3   :  { %v62_v4 = vsel %vm37_vm0, %v29_v1, 0.0  ;;  %39 = vadd.xlane.f32.xlu0 %v38_v3  ;;  %v65_v7 = vsel %vm37_vm0, %v30_v5, 0.0  ;;  %v47_v11 = vsel %vm37_vm0, %v24_v9, 0.0  ;;  %v1127_v12 = vld [vmem:[%s1729_s0 + $0x50] sm:$0xff]  ;;  %v1132_v13 = vld [vmem:[%s1729_s0 + $0x58] sm:$0xff]  ;;  %v1141_v16 = vld [vmem:[%s1729_s0 + $0x20] sm:$0xff] }
   0x4   :  { %63 = vadd.xlane.f32.xlu1 %v62_v4  ;;  %v68_v14 = vsel %vm37_vm0, %v1127_v12, 0.0  ;;  %v71_v15 = vsel %vm37_vm0, %v1132_v13, 0.0  ;;  %v1146_v17 = vld [vmem:[%s1729_s0 + $0x28] sm:$0xff]  ;;  %v50_v18 = vsel %vm37_vm0, %v1141_v16, 0.0  ;;  %v1155_v20 = vld [vmem:[%s1729_s0 + $0x60] sm:$0xff]  ;;  %v1169_v24 = vld [vmem:[%s1729_s0 + $0x30] sm:$0xff] }
   0x5   :  { %v53_v19 = vsel %vm37_vm0, %v1146_v17, 0.0  ;;  %v1160_v21 = vld [vmem:[%s1729_s0 + $0x68] sm:$0xff]  ;;  %v74_v22 = vsel %vm37_vm0, %v1155_v20, 0.0  ;;  %v1174_v25 = vld [vmem:[%s1729_s0 + $0x38] sm:$0xff]  ;;  %v56_v26 = vsel %vm37_vm0, %v1169_v24, 0.0  ;;  %v1183_v28 = vld [vmem:[%s1729_s0 + $0x70] sm:$0xff] }
   0x6   :  { %v77_v23 = vsel %vm37_vm0, %v1160_v21, 0.0  ;;  %v59_v27 = vsel %vm37_vm0, %v1174_v25, 0.0  ;;  %v1188_v29 = vld [vmem:[%s1729_s0 + $0x78] sm:$0xff]  ;;  %v80_v30 = vsel %vm37_vm0, %v1183_v28, 0.0 }
   0x7   :  { %42 = vadd.xlane.f32.xlu0 %v41_v6  ;;  %v83_v31 = vsel %vm37_vm0, %v1188_v29, 0.0 }
   0x8   :  { %66 = vadd.xlane.f32.xlu1 %v65_v7 }
   0xb   :  { %45 = vadd.xlane.f32.xlu0 %v44_v10 }
   0xc   :  { %48 = vadd.xlane.f32.xlu1 %v47_v11 }
   0xf   :  { %69 = vadd.xlane.f32.xlu0 %v68_v14 }
  0x10   :  { %72 = vadd.xlane.f32.xlu1 %v71_v15 }
  0x13   :  { %51 = vadd.xlane.f32.xlu0 %v50_v18 }
  0x14   :  { %54 = vadd.xlane.f32.xlu1 %v53_v19 }
  0x17   :  { %75 = vadd.xlane.f32.xlu0 %v74_v22 }
  0x18   :  { %78 = vadd.xlane.f32.xlu1 %v77_v23 }
  0x1b   :  { %57 = vadd.xlane.f32.xlu0 %v56_v26 }
  0x1c   :  { %60 = vadd.xlane.f32.xlu1 %v59_v27 }
  0x1f   :  { %81 = vadd.xlane.f32.xlu0 %v80_v30 }
  0x20   :  { %84 = vadd.xlane.f32.xlu1 %v83_v31 }
  0x90   :  { %v40_v32 = vpop.xlane.xlu0 %39 }
  0x91   :  { %v64_v33 = vpop.xlane.xlu1 %63  ;;  %v87_v34 = vmul.f32 0.015625, %v40_v32 }
  0x92   :  { %v95_v35 = vmul.f32 0.015625, %v64_v33 }
  0x93   :  { %v1194_v36 = vsub.f32 %v21_v0, %v87_v34 }
  0x94   :  { %v1196_v37 = vsub.f32 %v29_v1, %v95_v35  ;;  %v43_v38 = vpop.xlane.xlu0 %42 }
  0x95   :  { %v67_v39 = vpop.xlane.xlu1 %66  ;;  %v88_v40 = vmul.f32 0.015625, %v43_v38  ;;  %v119_v42 = vmul.f32 %v1194_v36, %v1194_v36 }
  0x96   :  { %v96_v41 = vmul.f32 0.015625, %v67_v39  ;;  %v127_v43 = vmul.f32 %v1196_v37, %v1196_v37 }
  0x97   :  { %v1202_v44 = vsub.f32 %v22_v2, %v88_v40  ;;  %v135_v46 = vsel %vm37_vm0, %v119_v42, 0.0 }
  0x98   :  { %v1204_v45 = vsub.f32 %v30_v5, %v96_v41  ;;  %136 = vadd.xlane.f32.xlu0 %v135_v46  ;;  %v46_v47 = vpop.xlane.xlu0 %45  ;;  %v159_v49 = vsel %vm37_vm0, %v127_v43, 0.0 }
  0x99   :  { %v49_v48 = vpop.xlane.xlu1 %48  ;;  %v89_v50 = vmul.f32 0.015625, %v46_v47  ;;  %v120_v52 = vmul.f32 %v1202_v44, %v1202_v44 }
  0x9a   :  { %v90_v51 = vmul.f32 0.015625, %v49_v48  ;;  %v128_v53 = vmul.f32 %v1204_v45, %v1204_v45 }
  0x9b   :  { %v1212_v54 = vsub.f32 %v23_v8, %v89_v50  ;;  %v138_v56 = vsel %vm37_vm0, %v120_v52, 0.0 }
  0x9c   :  { %v1214_v55 = vsub.f32 %v24_v9, %v90_v51  ;;  %160 = vadd.xlane.f32.xlu0 %v159_v49  ;;  %139 = vadd.xlane.f32.xlu1 %v138_v56  ;;  %v70_v57 = vpop.xlane.xlu0 %69  ;;  %v162_v59 = vsel %vm37_vm0, %v128_v53, 0.0  ;;  %v961_v49 = vld [vmem:[%s1730_s3 + $0x4] ss:$8 sps:$4 sm:$0xff]   ;;  %v964_v53 = vld [vmem:[%s1730_s3 + $0x14] ss:$8 sps:$4 sm:$0xff]  }
  0x9d   :  { %v73_v58 = vpop.xlane.xlu1 %72  ;;  %v97_v60 = vmul.f32 0.015625, %v70_v57  ;;  %v121_v62 = vmul.f32 %v1212_v54, %v1212_v54  ;;  %385 = vmatprep.subr.bf16.mxu0 %v961_v49  ;;  %952 = vmatprep.subr.bf16.mxu1 %v961_v49  ;;  %v966_v57 = vld [vmem:[%s1730_s3 + $0x10] ss:$8 sps:$4 sm:$0xff]  }
  0x9e   :  { %v98_v61 = vmul.f32 0.015625, %v73_v58  ;;  %v122_v63 = vmul.f32 %v1214_v55, %v1214_v55  ;;  %v967_v58 = vld [vmem:[%s1730_s3 + $0x24] ss:$8 sps:$4 sm:$0xff]  }
  0x9f   :  { %v1223_v0 = vsub.f32 %v1127_v12, %v97_v60  ;;  %v141_v2 = vsel %vm37_vm0, %v121_v62, 0.0  ;;  %v970_v60 = vld [vmem:[%s1730_s3 + $0x34] ss:$8 sps:$4 sm:$0xff]   ;;  %v1069_v62 = vmov 0  }
  0xa0   :  { %v1226_v1 = vsub.f32 %v1132_v13, %v98_v61  ;;  %163 = vadd.xlane.f32.xlu1 %v162_v59  ;;  %142 = vadd.xlane.f32.xlu0 %v141_v2  ;;  %v52_v3 = vpop.xlane.xlu0 %51  ;;  %v144_v5 = vsel %vm37_vm0, %v122_v63, 0.0  ;;  %v969_v59 = vld [vmem:[%s1730_s3 + $0x20] ss:$8 sps:$4 sm:$0xff]   ;;  %v972_v61 = vld [vmem:[%s1730_s3 + $0x30] ss:$8 sps:$4 sm:$0xff]  }
  0xa1   :  { %v55_v4 = vpop.xlane.xlu1 %54  ;;  %v91_v6 = vmul.f32 0.015625, %v52_v3  ;;  %v129_v8 = vmul.f32 %v1223_v0, %v1223_v0  ;;  %417 = vmatprep.mubr.bf16.mxu0 %v1069_v62  ;;  %457 = vmatprep.mubr.bf16.mxu1 %v1069_v62 }
  0xa2   :  { %v92_v7 = vmul.f32 0.015625, %v55_v4  ;;  %v130_v9 = vmul.f32 %v1226_v1, %v1226_v1 }
  0xa3   :  { %v1235_v10 = vsub.f32 %v1141_v16, %v91_v6  ;;  %v165_v12 = vsel %vm37_vm0, %v129_v8, 0.0 }
  0xa4   :  { %v1238_v11 = vsub.f32 %v1146_v17, %v92_v7  ;;  %145 = vadd.xlane.f32.xlu1 %v144_v5  ;;  %166 = vadd.xlane.f32.xlu0 %v165_v12  ;;  %v76_v13 = vpop.xlane.xlu0 %75  ;;  %v168_v15 = vsel %vm37_vm0, %v130_v9, 0.0 }
  0xa5   :  { %v79_v14 = vpop.xlane.xlu1 %78  ;;  %v99_v18 = vmul.f32 0.015625, %v76_v13  ;;  %v123_v22 = vmul.f32 %v1235_v10, %v1235_v10 }
  0xa6   :  { %v100_v19 = vmul.f32 0.015625, %v79_v14  ;;  %v124_v16 = vmul.f32 %v1238_v11, %v1238_v11 }
  0xa7   :  { %v1247_v23 = vsub.f32 %v1155_v20, %v99_v18  ;;  %v147_v26 = vsel %vm37_vm0, %v123_v22, 0.0 }
  0xa8   :  { %v1250_v17 = vsub.f32 %v1160_v21, %v100_v19  ;;  %169 = vadd.xlane.f32.xlu1 %v168_v15  ;;  %148 = vadd.xlane.f32.xlu0 %v147_v26  ;;  %v58_v27 = vpop.xlane.xlu0 %57  ;;  %v150_v31 = vsel %vm37_vm0, %v124_v16, 0.0 }
  0xa9   :  { %v61_v30 = vpop.xlane.xlu1 %60  ;;  %v93_v32 = vmul.f32 0.015625, %v58_v27  ;;  %v131_v34 = vmul.f32 %v1247_v23, %v1247_v23 }
  0xaa   :  { %v94_v33 = vmul.f32 0.015625, %v61_v30  ;;  %v132_v20 = vmul.f32 %v1250_v17, %v1250_v17 }
  0xab   :  { %v1259_v35 = vsub.f32 %v1169_v24, %v93_v32  ;;  %v171_v38 = vsel %vm37_vm0, %v131_v34, 0.0 }
  0xac   :  { %v1262_v21 = vsub.f32 %v1174_v25, %v94_v33  ;;  %151 = vadd.xlane.f32.xlu1 %v150_v31  ;;  %172 = vadd.xlane.f32.xlu0 %v171_v38  ;;  %v82_v39 = vpop.xlane.xlu0 %81  ;;  %v174_v41 = vsel %vm37_vm0, %v132_v20, 0.0 }
  0xad   :  { %v85_v40 = vpop.xlane.xlu1 %84  ;;  %v101_v42 = vmul.f32 0.015625, %v82_v39  ;;  %v125_v46 = vmul.f32 %v1259_v35, %v1259_v35 }
  0xae   :  { %v102_v43 = vmul.f32 0.015625, %v85_v40  ;;  %v126_v24 = vmul.f32 %v1262_v21, %v1262_v21  ;;  %v1314_v40 = vld [vmem:[%s1731_s1] ss:$0 sm:$0xff] }
  0xaf   :  { %v1271_v47 = vsub.f32 %v1183_v28, %v101_v42  ;;  %v153_v48 = vsel %vm37_vm0, %v125_v46, 0.0 }
  0xb0   :  { %v1274_v25 = vsub.f32 %v1188_v29, %v102_v43  ;;  %175 = vadd.xlane.f32.xlu1 %v174_v41  ;;  %154 = vadd.xlane.f32.xlu0 %v153_v48  ;;  %v156_v50 = vsel %vm37_vm0, %v126_v24, 0.0  ;;  %v963_v29 = vld [vmem:[%s1730_s3] ss:$8 sps:$4 sm:$0xff]  }
  0xb1   :  { %v133_v51 = vmul.f32 %v1271_v47, %v1271_v47  ;;  %386 = vmatpush1.bf16.msra.mxu0 %v963_v29  ;;  %956 = vmatpush1.bf16.msra.mxu1 %v963_v29  ;;  %v1322_v29 = vld [vmem:[%s1732_s2] ss:$0 sm:$0xff] }
  0xb2   :  { %v134_v28 = vmul.f32 %v1274_v25, %v1274_v25  ;;  %387 = vmatprep.subr.bf16.mxu0 %v964_v53  ;;  %953 = vmatprep.subr.bf16.mxu1 %v964_v53 }
  0xb3   :  { %v177_v52 = vsel %vm37_vm0, %v133_v51, 0.0 }
  0xb4   :  { %157 = vadd.xlane.f32.xlu1 %v156_v50  ;;  %178 = vadd.xlane.f32.xlu0 %v177_v52  ;;  %v180_v56 = vsel %vm37_vm0, %v134_v28, 0.0 }
  0xb5   :  { %388 = vmatpush1.bf16.msra.mxu0 %v966_v57  ;;  %957 = vmatpush1.bf16.msra.mxu1 %v966_v57 }
  0xb6   :  { %389 = vmatprep.subr.bf16.mxu0 %v967_v58  ;;  %954 = vmatprep.subr.bf16.mxu1 %v967_v58 }
  0xb8   :  { %181 = vadd.xlane.f32.xlu1 %v180_v56 }
  0xb9   :  { %390 = vmatpush1.bf16.msra.mxu0 %v969_v59  ;;  %958 = vmatpush1.bf16.msra.mxu1 %v969_v59 }
  0xba   :  { %391 = vmatprep.subr.bf16.mxu0 %v970_v60  ;;  %955 = vmatprep.subr.bf16.mxu1 %v970_v60 }
  0xbd   :  { %392 = vmatpush1.bf16.msra.mxu0 %v972_v61  ;;  %959 = vmatpush1.bf16.msra.mxu1 %v972_v61 }
 0x125   :  { %v137_v63 = vpop.xlane.xlu0 %136 }
 0x126   :  { %v183_v2 = vmul.f32 0.015625, %v137_v63 }
 0x128   :  { %v199_v3 = vadd.f32 1e-05, %v183_v2 }
 0x129   :  { %v140_v4 = vpop.xlane.xlu1 %139  ;;  %v161_v5 = vpop.xlane.xlu0 %160 }
 0x12a   :  { %973 = vrsqrt.f32 %v199_v3  ;;  %v184_v6 = vmul.f32 0.015625, %v140_v4  ;;  %v191_v7 = vmul.f32 0.015625, %v161_v5 }
 0x12c   :  { %v200_v8 = vadd.f32 1e-05, %v184_v6  ;;  %v207_v9 = vadd.f32 1e-05, %v191_v7 }
 0x12d   :  { %v164_v12 = vpop.xlane.xlu1 %163  ;;  %v143_v13 = vpop.xlane.xlu0 %142 }
 0x12e   :  { %975 = vrsqrt.f32 %v200_v8  ;;  %v192_v14 = vmul.f32 0.015625, %v164_v12  ;;  %v185_v15 = vmul.f32 0.015625, %v143_v13 }
 0x12f   :  { %977 = vrsqrt.f32 %v207_v9 }
 0x130   :  { %v208_v18 = vadd.f32 1e-05, %v192_v14  ;;  %v201_v19 = vadd.f32 1e-05, %v185_v15 }
 0x131   :  { %v146_v22 = vpop.xlane.xlu1 %145  ;;  %v167_v16 = vpop.xlane.xlu0 %166 }
 0x132   :  { %979 = vrsqrt.f32 %v208_v18  ;;  %v186_v26 = vmul.f32 0.015625, %v146_v22  ;;  %v193_v27 = vmul.f32 0.015625, %v167_v16 }
 0x133   :  { %981 = vrsqrt.f32 %v201_v19 }
 0x134   :  { %v974_v30 = vpop.eup %973  ;;  %v202_v31 = vadd.f32 1e-05, %v186_v26  ;;  %v209_v32 = vadd.f32 1e-05, %v193_v27 }
 0x135   :  { %v231_v33 = vmul.f32 %v974_v30, %v1194_v36  ;;  %v170_v34 = vpop.xlane.xlu1 %169  ;;  %v149_v20 = vpop.xlane.xlu0 %148 }
 0x136   :  { %983 = vrsqrt.f32 %v202_v31  ;;  %v194_v38 = vmul.f32 0.015625, %v170_v34  ;;  %v187_v39 = vmul.f32 0.015625, %v149_v20 }
 0x137   :  { %985 = vrsqrt.f32 %v209_v32  ;;  %v254_v36 = vmul.f32 %v1314_v40, %v231_v33 }
 0x138   :  { %v976_v41 = vpop.eup %975  ;;  %v210_v42 = vadd.f32 1e-05, %v194_v38  ;;  %v203_v43 = vadd.f32 1e-05, %v187_v39 }
 0x139   :  { %v978_v46 = vpop.eup %977  ;;  %v232_v24 = vmul.f32 %v976_v41, %v1202_v44  ;;  %v152_v48 = vpop.xlane.xlu1 %151 }
 0x13a   :  { %v173_v49 = vpop.xlane.xlu0 %172  ;;  %v239_v50 = vmul.f32 %v978_v46, %v1196_v37  ;;  %987 = vrsqrt.f32 %v210_v42  ;;  %v188_v51 = vmul.f32 0.015625, %v152_v48  ;;  %v277_v37 = vadd.f32 %v1322_v29, %v254_v36 }
 0x13b   :  { %v195_v28 = vmul.f32 0.015625, %v173_v49  ;;  %989 = vrsqrt.f32 %v203_v43  ;;  %v255_v52 = vmul.f32 %v1314_v40, %v232_v24 }
 0x13c   :  { %v980_v53 = vpop.eup %979  ;;  %v204_v56 = vadd.f32 1e-05, %v188_v51  ;;  %v262_v63 = vmul.f32 %v1314_v40, %v239_v50 }
 0x13d   :  { %v211_v44 = vadd.f32 1e-05, %v195_v28  ;;  %v982_v57 = vpop.eup %981  ;;  %v240_v58 = vmul.f32 %v980_v53, %v1204_v45  ;;  %v176_v59 = vpop.xlane.xlu1 %175  ;;  %v278_v61 = vadd.f32 %v1322_v29, %v255_v52 }
 0x13e   :  { %v155_v60 = vpop.xlane.xlu0 %154  ;;  %v233_v2 = vmul.f32 %v982_v57, %v1212_v54  ;;  %991 = vrsqrt.f32 %v204_v56  ;;  %v196_v3 = vmul.f32 0.015625, %v176_v59  ;;  %v285_v15 = vadd.f32 %v1322_v29, %v262_v63 }
 0x13f   :  { %v189_v4 = vmul.f32 0.015625, %v155_v60  ;;  %993 = vrsqrt.f32 %v211_v44  ;;  %v293_v5 = vpack.c.bf16 %v278_v61, %v277_v37  ;;  %v263_v6 = vmul.f32 %v1314_v40, %v240_v58 }
 0x140   :  { %v984_v7 = vpop.eup %983  ;;  %v212_v8 = vadd.f32 1e-05, %v196_v3  ;;  %v256_v18 = vmul.f32 %v1314_v40, %v233_v2 }
 0x141   :  { %v205_v45 = vadd.f32 1e-05, %v189_v4  ;;  %v986_v9 = vpop.eup %985  ;;  %v234_v12 = vmul.f32 %v984_v7, %v1214_v55  ;;  %v158_v13 = vpop.xlane.xlu1 %157  ;;  %912 = vmatmul.mubr.msk.bf16.vlgmr.msra.gmra.mrb[0].mxu0 %vm37_vm0, %v293_v5  ;;  %v286_v54 = vadd.f32 %v1322_v29, %v263_v6 }
 0x142   :  { %v179_v14 = vpop.xlane.xlu0 %178  ;;  %v241_v19 = vmul.f32 %v986_v9, %v1223_v0  ;;  %995 = vrsqrt.f32 %v212_v8  ;;  %v190_v22 = vmul.f32 0.015625, %v158_v13  ;;  %427 = vmatprep.mubr.bf16.mxu0 %v1069_v62  ;;  %v279_v0 = vadd.f32 %v1322_v29, %v256_v18 }
 0x143   :  { %v197_v16 = vmul.f32 0.015625, %v179_v14  ;;  %997 = vrsqrt.f32 %v205_v45  ;;  %v297_v26 = vpack.c.bf16 %v286_v54, %v285_v15  ;;  %v257_v55 = vmul.f32 %v1314_v40, %v234_v12  ;;  %v309_v54 = vld [vmem:[%s1733_s4] sm:$0x3] }
 0x144   :  { %v988_v27 = vpop.eup %987  ;;  %v206_v30 = vadd.f32 1e-05, %v190_v22  ;;  %v264_v38 = vmul.f32 %v1314_v40, %v241_v19  ;;  %v311_v13 = vlaneseq }
 0x145   :  { %v213_v31 = vadd.f32 1e-05, %v197_v16  ;;  %v990_v32 = vpop.eup %989  ;;  %v242_v33 = vmul.f32 %v988_v27, %v1226_v1  ;;  %v182_v34 = vpop.xlane.xlu1 %181  ;;  %916 = vmatmul.mubr.msk.bf16.vlgmr.msra.gmra.mrb[0].mxu1 %vm37_vm0, %v297_v26  ;;  %v280_v20 = vadd.f32 %v1322_v29, %v257_v55 }
 0x146   :  { %v235_v39 = vmul.f32 %v990_v32, %v1235_v10  ;;  %999 = vrsqrt.f32 %v206_v30  ;;  %v198_v41 = vmul.f32 0.015625, %v182_v34  ;;  %467 = vmatprep.mubr.bf16.mxu1 %v1069_v62  ;;  %v287_v49 = vadd.f32 %v1322_v29, %v264_v38 }
 0x147   :  { %1001 = vrsqrt.f32 %v213_v31  ;;  %v294_v42 = vpack.c.bf16 %v280_v20, %v279_v0  ;;  %v265_v43 = vmul.f32 %v1314_v40, %v242_v33  ;;  %v312_v14 = vshrl.u32 %v311_v13, 7 }
 0x148   :  { %v992_v1 = vpop.eup %991  ;;  %v214_v46 = vadd.f32 1e-05, %v198_v41  ;;  %v258_v10 = vmul.f32 %v1314_v40, %v235_v39 }
 0x149   :  { %v994_v24 = vpop.eup %993  ;;  %v236_v48 = vmul.f32 %v992_v1, %v1238_v11  ;;  %913 = vmatmul.mubr.msk.bf16.gmra.mrb[4].mxu0 %vm37_vm0, %v294_v42  ;;  %v288_v36 = vadd.f32 %v1322_v29, %v265_v43  ;;  %v313_v15 = vsub.s32 0, %v312_v14 }
 0x14a   :  { %v243_v50 = vmul.f32 %v994_v24, %v1247_v23  ;;  %1003 = vrsqrt.f32 %v214_v46  ;;  %437 = vmatprep.mubr.bf16.mxu0 %v1069_v62  ;;  %v281_v56 = vadd.f32 %v1322_v29, %v258_v10 }
 0x14b   :  { %v298_v51 = vpack.c.bf16 %v288_v36, %v287_v49  ;;  %v259_v28 = vmul.f32 %v1314_v40, %v236_v48  ;;  %v1385_v18 = vrot.slane %v309_v54, %v313_v15 }
 0x14c   :  { %v996_v52 = vpop.eup %995  ;;  %v266_v57 = vmul.f32 %v1314_v40, %v243_v50 }
 0x14d   :  { %v998_v53 = vpop.eup %997  ;;  %v244_v11 = vmul.f32 %v996_v52, %v1250_v17  ;;  %917 = vmatmul.mubr.msk.bf16.gmra.mrb[4].mxu1 %vm37_vm0, %v298_v51  ;;  %v282_v44 = vadd.f32 %v1322_v29, %v259_v28 }
 0x14e   :  { %v237_v23 = vmul.f32 %v998_v53, %v1259_v35  ;;  %477 = vmatprep.mubr.bf16.mxu1 %v1069_v62  ;;  %v289_v17 = vadd.f32 %v1322_v29, %v266_v57 }
 0x14f   :  { %v295_v58 = vpack.c.bf16 %v282_v44, %v281_v56  ;;  %v267_v59 = vmul.f32 %v1314_v40, %v244_v11 }
 0x150   :  { %v1000_v60 = vpop.eup %999  ;;  %v260_v2 = vmul.f32 %v1314_v40, %v237_v23 }
 0x151   :  { %v1002_v37 = vpop.eup %1001  ;;  %v238_v61 = vmul.f32 %v1000_v60, %v1262_v21  ;;  %914 = vmatmul.mubr.msk.bf16.gmra.mrb[8].mxu0 %vm37_vm0, %v295_v58  ;;  %v290_v63 = vadd.f32 %v1322_v29, %v267_v59 }
 0x152   :  { %v245_v3 = vmul.f32 %v1002_v37, %v1271_v47  ;;  %447 = vmatprep.mubr.bf16.mxu0 %v1069_v62  ;;  %v283_v21 = vadd.f32 %v1322_v29, %v260_v2 }
 0x153   :  { %v299_v35 = vpack.c.bf16 %v290_v63, %v289_v17  ;;  %v261_v4 = vmul.f32 %v1314_v40, %v238_v61 }
 0x154   :  { %v1004_v5 = vpop.eup %1003  ;;  %v268_v8 = vmul.f32 %v1314_v40, %v245_v3 }
 0x155   :  { %v246_v6 = vmul.f32 %v1004_v5, %v1274_v25  ;;  %918 = vmatmul.mubr.msk.bf16.gmra.mrb[8].mxu1 %vm37_vm0, %v299_v35  ;;  %v284_v7 = vadd.f32 %v1322_v29, %v261_v4 }
 0x156   :  { %487 = vmatprep.mubr.bf16.mxu1 %v1069_v62  ;;  %v291_v9 = vadd.f32 %v1322_v29, %v268_v8  ;;  %v317_v62 = vsub.s32 1, %v312_v14 }
 0x157   :  { %v296_v45 = vpack.c.bf16 %v284_v7, %v283_v21  ;;  %v269_v47 = vmul.f32 %v1314_v40, %v246_v6 }
 0x158   :  { %v1387_v40 = vrot.slane %v309_v54, %v317_v62 }
 0x159   :  { %915 = vmatmul.mubr.msk.bf16.gmra.mrb[12].mxu0 %vm37_vm0, %v296_v45  ;;  %v292_v12 = vadd.f32 %v1322_v29, %v269_v47 }
 0x15b   :  { %v300_v25 = vpack.c.bf16 %v292_v12, %v291_v9 }
 0x15d   :  { %919 = vmatmul.mubr.msk.bf16.gmra.mrb[12].mxu1 %vm37_vm0, %v300_v25 }
 0x214   :  { %v419_v19 = vpop.f32.mrb[0].mxu0 }
 0x215   :  { %v420_v22 = vadd.f32 %v419_v19, %v1385_v18  ;;  %v421_v16 = vpop.f32.mrb[1].mxu0 }
 0x216   :  { %v422_v29 = vadd.f32 %v421_v16, %v1387_v40  ;;  %v423_v26 = vpop.f32.mrb[2].mxu0 }
 0x217   :  { %v530_v55 = vmul.f32 0.044715, %v420_v22  ;;  %v1392_v27 = vadd.f32 %v423_v26, %v1385_v18  ;;  %v425_v30 = vpop.f32.mrb[3].mxu0  ;;  %v1424_v4 = vmul.f32 0.5, %v420_v22 }
 0x218   :  { %v531_v31 = vmul.f32 0.044715, %v422_v29  ;;  %v1395_v32 = vadd.f32 %v425_v30, %v1387_v40  ;;  %v459_v33 = vpop.f32.mrb[0].mxu1  ;;  %v499_v19 = vmul.f32 0.5, %v422_v29 }
 0x219   :  { %v562_v34 = vmul.f32 %v530_v55, %v420_v22  ;;  %v532_v0 = vmul.f32 0.044715, %v1392_v27  ;;  %v1399_v20 = vadd.f32 %v459_v33, %v1385_v18  ;;  %v461_v38 = vpop.f32.mrb[1].mxu1  ;;  %v500_v55 = vmul.f32 0.5, %v1392_v27 }
 0x21a   :  { %v563_v39 = vmul.f32 %v531_v31, %v422_v29  ;;  %v533_v41 = vmul.f32 0.044715, %v1395_v32  ;;  %v1403_v42 = vadd.f32 %v461_v38, %v1387_v40  ;;  %v463_v43 = vpop.f32.mrb[2].mxu1 }
 0x21b   :  { %v594_v1 = vmul.f32 %v562_v34, %v420_v22  ;;  %v564_v46 = vmul.f32 %v532_v0, %v1392_v27  ;;  %v546_v24 = vmul.f32 0.044715, %v1399_v20  ;;  %v465_v48 = vpop.f32.mrb[3].mxu1  ;;  %v1412_v53 = vadd.f32 %v463_v43, %v1385_v18 }
 0x21c   :  { %v595_v49 = vmul.f32 %v563_v39, %v422_v29  ;;  %v565_v36 = vmul.f32 %v533_v41, %v1395_v32  ;;  %v547_v10 = vmul.f32 0.044715, %v1403_v42  ;;  %v429_v50 = vpop.f32.mrb[4].mxu0  ;;  %v1419_v37 = vadd.f32 %v465_v48, %v1387_v40 }
 0x21d   :  { %v626_v51 = vadd.f32 %v594_v1, %v420_v22  ;;  %v596_v28 = vmul.f32 %v564_v46, %v1392_v27  ;;  %v578_v52 = vmul.f32 %v546_v24, %v1399_v20  ;;  %v431_v11 = vpop.f32.mrb[5].mxu0  ;;  %v548_v3 = vmul.f32 0.044715, %v1412_v53 }
 0x21e   :  { %v627_v56 = vadd.f32 %v595_v49, %v422_v29  ;;  %v597_v44 = vmul.f32 %v565_v36, %v1395_v32  ;;  %v579_v57 = vmul.f32 %v547_v10, %v1403_v42  ;;  %v433_v23 = vpop.f32.mrb[6].mxu0  ;;  %v549_v12 = vmul.f32 0.044715, %v1419_v37 }
 0x21f   :  { %v658_v58 = vmul.f32 0.7978846, %v626_v51  ;;  %v628_v59 = vadd.f32 %v596_v28, %v1392_v27  ;;  %v610_v60 = vmul.f32 %v578_v52, %v1399_v20  ;;  %v435_v61 = vpop.f32.mrb[7].mxu0  ;;  %v580_v45 = vmul.f32 %v548_v3, %v1412_v53 }
 0x220   :  { %v659_v17 = vmul.f32 0.7978846, %v627_v56  ;;  %v629_v63 = vadd.f32 %v597_v44, %v1395_v32  ;;  %v611_v2 = vmul.f32 %v579_v57, %v1403_v42  ;;  %v469_v35 = vpop.f32.mrb[4].mxu1  ;;  %v1433_v25 = vadd.f32 %v429_v50, %v1385_v18 }
 0x221   :  { %1005 = vtanh.f32 %v658_v58  ;;  %v660_v5 = vmul.f32 0.7978846, %v628_v59  ;;  %v642_v6 = vadd.f32 %v610_v60, %v1399_v20  ;;  %v471_v21 = vpop.f32.mrb[5].mxu1  ;;  %v612_v15 = vmul.f32 %v580_v45, %v1412_v53 }
 0x222   :  { %1007 = vtanh.f32 %v659_v17  ;;  %v661_v7 = vmul.f32 0.7978846, %v629_v63  ;;  %v643_v8 = vadd.f32 %v611_v2, %v1403_v42  ;;  %v1429_v47 = vpop.f32.mrb[6].mxu1  ;;  %v1439_v54 = vadd.f32 %v431_v11, %v1387_v40 }
 0x223   :  { %1009 = vtanh.f32 %v660_v5  ;;  %v674_v9 = vmul.f32 0.7978846, %v642_v6  ;;  %v1435_v13 = vpop.f32.mrb[7].mxu1  ;;  %v581_v22 = vmul.f32 %v549_v12, %v1419_v37  ;;  %v534_v16 = vmul.f32 0.044715, %v1433_v25 }
 0x224   :  { %1011 = vtanh.f32 %v661_v7  ;;  %v675_v14 = vmul.f32 0.7978846, %v643_v8  ;;  %v1441_v62 = vpop.f32.mrb[8].mxu0  ;;  %v644_v30 = vadd.f32 %v612_v15, %v1412_v53  ;;  %v535_v31 = vmul.f32 0.044715, %v1439_v54 }
 0x225   :  { %1013 = vtanh.f32 %v674_v9  ;;  %v1445_v26 = vpop.f32.mrb[9].mxu0  ;;  %v613_v34 = vmul.f32 %v581_v22, %v1419_v37  ;;  %v566_v29 = vmul.f32 %v534_v16, %v1433_v25  ;;  %v1455_v0 = vadd.f32 %v433_v23, %v1385_v18 }
 0x226   :  { %1015 = vtanh.f32 %v675_v14  ;;  %v1450_v33 = vpop.f32.mrb[10].mxu0  ;;  %v1458_v38 = vadd.f32 %v435_v61, %v1387_v40  ;;  %v501_v27 = vmul.f32 0.5, %v1395_v32  ;;  %v676_v41 = vmul.f32 0.7978846, %v644_v30 }
 0x227   :  { %v1460_v39 = vpop.f32.mrb[11].mxu0  ;;  %v567_v43 = vmul.f32 %v535_v31, %v1439_v54  ;;  %v1465_v1 = vadd.f32 %v469_v35, %v1385_v18  ;;  %v514_v24 = vmul.f32 0.5, %v1399_v20  ;;  %v645_v48 = vadd.f32 %v613_v34, %v1419_v37 }
 0x228   :  { %v1467_v46 = vpop.f32.mrb[8].mxu1  ;;  %v598_v49 = vmul.f32 %v566_v29, %v1433_v25  ;;  %v536_v36 = vmul.f32 0.044715, %v1455_v0  ;;  %v515_v32 = vmul.f32 0.5, %v1403_v42  ;;  %1017 = vtanh.f32 %v676_v41 }
 0x229   :  { %v1473_v10 = vpop.f32.mrb[9].mxu1  ;;  %v599_v50 = vmul.f32 %v567_v43, %v1439_v54  ;;  %v537_v51 = vmul.f32 0.044715, %v1458_v38  ;;  %v677_v11 = vmul.f32 0.7978846, %v645_v48  ;;  %v1483_v44 = vadd.f32 %v471_v21, %v1387_v40 }
 0x22a   :  { %v1478_v28 = vpop.f32.mrb[10].mxu1  ;;  %v630_v20 = vadd.f32 %v598_v49, %v1433_v25  ;;  %v568_v56 = vmul.f32 %v536_v36, %v1455_v0  ;;  %v550_v60 = vmul.f32 0.044715, %v1465_v1  ;;  %v516_v36 = vmul.f32 0.5, %v1412_v53 }
 0x22b   :  { %v1006_v52 = vpop.eup %1005  ;;  %v1485_v57 = vpop.f32.mrb[11].mxu1  ;;  %v631_v58 = vadd.f32 %v599_v50, %v1439_v54  ;;  %v569_v59 = vmul.f32 %v537_v51, %v1458_v38  ;;  %1019 = vtanh.f32 %v677_v11 }
 0x22c   :  { %v1008_v23 = vpop.eup %1007  ;;  %v722_v42 = vadd.f32 1.0, %v1006_v52  ;;  %v1490_v61 = vpop.f32.mrb[12].mxu0  ;;  %v662_v2 = vmul.f32 0.7978846, %v630_v20  ;;  %v600_v3 = vmul.f32 %v568_v56, %v1455_v0  ;;  %v582_v51 = vmul.f32 %v550_v60, %v1465_v1 }
 0x22d   :  { %v1010_v17 = vpop.eup %1009  ;;  %v723_v63 = vadd.f32 1.0, %v1008_v23  ;;  %v1493_v35 = vpop.f32.mrb[13].mxu0  ;;  %v663_v7 = vmul.f32 0.7978846, %v631_v58  ;;  %v601_v8 = vmul.f32 %v569_v59, %v1458_v38  ;;  %v1524_v23 = vadd.f32 %v1435_v13, %v1387_v40 }
 0x22e   :  { %v1012_v5 = vpop.eup %1011  ;;  %v754_v6 = vmul.f32 %v722_v42, %v1424_v4  ;;  %v724_v21 = vadd.f32 1.0, %v1010_v17  ;;  %v1497_v45 = vpop.f32.mrb[14].mxu0  ;;  %1021 = vtanh.f32 %v662_v2  ;;  %v632_v15 = vadd.f32 %v600_v3, %v1455_v0 }
 0x22f   :  { %v1014_v9 = vpop.eup %1013  ;;  %v755_v12 = vmul.f32 %v723_v63, %v499_v19  ;;  %v725_v14 = vadd.f32 1.0, %v1012_v5  ;;  %v1500_v22 = vpop.f32.mrb[15].mxu0  ;;  %1023 = vtanh.f32 %v663_v7  ;;  %v633_v4 = vadd.f32 %v601_v8, %v1458_v38 }
 0x230   :  { %v1016_v16 = vpop.eup %1015  ;;  %v756_v30 = vmul.f32 %v724_v21, %v500_v55  ;;  %v738_v31 = vadd.f32 1.0, %v1014_v9  ;;  %v1503_v34 = vpop.f32.mrb[12].mxu1  ;;  %v664_v48 = vmul.f32 0.7978846, %v632_v15  ;;  %v614_v53 = vmul.f32 %v582_v51, %v1465_v1 }
 0x231   :  { %v936_v29 = vpack.c.bf16 %v755_v12, %v754_v6  ;;  %v757_v41 = vmul.f32 %v725_v14, %v501_v27  ;;  %v739_v43 = vadd.f32 1.0, %v1016_v16  ;;  %v1505_v49 = vpop.f32.mrb[13].mxu1  ;;  %v665_v50 = vmul.f32 0.7978846, %v633_v4 }
 0x232   :  { %v770_v19 = vmul.f32 %v738_v31, %v514_v24  ;;  %v1509_v52 = vpop.f32.mrb[14].mxu1  ;;  %1025 = vtanh.f32 %v664_v48  ;;  %v551_v27 = vmul.f32 0.044715, %v1483_v44  ;;  %v1018_v56 = vpop.eup %1017  ;;  %v1520_v24 = vadd.f32 %v1429_v47, %v1385_v18 }
 0x233   :  { %882 = vst [vmem:[%s1734_s5] sm:$0xff] %v936_v29  ;;  %v937_v55 = vpack.c.bf16 %v757_v41, %v756_v30  ;;  %v771_v11 = vmul.f32 %v739_v43, %v515_v32  ;;  %v1515_v20 = vpop.f32.mrb[15].mxu1  ;;  %1027 = vtanh.f32 %v665_v50  ;;  %v740_v42 = vadd.f32 1.0, %v1018_v56 }
 0x234   :  { %v583_v58 = vmul.f32 %v551_v27, %v1483_v44  ;;  %v1532_v59 = vadd.f32 %v1441_v62, %v1385_v18  ;;  %v517_v60 = vmul.f32 0.5, %v1419_v37  ;;  %v502_v47 = vmul.f32 0.5, %v1433_v25 }
 0x235   :  { %883 = vst [vmem:[%s1734_s5 + $0x8] sm:$0xff] %v937_v55  ;;  %v944_v32 = vpack.c.bf16 %v771_v11, %v770_v19  ;;  %v646_v17 = vadd.f32 %v614_v53, %v1465_v1  ;;  %v552_v13 = vmul.f32 0.044715, %v1520_v24  ;;  %v1020_v63 = vpop.eup %1019  ;;  %v772_v2 = vmul.f32 %v740_v42, %v516_v36 }
 0x236   :  { %v503_v3 = vmul.f32 0.5, %v1439_v54  ;;  %v615_v5 = vmul.f32 %v583_v58, %v1483_v44  ;;  %v553_v62 = vmul.f32 0.044715, %v1524_v23  ;;  %v741_v6 = vadd.f32 1.0, %v1020_v63 }
 0x237   :  { %890 = vst [vmem:[%s1734_s5 + $0x40] sm:$0xff] %v944_v32  ;;  %v678_v37 = vmul.f32 0.7978846, %v646_v17  ;;  %v584_v25 = vmul.f32 %v552_v13, %v1520_v24  ;;  %v538_v21 = vmul.f32 0.044715, %v1532_v59  ;;  %v504_v8 = vmul.f32 0.5, %v1455_v0 }
 0x238   :  { %v1022_v7 = vpop.eup %1021  ;;  %v647_v9 = vadd.f32 %v615_v5, %v1483_v44  ;;  %v585_v12 = vmul.f32 %v553_v62, %v1524_v23  ;;  %v1551_v54 = vadd.f32 %v1445_v26, %v1387_v40  ;;  %v773_v15 = vmul.f32 %v741_v6, %v517_v60 }
 0x239   :  { %v1024_v14 = vpop.eup %1023  ;;  %v726_v16 = vadd.f32 1.0, %v1022_v7  ;;  %1029 = vtanh.f32 %v678_v37  ;;  %v616_v30 = vmul.f32 %v584_v25, %v1520_v24  ;;  %v570_v0 = vmul.f32 %v538_v21, %v1532_v59 }
 0x23a   :  { %v727_v31 = vadd.f32 1.0, %v1024_v14  ;;  %v679_v4 = vmul.f32 0.7978846, %v647_v9  ;;  %v617_v29 = vmul.f32 %v585_v12, %v1524_v23  ;;  %v945_v41 = vpack.c.bf16 %v773_v15, %v772_v2 }
 0x23b   :  { %v758_v43 = vmul.f32 %v726_v16, %v502_v47  ;;  %v648_v48 = vadd.f32 %v616_v30, %v1520_v24  ;;  %v1559_v26 = vadd.f32 %v1450_v33, %v1385_v18  ;;  %v602_v51 = vmul.f32 %v570_v0, %v1532_v59 }
 0x23c   :  { %v1026_v19 = vpop.eup %1025  ;;  %v759_v36 = vmul.f32 %v727_v31, %v503_v3  ;;  %1031 = vtanh.f32 %v679_v4  ;;  %v649_v50 = vadd.f32 %v617_v29, %v1524_v23  ;;  %891 = vst [vmem:[%s1734_s5 + $0x48] sm:$0xff] %v945_v41  ;;  %v505_v27 = vmul.f32 0.5, %v1458_v38 }
 0x23d   :  { %v1028_v55 = vpop.eup %1027  ;;  %v728_v11 = vadd.f32 1.0, %v1026_v19  ;;  %v680_v56 = vmul.f32 0.7978846, %v648_v48  ;;  %v539_v53 = vmul.f32 0.044715, %v1551_v54  ;;  %v634_v58 = vadd.f32 %v602_v51, %v1532_v59 }
 0x23e   :  { %v938_v33 = vpack.c.bf16 %v759_v36, %v758_v43  ;;  %v729_v32 = vadd.f32 1.0, %v1028_v55  ;;  %v681_v42 = vmul.f32 0.7978846, %v649_v50  ;;  %v540_v17 = vmul.f32 0.044715, %v1559_v26 }
 0x23f   :  { %v760_v60 = vmul.f32 %v728_v11, %v504_v8  ;;  %1033 = vtanh.f32 %v680_v56  ;;  %v571_v47 = vmul.f32 %v539_v53, %v1551_v54  ;;  %v666_v38 = vmul.f32 0.7978846, %v634_v58 }
 0x240   :  { %884 = vst [vmem:[%s1734_s5 + $0x10] sm:$0xff] %v938_v33  ;;  %v761_v13 = vmul.f32 %v729_v32, %v505_v27  ;;  %1035 = vtanh.f32 %v681_v42  ;;  %v1576_v63 = vadd.f32 %v1460_v39, %v1387_v40  ;;  %v572_v3 = vmul.f32 %v540_v17, %v1559_v26 }
 0x241   :  { %v603_v2 = vmul.f32 %v571_v47, %v1551_v54  ;;  %v1582_v5 = vadd.f32 %v1467_v46, %v1385_v18  ;;  %v1586_v62 = vadd.f32 %v1473_v10, %v1387_v40  ;;  %v518_v37 = vmul.f32 0.5, %v1465_v1 }
 0x242   :  { %v939_v6 = vpack.c.bf16 %v761_v13, %v760_v60  ;;  %1037 = vtanh.f32 %v666_v38  ;;  %v541_v25 = vmul.f32 0.044715, %v1576_v63  ;;  %v519_v21 = vmul.f32 0.5, %v1483_v44 }
 0x243   :  { %v1030_v39 = vpop.eup %1029  ;;  %v635_v7 = vadd.f32 %v603_v2, %v1551_v54  ;;  %v604_v8 = vmul.f32 %v572_v3, %v1559_v26  ;;  %v554_v46 = vmul.f32 0.044715, %v1582_v5  ;;  %v520_v9 = vmul.f32 0.5, %v1520_v24 }
 0x244   :  { %885 = vst [vmem:[%s1734_s5 + $0x18] sm:$0xff] %v939_v6  ;;  %v742_v10 = vadd.f32 1.0, %v1030_v39  ;;  %v573_v1 = vmul.f32 %v541_v25, %v1576_v63  ;;  %v555_v12 = vmul.f32 0.044715, %v1586_v62  ;;  %v1604_v16 = vadd.f32 %v1478_v28, %v1385_v18 }
 0x245   :  { %v667_v14 = vmul.f32 0.7978846, %v635_v7  ;;  %v636_v44 = vadd.f32 %v604_v8, %v1559_v26  ;;  %v586_v15 = vmul.f32 %v554_v46, %v1582_v5  ;;  %v1610_v24 = vadd.f32 %v1485_v57, %v1387_v40 }
 0x246   :  { %v1032_v30 = vpop.eup %1031  ;;  %v774_v31 = vmul.f32 %v742_v10, %v518_v37  ;;  %v605_v4 = vmul.f32 %v573_v1, %v1576_v63  ;;  %v587_v29 = vmul.f32 %v555_v12, %v1586_v62  ;;  %v521_v48 = vmul.f32 0.5, %v1524_v23 }
 0x247   :  { %v743_v0 = vadd.f32 1.0, %v1032_v30  ;;  %1039 = vtanh.f32 %v667_v14  ;;  %v668_v41 = vmul.f32 0.7978846, %v636_v44  ;;  %v618_v43 = vmul.f32 %v586_v15, %v1582_v5 }
 0x248   :  { %v637_v28 = vadd.f32 %v605_v4, %v1576_v63  ;;  %v619_v19 = vmul.f32 %v587_v29, %v1586_v62  ;;  %v556_v36 = vmul.f32 0.044715, %v1604_v16  ;;  %v506_v55 = vmul.f32 0.5, %v1532_v59 }
 0x249   :  { %v1034_v50 = vpop.eup %1033  ;;  %v775_v51 = vmul.f32 %v743_v0, %v519_v21  ;;  %1041 = vtanh.f32 %v668_v41  ;;  %v650_v57 = vadd.f32 %v618_v43, %v1582_v5  ;;  %v557_v58 = vmul.f32 0.044715, %v1610_v24 }
 0x24a   :  { %v1036_v11 = vpop.eup %1035  ;;  %v744_v27 = vadd.f32 1.0, %v1034_v50  ;;  %v669_v56 = vmul.f32 0.7978846, %v637_v28  ;;  %v651_v53 = vadd.f32 %v619_v19, %v1586_v62  ;;  %v588_v23 = vmul.f32 %v556_v36, %v1604_v16 }
 0x24b   :  { %v946_v33 = vpack.c.bf16 %v775_v51, %v774_v31  ;;  %v745_v32 = vadd.f32 1.0, %v1036_v11  ;;  %v682_v42 = vmul.f32 0.7978846, %v650_v57  ;;  %v589_v2 = vmul.f32 %v557_v58, %v1610_v24 }
 0x24c   :  { %v1038_v60 = vpop.eup %1037  ;;  %v776_v47 = vmul.f32 %v744_v27, %v520_v9  ;;  %1043 = vtanh.f32 %v669_v56  ;;  %v683_v17 = vmul.f32 0.7978846, %v651_v53  ;;  %v620_v59 = vmul.f32 %v588_v23, %v1604_v16 }
 0x24d   :  { %892 = vst [vmem:[%s1734_s5 + $0x50] sm:$0xff] %v946_v33  ;;  %v777_v13 = vmul.f32 %v745_v32, %v521_v48  ;;  %v730_v38 = vadd.f32 1.0, %v1038_v60  ;;  %1045 = vtanh.f32 %v682_v42  ;;  %v1630_v6 = vadd.f32 %v1490_v61, %v1385_v18 }
 0x24e   :  { %1047 = vtanh.f32 %v683_v17  ;;  %v652_v3 = vadd.f32 %v620_v59, %v1604_v16  ;;  %v1634_v37 = vadd.f32 %v1493_v35, %v1387_v40  ;;  %v507_v39 = vmul.f32 0.5, %v1551_v54 }
 0x24f   :  { %v947_v25 = vpack.c.bf16 %v777_v13, %v776_v47  ;;  %v621_v21 = vmul.f32 %v589_v2, %v1610_v24  ;;  %v1640_v7 = vadd.f32 %v1497_v45, %v1385_v18  ;;  %v508_v8 = vmul.f32 0.5, %v1559_v26 }
 0x250   :  { %v509_v46 = vmul.f32 0.5, %v1576_v63  ;;  %v684_v10 = vmul.f32 0.7978846, %v652_v3  ;;  %v542_v61 = vmul.f32 0.044715, %v1630_v6  ;;  %v762_v35 = vmul.f32 %v730_v38, %v506_v55 }
 0x251   :  { %v1040_v9 = vpop.eup %1039  ;;  %893 = vst [vmem:[%s1734_s5 + $0x58] sm:$0xff] %v947_v25  ;;  %v653_v54 = vadd.f32 %v621_v21, %v1610_v24  ;;  %v543_v1 = vmul.f32 0.044715, %v1634_v37  ;;  %v544_v45 = vmul.f32 0.044715, %v1640_v7  ;;  %v1654_v63 = vadd.f32 %v1500_v22, %v1387_v40 }
 0x252   :  { %v731_v12 = vadd.f32 1.0, %v1040_v9  ;;  %1049 = vtanh.f32 %v684_v10  ;;  %v574_v26 = vmul.f32 %v542_v61, %v1630_v6  ;;  %v522_v44 = vmul.f32 0.5, %v1582_v5 }
 0x253   :  { %v1042_v14 = vpop.eup %1041  ;;  %v685_v15 = vmul.f32 0.7978846, %v653_v54  ;;  %v575_v30 = vmul.f32 %v543_v1, %v1634_v37  ;;  %v576_v31 = vmul.f32 %v544_v45, %v1640_v7  ;;  %v1662_v41 = vadd.f32 %v1503_v34, %v1385_v18 }
 0x254   :  { %v763_v4 = vmul.f32 %v731_v12, %v507_v39  ;;  %v732_v29 = vadd.f32 1.0, %v1042_v14  ;;  %v606_v0 = vmul.f32 %v574_v26, %v1630_v6  ;;  %v545_v5 = vmul.f32 0.044715, %v1654_v63 }
 0x255   :  { %1051 = vtanh.f32 %v685_v15  ;;  %v607_v22 = vmul.f32 %v575_v30, %v1634_v37  ;;  %v608_v43 = vmul.f32 %v576_v31, %v1640_v7  ;;  %v523_v36 = vmul.f32 0.5, %v1586_v62 }
 0x256   :  { %v1044_v48 = vpop.eup %1043  ;;  %v940_v28 = vpack.c.bf16 %v763_v4, %v762_v35  ;;  %v764_v19 = vmul.f32 %v732_v29, %v508_v8  ;;  %v638_v50 = vadd.f32 %v606_v0, %v1630_v6  ;;  %v577_v11 = vmul.f32 %v545_v5, %v1654_v63 }
 0x257   :  { %v1046_v51 = vpop.eup %1045  ;;  %v733_v55 = vadd.f32 1.0, %v1044_v48  ;;  %v639_v57 = vadd.f32 %v607_v22, %v1634_v37  ;;  %v640_v34 = vadd.f32 %v608_v43, %v1640_v7  ;;  %v558_v23 = vmul.f32 0.044715, %v1662_v41 }
 0x258   :  { %v1048_v27 = vpop.eup %1047  ;;  %886 = vst [vmem:[%s1734_s5 + $0x20] sm:$0xff] %v940_v28  ;;  %v746_v56 = vadd.f32 1.0, %v1046_v51  ;;  %v670_v53 = vmul.f32 0.7978846, %v638_v50  ;;  %v1678_v62 = vadd.f32 %v1505_v49, %v1387_v40  ;;  %v609_v47 = vmul.f32 %v577_v11, %v1654_v63 }
 0x259   :  { %v765_v33 = vmul.f32 %v733_v55, %v509_v46  ;;  %v747_v32 = vadd.f32 1.0, %v1048_v27  ;;  %v671_v42 = vmul.f32 0.7978846, %v639_v57  ;;  %v672_v58 = vmul.f32 0.7978846, %v640_v34 }
 0x25a   :  { %v778_v60 = vmul.f32 %v746_v56, %v522_v44  ;;  %1053 = vtanh.f32 %v670_v53  ;;  %v590_v17 = vmul.f32 %v558_v23, %v1662_v41  ;;  %v524_v38 = vmul.f32 0.5, %v1604_v16 }
 0x25b   :  { %v941_v59 = vpack.c.bf16 %v765_v33, %v764_v19  ;;  %v779_v13 = vmul.f32 %v747_v32, %v523_v36  ;;  %1055 = vtanh.f32 %v671_v42  ;;  %v641_v49 = vadd.f32 %v609_v47, %v1654_v63 }
 0x25c   :  { %v1050_v2 = vpop.eup %1049  ;;  %1057 = vtanh.f32 %v672_v58  ;;  %v622_v3 = vmul.f32 %v590_v17, %v1662_v41  ;;  %v559_v25 = vmul.f32 0.044715, %v1678_v62  ;;  %v494_v8 = vadd.f32 %v1509_v52, %v1385_v18 }
 0x25d   :  { %887 = vst [vmem:[%s1734_s5 + $0x28] sm:$0xff] %v941_v59  ;;  %v948_v39 = vpack.c.bf16 %v779_v13, %v778_v60  ;;  %v748_v21 = vadd.f32 1.0, %v1050_v2  ;;  %v1693_v16 = vadd.f32 %v1515_v20, %v1387_v40  ;;  %v673_v46 = vmul.f32 0.7978846, %v641_v49 }
 0x25e   :  { %v654_v10 = vadd.f32 %v622_v3, %v1662_v41  ;;  %v591_v61 = vmul.f32 %v559_v25, %v1678_v62  ;;  %v525_v54 = vmul.f32 0.5, %v1610_v24  ;;  %v560_v1 = vmul.f32 0.044715, %v494_v8 }
 0x25f   :  { %v1052_v9 = vpop.eup %1051  ;;  %894 = vst [vmem:[%s1734_s5 + $0x60] sm:$0xff] %v948_v39  ;;  %v780_v35 = vmul.f32 %v748_v21, %v524_v38  ;;  %1059 = vtanh.f32 %v673_v46  ;;  %v561_v20 = vmul.f32 0.044715, %v1693_v16  ;;  %v510_v4 = vmul.f32 0.5, %v1630_v6 }
 0x260   :  { %v749_v45 = vadd.f32 1.0, %v1052_v9  ;;  %v686_v18 = vmul.f32 0.7978846, %v654_v10  ;;  %v623_v40 = vmul.f32 %v591_v61, %v1678_v62  ;;  %v592_v52 = vmul.f32 %v560_v1, %v494_v8 }
 0x261   :  { %v593_v44 = vmul.f32 %v561_v20, %v1693_v16  ;;  %v511_v5 = vmul.f32 0.5, %v1634_v37  ;;  %v512_v6 = vmul.f32 0.5, %v1640_v7  ;;  %v513_v27 = vmul.f32 0.5, %v1654_v63 }
 0x262   :  { %v781_v12 = vmul.f32 %v749_v45, %v525_v54  ;;  %1061 = vtanh.f32 %v686_v18  ;;  %v655_v26 = vadd.f32 %v623_v40, %v1678_v62  ;;  %v624_v14 = vmul.f32 %v592_v52, %v494_v8 }
 0x263   :  { %v625_v22 = vmul.f32 %v593_v44, %v1693_v16  ;;  %v526_v32 = vmul.f32 0.5, %v1662_v41  ;;  %v527_v63 = vmul.f32 0.5, %v1678_v62  ;;  %v528_v17 = vmul.f32 0.5, %v494_v8 }
 0x264   :  { %v1054_v15 = vpop.eup %1053  ;;  %v949_v30 = vpack.c.bf16 %v781_v12, %v780_v35  ;;  %v687_v31 = vmul.f32 0.7978846, %v655_v26  ;;  %v656_v0 = vadd.f32 %v624_v14, %v494_v8  ;;  %v529_v49 = vmul.f32 0.5, %v1693_v16 }
 0x265   :  { %v1056_v24 = vpop.eup %1055  ;;  %v734_v29 = vadd.f32 1.0, %v1054_v15  ;;  %v657_v50 = vadd.f32 %v625_v22, %v1693_v16 }
 0x266   :  { %v1058_v43 = vpop.eup %1057  ;;  %895 = vst [vmem:[%s1734_s5 + $0x68] sm:$0xff] %v949_v30  ;;  %v735_v48 = vadd.f32 1.0, %v1056_v24  ;;  %1063 = vtanh.f32 %v687_v31  ;;  %v688_v36 = vmul.f32 0.7978846, %v656_v0 }
 0x267   :  { %v766_v28 = vmul.f32 %v734_v29, %v510_v4  ;;  %v736_v19 = vadd.f32 1.0, %v1058_v43  ;;  %v689_v55 = vmul.f32 0.7978846, %v657_v50 }
 0x268   :  { %v767_v51 = vmul.f32 %v735_v48, %v511_v5  ;;  %1065 = vtanh.f32 %v688_v36 }
 0x269   :  { %v1060_v57 = vpop.eup %1059  ;;  %v768_v11 = vmul.f32 %v736_v19, %v512_v6  ;;  %1067 = vtanh.f32 %v689_v55 }
 0x26a   :  { %v942_v34 = vpack.c.bf16 %v767_v51, %v766_v28  ;;  %v737_v56 = vadd.f32 1.0, %v1060_v57 }
 0x26c   :  { %v1062_v37 = vpop.eup %1061  ;;  %888 = vst [vmem:[%s1734_s5 + $0x30] sm:$0xff] %v942_v34  ;;  %v769_v53 = vmul.f32 %v737_v56, %v513_v27 }
 0x26d   :  { %v750_v23 = vadd.f32 1.0, %v1062_v37 }
 0x26e   :  { %v943_v33 = vpack.c.bf16 %v769_v53, %v768_v11 }
 0x26f   :  { %v782_v42 = vmul.f32 %v750_v23, %v526_v32 }
 0x270   :  { %v1064_v7 = vpop.eup %1063  ;;  %889 = vst [vmem:[%s1734_s5 + $0x38] sm:$0xff] %v943_v33 }
 0x271   :  { %v751_v58 = vadd.f32 1.0, %v1064_v7 }
 0x272   :  { %v1066_v60 = vpop.eup %1065 }
 0x273   :  { %v783_v47 = vmul.f32 %v751_v58, %v527_v63  ;;  %v752_v59 = vadd.f32 1.0, %v1066_v60  ;;  %v1068_v13 = vpop.eup %1067 }
 0x274   :  { %v753_v3 = vadd.f32 1.0, %v1068_v13 }
 0x275   :  { %v950_v38 = vpack.c.bf16 %v783_v47, %v782_v42  ;;  %v784_v2 = vmul.f32 %v752_v59, %v528_v17 }
 0x276   :  { %v785_v41 = vmul.f32 %v753_v3, %v529_v49 }
 0x277   :  { %896 = vst [vmem:[%s1734_s5 + $0x70] sm:$0xff] %v950_v38 }
 0x278   :  { %v951_v25 = vpack.c.bf16 %v785_v41, %v784_v2 }
 0x27a   :  { %897 = vst [vmem:[%s1734_s5 + $0x78] sm:$0xff] %v951_v25 }

// kernel: transformer_forward.11
= control target key start
LH: loop header
LB: loop body
LE: loop exit
PB: predicated region body
PF: predicated region fallthrough
CT: control target
= control target key end

     0   :  { %s2061_s6 = smov 0   ;;  %s2566_s0 = inlined_call_operand.vmem [shape: bf16[2,64,192], index: 0, kind: input, shape index: {}]   ;;  %s2567_s1 = inlined_call_operand.vmem [shape: bf16[2,64,64], index: 1, kind: output, shape index: {}]  }
   0x1 LB: > { %s1538_s7 = sadd.s32 4294967295, %s2042_s6   ;;  %p1542_p0 = scmp.ge.s32.totalorder %s2042_s6, 1  ;;  %s2042_s6 = sphi %s2061_s6, %s11_s6  }
   0x2   : > { %p87_p1 = scmp.lt.s32.totalorder %s2042_s6, 3 }
   0x4   : > { %p88_p2 = pnand %p1542_p0, %p87_p1 }
   0x5   : > { %p107_p3 = scmp.lt.s32.totalorder (!%p88_p2), %s1538_s7, 1  ;;  %vm154_vm0 = vcmask (!%p88_p2), 130048   ;;  %s2044_s12 = smov (!%p88_p2), 64   ;;  %vm252_vm1 = vcmask (!%p88_p2), 523264   ;;  %vm1424_vm2 = vcmask (!%p88_p2), 261120   ;;  %vm1433_vm3 = vcmask (!%p88_p2), 392192  }
   0x6   : > { %91 = sbr.rel (%p88_p2) target bundleno = 2859 (0xb2b), region = 24  ;;  %s2045_s13 = smov (!%p88_p2), 48   ;;  %vm1474_vm4 = vcmask (!%p88_p2), 519168  }
   0x7   : > { %s2046_s14 = smov (!%p88_p2), 112   ;;  %s2047_s15 = smov (!%p88_p2), 32  }
   0x8   : > { %s2048_s16 = smov (!%p88_p2), 96   ;;  %s2049_s17 = smov (!%p88_p2), 16  }
   0x9   : > { %s2050_s18 = smov (!%p88_p2), 80  }
   0xd   : > { %s2569_s7 = smov (!%p107_p3, %s1538_s7), 1 }
   0xe   : > { %s1597_s8 = sshll.u32 %s2569_s7, 6  ;;  %s1598_s19 = sshll.u32 %s2569_s7, 5 }
   0xf   : > { %s2075_s11 = scalar_lea.vmem %s2566_s0, %s1597_s8  ;;  %s2525_s22 = scalar_lea.vmem %s2567_s1, %s1598_s19 }
  0x10   : > { %v2078_v0 = vld [vmem:[%s2075_s11] ss:$8 sps:$4 sm:$0xff]   ;;  %v2081_v1 = vld [vmem:[%s2075_s11 + $0x10] ss:$8 sps:$4 sm:$0xff]   ;;  %v2124_v36 = vld [vmem:[%s2075_s11 + $0x4] ss:$8 sps:$4 sm:$0xff]  }
  0x11   : > { %146 = vrot.lane.b32.xlu0 %v2078_v0, %s2044_s12  ;;  %v2085_v2 = vld [vmem:[%s2075_s11 + $0x20] ss:$8 sps:$4 sm:$0xff]   ;;  %1679 = vmatprep.mubr.msk.bf16.mxu0 %vm154_vm0, %v2078_v0  ;;  %v2091_v3 = vld [vmem:[%s2075_s11 + $0x30] ss:$8 sps:$4 sm:$0xff]   ;;  %v2127_v37 = vld [vmem:[%s2075_s11 + $0x14] ss:$8 sps:$4 sm:$0xff]  }
  0x12   : > { %150 = vrot.lane.b32.xlu1 %v2085_v2, %s2044_s12  ;;  %1687 = vmatprep.subr.bf16.mxu1 %v2124_v36 }
  0x13   : > { %1688 = vmatpush3.bf16.msra.mxu1 %v2124_v36 }
  0x14   : > { %1689 = vmatprep.subr.bf16.mxu1 %v2127_v37 }
  0x15   : > { %148 = vrot.lane.b32.xlu0 %v2081_v1, %s2044_s12 }
  0x16   : > { %152 = vrot.lane.b32.xlu1 %v2091_v3, %s2044_s12 }
  0x17   : > { %1690 = vmatpush3.bf16.msra.mxu1 %v2127_v37 }
  0x83   : > { %v147_v4 = vpop.permute.xlu0 %146 }
  0x84   : > { %1799 = vmatprep.subr.msk.bf16.mxu0 %vm154_vm0, %v147_v4  ;;  %v168_v5 = vsel %vm154_vm0, %v147_v4, 0  ;;  %v151_v8 = vpop.permute.xlu1 %150 }
  0x85   : > { %1672 = vmatpush3.bf16.xpose.msra.mxu0 %v168_v5  ;;  %v174_v9 = vsel %vm154_vm0, %v151_v8, 0 }
  0x87   : > { %v149_v6 = vpop.permute.xlu0 %148 }
  0x88   : > { %1800 = vmatprep.subr.msk.bf16.mxu0 %vm154_vm0, %v149_v6  ;;  %v171_v7 = vsel %vm154_vm0, %v149_v6, 0  ;;  %v153_v10 = vpop.permute.xlu1 %152 }
  0x89   : > { %v177_v11 = vsel %vm154_vm0, %v153_v10, 0 }
  0x8d   : > { %1674 = vmatpush3.bf16.xpose.msra.mxu0 %v171_v7  ;;  %v2150_v7 = vld [vmem:[%s2075_s11 + $0x24] ss:$8 sps:$4 sm:$0xff]  }
  0x8e   : > { %1801 = vmatprep.subr.msk.bf16.mxu0 %vm154_vm0, %v151_v8  ;;  %1691 = vmatprep.subr.bf16.mxu1 %v2150_v7 }
  0x8f   : > { %1692 = vmatpush3.bf16.msra.mxu1 %v2150_v7 }
  0x95   : > { %1676 = vmatpush3.bf16.xpose.msra.mxu0 %v174_v9  ;;  %v2157_v9 = vld [vmem:[%s2075_s11 + $0x34] ss:$8 sps:$4 sm:$0xff]  }
  0x96   : > { %1802 = vmatprep.subr.msk.bf16.mxu0 %vm154_vm0, %v153_v10  ;;  %1693 = vmatprep.subr.bf16.mxu1 %v2157_v9 }
  0x97   : > { %1694 = vmatpush3.bf16.msra.mxu1 %v2157_v9 }
  0x9d   : > { %1678 = vmatpush3.bf16.xpose.msra.mxu0 %v177_v11 }
  0xa4   : > { %1680 = vmatmul.mubr.msk.bf16.vlgmr.msra.gmra.mrb[0].mxu0 %vm154_vm0, %v2081_v1 }
  0xa5   : > { %1683 = vmatprep.mubr.msk.bf16.mxu0 %vm154_vm0, %v2085_v2 }
  0xac   : > { %1684 = vmatmul.mubr.msk.bf16.gmra.mrb[4].mxu0 %vm154_vm0, %v2091_v3 }
 0x177   : > { %v1681_v12 = vpop.f32.mrb[0].mxu0 }
 0x178   : > { %v213_v13 = vpop.f32.mrb[1].mxu0  ;;  %v246_v17 = vmul.f32 0.25, %v1681_v12 }
 0x179   : > { %v244_v14 = vmul.f32 0.25, %v213_v13  ;;  %v1682_v15 = vpop.f32.mrb[2].mxu0 }
 0x17a   : > { %v216_v16 = vpop.f32.mrb[3].mxu0  ;;  %v247_v21 = vmul.f32 0.25, %v1682_v15  ;;  %v259_v23 = vsel %vm252_vm1, %v246_v17, -inf }
 0x17b   : > { %v245_v18 = vmul.f32 0.25, %v216_v16  ;;  %v253_v19 = vsel %vm252_vm1, %v244_v14, -inf }
 0x17c   : > { %254 = vmax.xlane.f32.xlu0 %v253_v19  ;;  %v262_v29 = vsel %vm252_vm1, %v247_v21, -inf }
 0x17d   : > { %v256_v20 = vsel %vm252_vm1, %v245_v18, -inf }
 0x17e   : > { %257 = vmax.xlane.f32.xlu1 %v256_v20 }
 0x17f   : > { %v1685_v22 = vpop.f32.mrb[4].mxu0 }
 0x180   : > { %260 = vmax.xlane.f32.xlu0 %v259_v23  ;;  %v229_v24 = vpop.f32.mrb[5].mxu0  ;;  %v2112_v25 = vmul.f32 0.25, %v1685_v22 }
 0x181   : > { %v2114_v26 = vmul.f32 0.25, %v229_v24  ;;  %v1686_v27 = vpop.f32.mrb[6].mxu0 }
 0x182   : > { %v232_v28 = vpop.f32.mrb[7].mxu0  ;;  %v251_v32 = vmul.f32 0.25, %v1686_v27  ;;  %v271_v33 = vsel %vm252_vm1, %v2112_v25, -inf }
 0x183   : > { %v265_v30 = vsel %vm252_vm1, %v2114_v26, -inf  ;;  %v249_v31 = vmul.f32 0.25, %v232_v28 }
 0x184   : > { %263 = vmax.xlane.f32.xlu0 %v262_v29  ;;  %266 = vmax.xlane.f32.xlu1 %v265_v30  ;;  %v274_v35 = vsel %vm252_vm1, %v251_v32, -inf }
 0x185   : > { %v268_v34 = vsel %vm252_vm1, %v249_v31, -inf }
 0x188   : > { %272 = vmax.xlane.f32.xlu1 %v271_v33  ;;  %269 = vmax.xlane.f32.xlu0 %v268_v34 }
 0x18c   : > { %275 = vmax.xlane.f32.xlu0 %v274_v35 }
 0x209   : > { %v255_v38 = vpop.xlane.xlu0 %254 }
 0x20a   : > { %v277_v39 = vsub.f32 %v244_v14, %v255_v38 }
 0x20b   : > { %v258_v40 = vpop.xlane.xlu1 %257 }
 0x20c   : > { %v285_v43 = vmul.f32 1.442695, %v277_v39  ;;  %v278_v44 = vsub.f32 %v245_v18, %v258_v40 }
 0x20d   : > { %v261_v41 = vpop.xlane.xlu0 %260 }
 0x20e   : > { %v279_v42 = vsub.f32 %v246_v17, %v261_v41  ;;  %v287_v48 = vmul.f32 1.442695, %v278_v44 }
 0x210   : > { %v289_v45 = vmul.f32 1.442695, %v279_v42 }
 0x211   : > { %v264_v46 = vpop.xlane.xlu0 %263  ;;  %v267_v10 = vpop.xlane.xlu1 %266 }
 0x212   : > { %1902 = vpow2.f32 %v289_v45  ;;  %v280_v47 = vsub.f32 %v247_v21, %v264_v46  ;;  %v281_v13 = vsub.f32 %v2114_v26, %v267_v10 }
 0x213   : > { %1904 = vpow2.f32 %v285_v43 }
 0x214   : > { %v291_v49 = vmul.f32 1.442695, %v280_v47  ;;  %v293_v15 = vmul.f32 1.442695, %v281_v13 }
 0x215   : > { %v270_v50 = vpop.xlane.xlu0 %269  ;;  %v273_v11 = vpop.xlane.xlu1 %272 }
 0x216   : > { %1906 = vpow2.f32 %v291_v49  ;;  %v282_v51 = vsub.f32 %v249_v31, %v270_v50  ;;  %v283_v12 = vsub.f32 %v2112_v25, %v273_v11 }
 0x217   : > { %1908 = vpow2.f32 %v287_v48 }
 0x218   : > { %v295_v55 = vmul.f32 1.442695, %v282_v51  ;;  %v297_v14 = vmul.f32 1.442695, %v283_v12 }
 0x219   : > { %v276_v52 = vpop.xlane.xlu0 %275 }
 0x21a   : > { %v284_v53 = vsub.f32 %v251_v32, %v276_v52 }
 0x21c   : > { %v2133_v54 = vpop.eup %1902  ;;  %v299_v56 = vmul.f32 1.442695, %v284_v53 }
 0x21d   : > { %v307_v57 = vsel %vm252_vm1, %v2133_v54, 0.0  ;;  %v2137_v58 = vpop.eup %1904 }
 0x21e   : > { %1910 = vpow2.f32 %v299_v56  ;;  %308 = vadd.xlane.f32.xlu1 %v307_v57  ;;  %v301_v60 = vsel %vm252_vm1, %v2137_v58, 0.0 }
 0x21f   : > { %1912 = vpow2.f32 %v295_v55 }
 0x220   : > { %v1907_v59 = vpop.eup %1906  ;;  %1914 = vpow2.f32 %v297_v14 }
 0x221   : > { %v310_v61 = vsel %vm252_vm1, %v1907_v59, 0.0  ;;  %v1909_v62 = vpop.eup %1908  ;;  %1916 = vpow2.f32 %v293_v15 }
 0x222   : > { %302 = vadd.xlane.f32.xlu1 %v301_v60  ;;  %311 = vadd.xlane.f32.xlu0 %v310_v61  ;;  %v304_v63 = vsel %vm252_vm1, %v1909_v62, 0.0 }
 0x226   : > { %305 = vadd.xlane.f32.xlu0 %v304_v63 }
 0x228   : > { %v2143_v4 = vpop.eup %1910 }
 0x229   : > { %v322_v5 = vsel %vm252_vm1, %v2143_v4, 0.0  ;;  %v2147_v6 = vpop.eup %1912 }
 0x22a   : > { %323 = vadd.xlane.f32.xlu0 %v322_v5  ;;  %v316_v8 = vsel %vm252_vm1, %v2147_v6, 0.0  ;;  %v1915_v16 = vpop.eup %1914 }
 0x22b   : > { %v319_v17 = vsel %vm252_vm1, %v1915_v16, 0.0  ;;  %v1917_v18 = vpop.eup %1916 }
 0x22c   : > { %v313_v19 = vsel %vm252_vm1, %v1917_v18, 0.0 }
 0x22e   : > { %317 = vadd.xlane.f32.xlu0 %v316_v8 }
 0x233   : > { %446 = vrot.lane.b32.xlu1 %v2078_v0, %s2045_s13 }
 0x244   : > { %448 = vrot.lane.b32.xlu0 %v2081_v1, %s2045_s13 }
 0x248   : > { %438 = vrot.lane.b32.xlu0 %v2078_v0, %s2046_s14 }
 0x24c   : > { %442 = vrot.lane.b32.xlu0 %v2085_v2, %s2046_s14 }
 0x257   : > { %320 = vadd.xlane.f32.xlu1 %v319_v17 }
 0x25b   : > { %314 = vadd.xlane.f32.xlu1 %v313_v19 }
 0x26c   : > { %450 = vrot.lane.b32.xlu1 %v2085_v2, %s2045_s13 }
 0x270   : > { %452 = vrot.lane.b32.xlu1 %v2091_v3, %s2045_s13 }
 0x274   : > { %440 = vrot.lane.b32.xlu1 %v2081_v1, %s2046_s14 }
 0x278   : > { %444 = vrot.lane.b32.xlu1 %v2091_v3, %s2046_s14 }
 0x2ab   : > { %v309_v20 = vpop.xlane.xlu1 %308 }
 0x2af   : > { %v303_v21 = vpop.xlane.xlu1 %302  ;;  %v312_v22 = vpop.xlane.xlu0 %311 }
 0x2b0   : > { %1918 = vrcp.f32 %v312_v22 }
 0x2b1   : > { %1920 = vrcp.f32 %v303_v21 }
 0x2b2   : > { %1922 = vrcp.f32 %v309_v20 }
 0x2b3   : > { %v447_v23 = vpop.permute.xlu1 %446  ;;  %v306_v24 = vpop.xlane.xlu0 %305 }
 0x2b4   : > { %1924 = vrcp.f32 %v306_v24  ;;  %1803 = vmatprep.subr.msk.bf16.mxu1 %vm154_vm0, %v447_v23  ;;  %v467_v40 = vsel %vm154_vm0, %v447_v23, 0 }
 0x2b7   : > { %v324_v25 = vpop.xlane.xlu0 %323 }
 0x2ba   : > { %v1919_v26 = vpop.eup %1918 }
 0x2bb   : > { %v1921_v27 = vpop.eup %1920  ;;  %v336_v30 = vmul.f32 %v1919_v26, %v1907_v59  ;;  %v318_v31 = vpop.xlane.xlu0 %317 }
 0x2bc   : > { %v1923_v28 = vpop.eup %1922  ;;  %v333_v32 = vmul.f32 %v1921_v27, %v2137_v58 }
 0x2bd   : > { %v335_v34 = vmul.f32 %v1923_v28, %v2133_v54 }
 0x2be   : > { %v1925_v29 = vpop.eup %1924 }
 0x2bf   : > { %v334_v33 = vmul.f32 %v1925_v29, %v1909_v62  ;;  %v342_v38 = vpack.c.bf16 %v336_v30, %v335_v34  ;;  %v449_v39 = vpop.permute.xlu0 %448 }
 0x2c0   : > { %v470_v41 = vsel %vm154_vm0, %v449_v39, 0 }
 0x2c1   : > { %v341_v35 = vpack.c.bf16 %v334_v33, %v333_v32 }
 0x2c3   : > { %1695 = vmatprep.mubr.msk.bf16.mxu1 %vm252_vm1, %v341_v35  ;;  %v439_v58 = vpop.permute.xlu0 %438 }
 0x2c4   : > { %1696 = vmatmul.mubr.msk.bf16.vlgmr.msra.gmra.mrb[0].mxu1 %vm252_vm1, %v342_v38 }
 0x2c5   : > { %1704 = vmatpush3.bf16.xpose.msra.mxu1 %v467_v40 }
 0x2c6   : > { %1804 = vmatprep.subr.msk.bf16.mxu1 %vm154_vm0, %v449_v39 }
 0x2c7   : > { %v443_v60 = vpop.permute.xlu0 %442 }
 0x2cd   : > { %1706 = vmatpush3.bf16.xpose.msra.mxu1 %v470_v41 }
 0x2e4   : > { %v321_v42 = vpop.xlane.xlu1 %320 }
 0x2e5   : > { %1926 = vrcp.f32 %v321_v42 }
 0x2e6   : > { %1928 = vrcp.f32 %v318_v31 }
 0x2e7   : > { %1930 = vrcp.f32 %v324_v25 }
 0x2e8   : > { %v315_v43 = vpop.xlane.xlu1 %314 }
 0x2e9   : > { %1932 = vrcp.f32 %v315_v43 }
 0x2ec   : > { %v451_v44 = vpop.permute.xlu1 %450 }
 0x2ed   : > { %v473_v45 = vsel %vm154_vm0, %v451_v44, 0  ;;  %1805 = vmatprep.subr.msk.bf16.mxu1 %vm154_vm0, %v451_v44 }
 0x2ee   : > { %1708 = vmatpush3.bf16.xpose.msra.mxu1 %v473_v45 }
 0x2ef   : > { %v1927_v46 = vpop.eup %1926 }
 0x2f0   : > { %v453_v47 = vpop.permute.xlu1 %452  ;;  %v1929_v48 = vpop.eup %1928  ;;  %v339_v52 = vmul.f32 %v1927_v46, %v1915_v16 }
 0x2f1   : > { %1806 = vmatprep.subr.msk.bf16.mxu1 %vm154_vm0, %v453_v47  ;;  %v1931_v49 = vpop.eup %1930  ;;  %v476_v51 = vsel %vm154_vm0, %v453_v47, 0  ;;  %v338_v54 = vmul.f32 %v1929_v48, %v2147_v6 }
 0x2f2   : > { %v340_v55 = vmul.f32 %v1931_v49, %v2143_v4 }
 0x2f3   : > { %v1933_v50 = vpop.eup %1932 }
 0x2f4   : > { %v337_v53 = vmul.f32 %v1933_v50, %v1917_v18  ;;  %v344_v57 = vpack.c.bf16 %v340_v55, %v339_v52  ;;  %v441_v59 = vpop.permute.xlu1 %440 }
 0x2f6   : > { %v343_v56 = vpack.c.bf16 %v338_v54, %v337_v53  ;;  %1710 = vmatpush3.bf16.xpose.msra.mxu1 %v476_v51 }
 0x2f8   : > { %1699 = vmatprep.mubr.msk.bf16.mxu1 %vm252_vm1, %v343_v56  ;;  %v445_v61 = vpop.permute.xlu1 %444 }
 0x2f9   : > { %1700 = vmatmul.mubr.msk.bf16.gmra.mrb[4].mxu1 %vm252_vm1, %v344_v57 }
 0x2fa   : > { %1711 = vmatprep.mubr.msk.bf16.mxu1 %vm154_vm0, %v439_v58 }
 0x301   : > { %1712 = vmatmul.mubr.msk.bf16.vlgmr.msra.gmra.mrb[8].mxu1 %vm154_vm0, %v441_v59 }
 0x302   : > { %1715 = vmatprep.mubr.msk.bf16.mxu1 %vm154_vm0, %v443_v60 }
 0x309   : > { %1716 = vmatmul.mubr.msk.bf16.gmra.mrb[12].mxu1 %vm154_vm0, %v445_v61 }
 0x397   : > { %v2201_v62 = vpop.f32.mrb[0].mxu1 }
 0x398   : > { %v2203_v63 = vpop.f32.mrb[1].mxu1 }
 0x399   : > { %v2205_v4 = vpop.f32.mrb[2].mxu1 }
 0x39a   : > { %v2207_v5 = vpop.f32.mrb[3].mxu1 }
 0x3cc   : > { %v2209_v6 = vpop.f32.mrb[4].mxu1 }
 0x3cd   : > { %v2211_v8 = vpop.f32.mrb[5].mxu1 }
 0x3ce   : > { %v2213_v10 = vpop.f32.mrb[6].mxu1 }
 0x3cf   : > { %v2215_v11 = vpop.f32.mrb[7].mxu1 }
 0x3d4   : > { %v1713_v12 = vpop.f32.mrb[8].mxu1 }
 0x3d5   : > { %v545_v13 = vmul.f32 0.25, %v1713_v12  ;;  %v512_v14 = vpop.f32.mrb[9].mxu1 }
 0x3d6   : > { %v1714_v15 = vpop.f32.mrb[10].mxu1  ;;  %v543_v16 = vmul.f32 0.25, %v512_v14 }
 0x3d7   : > { %v515_v17 = vpop.f32.mrb[11].mxu1  ;;  %v557_v18 = vsel %vm252_vm1, %v545_v13, -inf  ;;  %v546_v21 = vmul.f32 0.25, %v1714_v15 }
 0x3d8   : > { %v544_v19 = vmul.f32 0.25, %v515_v17  ;;  %558 = vmax.xlane.f32.xlu0 %v557_v18  ;;  %v551_v22 = vsel %vm252_vm1, %v543_v16, -inf }
 0x3d9   : > { %v560_v28 = vsel %vm252_vm1, %v546_v21, -inf }
 0x3da   : > { %v554_v20 = vsel %vm252_vm1, %v544_v19, -inf }
 0x3db   : > { %555 = vmax.xlane.f32.xlu1 %v554_v20 }
 0x3dc   : > { %552 = vmax.xlane.f32.xlu0 %v551_v22  ;;  %v1717_v23 = vpop.f32.mrb[12].mxu1 }
 0x3dd   : > { %v549_v24 = vmul.f32 0.25, %v1717_v23  ;;  %v528_v25 = vpop.f32.mrb[13].mxu1 }
 0x3de   : > { %v547_v26 = vmul.f32 0.25, %v528_v25  ;;  %v1718_v27 = vpop.f32.mrb[14].mxu1 }
 0x3df   : > { %v569_v29 = vsel %vm252_vm1, %v549_v24, -inf  ;;  %v531_v30 = vpop.f32.mrb[15].mxu1  ;;  %v550_v32 = vmul.f32 0.25, %v1718_v27 }
 0x3e0   : > { %561 = vmax.xlane.f32.xlu0 %v560_v28  ;;  %570 = vmax.xlane.f32.xlu1 %v569_v29  ;;  %v2222_v31 = vmul.f32 0.25, %v531_v30  ;;  %v563_v33 = vsel %vm252_vm1, %v547_v26, -inf }
 0x3e1   : > { %v572_v35 = vsel %vm252_vm1, %v550_v32, -inf }
 0x3e2   : > { %v566_v34 = vsel %vm252_vm1, %v2222_v31, -inf }
 0x3e4   : > { %564 = vmax.xlane.f32.xlu1 %v563_v33  ;;  %567 = vmax.xlane.f32.xlu0 %v566_v34 }
 0x3e8   : > { %573 = vmax.xlane.f32.xlu0 %v572_v35 }
 0x3f5   : > { %643 = vrot.lane.b32.xlu1 %v2124_v36, %s2046_s14 }
 0x3f9   : > { %647 = vrot.lane.b32.xlu1 %v2150_v7, %s2046_s14 }
 0x3fd   : > { %649 = vrot.lane.b32.xlu1 %v2157_v9, %s2046_s14 }
 0x3fe   : > { %645 = vrot.lane.b32.xlu0 %v2127_v37, %s2046_s14 }
 0x401   : > { %740 = vrot.lane.b32.xlu1 %v2078_v0, %s2047_s15 }
 0x465   : > { %v559_v38 = vpop.xlane.xlu0 %558 }
 0x466   : > { %v577_v39 = vsub.f32 %v545_v13, %v559_v38 }
 0x468   : > { %v587_v40 = vmul.f32 1.442695, %v577_v39  ;;  %v556_v41 = vpop.xlane.xlu1 %555 }
 0x469   : > { %v553_v42 = vpop.xlane.xlu0 %552  ;;  %v576_v45 = vsub.f32 %v544_v19, %v556_v41 }
 0x46a   : > { %1934 = vpow2.f32 %v587_v40  ;;  %v575_v43 = vsub.f32 %v543_v16, %v553_v42 }
 0x46b   : > { %v585_v50 = vmul.f32 1.442695, %v576_v45 }
 0x46c   : > { %v583_v44 = vmul.f32 1.442695, %v575_v43 }
 0x46d   : > { %v571_v46 = vpop.xlane.xlu1 %570  ;;  %v562_v47 = vpop.xlane.xlu0 %561 }
 0x46e   : > { %1936 = vpow2.f32 %v583_v44  ;;  %v578_v48 = vsub.f32 %v546_v21, %v562_v47  ;;  %v581_v51 = vsub.f32 %v549_v24, %v571_v46 }
 0x470   : > { %v589_v49 = vmul.f32 1.442695, %v578_v48  ;;  %v595_v55 = vmul.f32 1.442695, %v581_v51 }
 0x471   : > { %v565_v52 = vpop.xlane.xlu1 %564  ;;  %v568_v53 = vpop.xlane.xlu0 %567 }
 0x472   : > { %1938 = vpow2.f32 %v589_v49  ;;  %v579_v56 = vsub.f32 %v547_v26, %v565_v52  ;;  %v580_v29 = vsub.f32 %v2222_v31, %v568_v53 }
 0x473   : > { %1940 = vpow2.f32 %v585_v50 }
 0x474   : > { %v2238_v54 = vpop.eup %1934  ;;  %1942 = vpow2.f32 %v595_v55  ;;  %v591_v61 = vmul.f32 1.442695, %v579_v56  ;;  %v593_v30 = vmul.f32 1.442695, %v580_v29 }
 0x475   : > { %v574_v57 = vpop.xlane.xlu0 %573  ;;  %v605_v58 = vsel %vm252_vm1, %v2238_v54, 0.0  ;;  %v644_v59 = vpop.permute.xlu1 %643 }
 0x476   : > { %606 = vadd.xlane.f32.xlu1 %v605_v58  ;;  %1719 = vmatprep.subr.bf16.mxu0 %v644_v59  ;;  %v582_v12 = vsub.f32 %v550_v32, %v574_v57  ;;  %1944 = vpow2.f32 %v591_v61 }
 0x477   : > { %1720 = vmatpush3.bf16.msra.mxu0 %v644_v59 }
 0x478   : > { %v2242_v60 = vpop.eup %1936  ;;  %v597_v17 = vmul.f32 1.442695, %v582_v12 }
 0x479   : > { %v599_v13 = vsel %vm252_vm1, %v2242_v60, 0.0  ;;  %v646_v14 = vpop.permute.xlu0 %645  ;;  %v648_v15 = vpop.permute.xlu1 %647 }
 0x47a   : > { %600 = vadd.xlane.f32.xlu1 %v599_v13  ;;  %1721 = vmatprep.subr.bf16.mxu0 %v646_v14  ;;  %1946 = vpow2.f32 %v597_v17 }
 0x47b   : > { %1722 = vmatpush3.bf16.msra.mxu0 %v646_v14  ;;  %1948 = vpow2.f32 %v593_v30 }
 0x47c   : > { %1723 = vmatprep.subr.bf16.mxu0 %v648_v15  ;;  %v1939_v16 = vpop.eup %1938 }
 0x47d   : > { %v650_v18 = vpop.permute.xlu1 %649  ;;  %v608_v19 = vsel %vm252_vm1, %v1939_v16, 0.0  ;;  %v1941_v20 = vpop.eup %1940 }
 0x47e   : > { %609 = vadd.xlane.f32.xlu0 %v608_v19  ;;  %v602_v22 = vsel %vm252_vm1, %v1941_v20, 0.0  ;;  %v2248_v23 = vpop.eup %1942 }
 0x47f   : > { %1724 = vmatpush3.bf16.msra.mxu0 %v648_v15  ;;  %v617_v24 = vsel %vm252_vm1, %v2248_v23, 0.0 }
 0x480   : > { %1725 = vmatprep.subr.bf16.mxu0 %v650_v18  ;;  %v2253_v25 = vpop.eup %1944 }
 0x481   : > { %v741_v21 = vpop.permute.xlu1 %740  ;;  %v611_v26 = vsel %vm252_vm1, %v2253_v25, 0.0 }
 0x482   : > { %603 = vadd.xlane.f32.xlu0 %v602_v22  ;;  %v761_v53 = vsel %vm154_vm0, %v741_v21, 0 }
 0x483   : > { %1726 = vmatpush3.bf16.msra.mxu0 %v650_v18 }
 0x484   : > { %1807 = vmatprep.subr.msk.bf16.mxu0 %vm154_vm0, %v741_v21  ;;  %v2257_v27 = vpop.eup %1946 }
 0x485   : > { %v620_v28 = vsel %vm252_vm1, %v2257_v27, 0.0  ;;  %v1949_v32 = vpop.eup %1948 }
 0x486   : > { %618 = vadd.xlane.f32.xlu0 %v617_v24  ;;  %v614_v33 = vsel %vm252_vm1, %v1949_v32, 0.0 }
 0x48a   : > { %612 = vadd.xlane.f32.xlu0 %v611_v26 }
 0x48b   : > { %744 = vrot.lane.b32.xlu1 %v2085_v2, %s2047_s15 }
 0x48e   : > { %621 = vadd.xlane.f32.xlu0 %v620_v28 }
 0x4a4   : > { %742 = vrot.lane.b32.xlu0 %v2081_v1, %s2047_s15 }
 0x4a8   : > { %732 = vrot.lane.b32.xlu0 %v2078_v0, %s2048_s16 }
 0x4ac   : > { %736 = vrot.lane.b32.xlu0 %v2085_v2, %s2048_s16 }
 0x4af   : > { %615 = vadd.xlane.f32.xlu1 %v614_v33 }
 0x4c0   : > { %746 = vrot.lane.b32.xlu1 %v2091_v3, %s2047_s15 }
 0x4c4   : > { %734 = vrot.lane.b32.xlu1 %v2081_v1, %s2048_s16 }
 0x4c8   : > { %738 = vrot.lane.b32.xlu1 %v2091_v3, %s2048_s16 }
 0x503   : > { %v607_v31 = vpop.xlane.xlu1 %606 }
 0x507   : > { %v601_v34 = vpop.xlane.xlu1 %600 }
 0x50b   : > { %v610_v35 = vpop.xlane.xlu0 %609  ;;  %v745_v56 = vpop.permute.xlu1 %744 }
 0x50c   : > { %1950 = vrcp.f32 %v610_v35 }
 0x50d   : > { %1952 = vrcp.f32 %v601_v34 }
 0x50e   : > { %1954 = vrcp.f32 %v607_v31 }
 0x50f   : > { %v604_v38 = vpop.xlane.xlu0 %603 }
 0x510   : > { %1956 = vrcp.f32 %v604_v38 }
 0x513   : > { %v619_v39 = vpop.xlane.xlu0 %618 }
 0x516   : > { %v1951_v40 = vpop.eup %1950 }
 0x517   : > { %v613_v41 = vpop.xlane.xlu0 %612  ;;  %v1953_v42 = vpop.eup %1952  ;;  %v634_v45 = vmul.f32 %v1951_v40, %v1939_v16 }
 0x518   : > { %v1955_v43 = vpop.eup %1954  ;;  %v631_v47 = vmul.f32 %v1953_v42, %v2242_v60 }
 0x519   : > { %v633_v49 = vmul.f32 %v1955_v43, %v2238_v54  ;;  %v767_v54 = vsel %vm154_vm0, %v745_v56, 0 }
 0x51a   : > { %v1957_v44 = vpop.eup %1956 }
 0x51b   : > { %v622_v46 = vpop.xlane.xlu0 %621  ;;  %v632_v48 = vmul.f32 %v1957_v44, %v1941_v20  ;;  %v640_v51 = vpack.c.bf16 %v634_v45, %v633_v49 }
 0x51c   : > { %1958 = vrcp.f32 %v622_v46 }
 0x51d   : > { %v639_v50 = vpack.c.bf16 %v632_v48, %v631_v47  ;;  %1960 = vrcp.f32 %v613_v41 }
 0x51e   : > { %1962 = vrcp.f32 %v619_v39 }
 0x51f   : > { %1727 = vmatprep.mubr.msk.bf16.mxu0 %vm252_vm1, %v639_v50  ;;  %v743_v52 = vpop.permute.xlu0 %742 }
 0x520   : > { %1728 = vmatmul.mubr.msk.bf16.vlgmr.msra.gmra.mrb[8].mxu0 %vm252_vm1, %v640_v51  ;;  %v764_v55 = vsel %vm154_vm0, %v743_v52, 0 }
 0x521   : > { %1736 = vmatpush3.bf16.xpose.msra.mxu0 %v761_v53 }
 0x522   : > { %1808 = vmatprep.subr.msk.bf16.mxu0 %vm154_vm0, %v743_v52 }
 0x523   : > { %v733_v20 = vpop.permute.xlu0 %732 }
 0x526   : > { %v1959_v60 = vpop.eup %1958 }
 0x527   : > { %v1961_v61 = vpop.eup %1960  ;;  %v638_v14 = vmul.f32 %v1959_v60, %v2257_v27  ;;  %v737_v22 = vpop.permute.xlu0 %736 }
 0x528   : > { %v1963_v12 = vpop.eup %1962  ;;  %v635_v15 = vmul.f32 %v1961_v61, %v2253_v25 }
 0x529   : > { %1738 = vmatpush3.bf16.xpose.msra.mxu0 %v764_v55  ;;  %v637_v17 = vmul.f32 %v1963_v12, %v2248_v23 }
 0x52a   : > { %1809 = vmatprep.subr.msk.bf16.mxu0 %vm154_vm0, %v745_v56 }
 0x52b   : > { %v642_v19 = vpack.c.bf16 %v638_v14, %v637_v17 }
 0x531   : > { %1740 = vmatpush3.bf16.xpose.msra.mxu0 %v767_v54 }
 0x53c   : > { %v616_v57 = vpop.xlane.xlu1 %615 }
 0x53d   : > { %1964 = vrcp.f32 %v616_v57 }
 0x540   : > { %v747_v58 = vpop.permute.xlu1 %746 }
 0x541   : > { %v770_v59 = vsel %vm154_vm0, %v747_v58, 0  ;;  %1810 = vmatprep.subr.msk.bf16.mxu0 %vm154_vm0, %v747_v58 }
 0x542   : > { %1742 = vmatpush3.bf16.xpose.msra.mxu0 %v770_v59 }
 0x544   : > { %v735_v21 = vpop.permute.xlu1 %734 }
 0x547   : > { %v1965_v13 = vpop.eup %1964 }
 0x548   : > { %v636_v16 = vmul.f32 %v1965_v13, %v1949_v32  ;;  %v739_v24 = vpop.permute.xlu1 %738 }
 0x54a   : > { %v641_v18 = vpack.c.bf16 %v636_v16, %v635_v15 }
 0x54c   : > { %1731 = vmatprep.mubr.msk.bf16.mxu0 %vm252_vm1, %v641_v18 }
 0x54d   : > { %1732 = vmatmul.mubr.msk.bf16.gmra.mrb[12].mxu0 %vm252_vm1, %v642_v19 }
 0x54e   : > { %1743 = vmatprep.mubr.msk.bf16.mxu0 %vm154_vm0, %v733_v20 }
 0x555   : > { %1744 = vmatmul.mubr.msk.bf16.vlgmr.msra.gmra.mrb[16].mxu0 %vm154_vm0, %v735_v21 }
 0x556   : > { %1747 = vmatprep.mubr.msk.bf16.mxu0 %vm154_vm0, %v737_v22 }
 0x55d   : > { %1748 = vmatmul.mubr.msk.bf16.gmra.mrb[20].mxu0 %vm154_vm0, %v739_v24 }
 0x5f3   : > { %v2297_v25 = vpop.f32.mrb[8].mxu0 }
 0x5f4   : > { %v2299_v23 = vpop.f32.mrb[9].mxu0 }
 0x5f5   : > { %v2301_v26 = vpop.f32.mrb[10].mxu0 }
 0x5f6   : > { %v1835_v27 = vpack.i.bf16 %v2301_v26, %v2297_v25  ;;  %v2305_v28 = vpop.f32.mrb[11].mxu0 }
 0x5f7   : > { %v1830_v29 = vpack.i.bf16 %v2305_v28, %v2299_v23 }
 0x620   : > { %v2309_v30 = vpop.f32.mrb[12].mxu0 }
 0x621   : > { %v2311_v32 = vpop.f32.mrb[13].mxu0 }
 0x622   : > { %v2313_v33 = vpop.f32.mrb[14].mxu0 }
 0x623   : > { %v1845_v31 = vpack.i.bf16 %v2313_v33, %v2309_v30  ;;  %v2317_v34 = vpop.f32.mrb[15].mxu0 }
 0x624   : > { %v1840_v35 = vpack.i.bf16 %v2317_v34, %v2311_v32 }
 0x628   : > { %v1745_v38 = vpop.f32.mrb[16].mxu0 }
 0x629   : > { %v839_v39 = vmul.f32 0.25, %v1745_v38  ;;  %v806_v40 = vpop.f32.mrb[17].mxu0 }
 0x62a   : > { %v1746_v41 = vpop.f32.mrb[18].mxu0  ;;  %v837_v42 = vmul.f32 0.25, %v806_v40 }
 0x62b   : > { %v809_v43 = vpop.f32.mrb[19].mxu0  ;;  %v851_v44 = vsel %vm252_vm1, %v839_v39, -inf  ;;  %v840_v47 = vmul.f32 0.25, %v1746_v41 }
 0x62c   : > { %v838_v45 = vmul.f32 0.25, %v809_v43  ;;  %852 = vmax.xlane.f32.xlu0 %v851_v44  ;;  %v845_v48 = vsel %vm252_vm1, %v837_v42, -inf }
 0x62d   : > { %v854_v55 = vsel %vm252_vm1, %v840_v47, -inf }
 0x62e   : > { %v848_v46 = vsel %vm252_vm1, %v838_v45, -inf }
 0x62f   : > { %849 = vmax.xlane.f32.xlu1 %v848_v46 }
 0x630   : > { %846 = vmax.xlane.f32.xlu0 %v845_v48  ;;  %v1749_v49 = vpop.f32.mrb[20].mxu0 }
 0x631   : > { %v843_v50 = vmul.f32 0.25, %v1749_v49  ;;  %v822_v51 = vpop.f32.mrb[21].mxu0 }
 0x632   : > { %v841_v52 = vmul.f32 0.25, %v822_v51  ;;  %v1750_v53 = vpop.f32.mrb[22].mxu0 }
 0x633   : > { %v863_v56 = vsel %vm252_vm1, %v843_v50, -inf  ;;  %v825_v54 = vpop.f32.mrb[23].mxu0  ;;  %v844_v58 = vmul.f32 0.25, %v1750_v53 }
 0x634   : > { %855 = vmax.xlane.f32.xlu0 %v854_v55  ;;  %864 = vmax.xlane.f32.xlu1 %v863_v56  ;;  %v2326_v57 = vmul.f32 0.25, %v825_v54  ;;  %v857_v59 = vsel %vm252_vm1, %v841_v52, -inf }
 0x635   : > { %v866_v61 = vsel %vm252_vm1, %v844_v58, -inf }
 0x636   : > { %v860_v60 = vsel %vm252_vm1, %v2326_v57, -inf }
 0x638   : > { %858 = vmax.xlane.f32.xlu1 %v857_v59  ;;  %861 = vmax.xlane.f32.xlu0 %v860_v60 }
 0x63c   : > { %867 = vmax.xlane.f32.xlu0 %v866_v61 }
 0x649   : > { %937 = vrot.lane.b32.xlu1 %v2124_v36, %s2048_s16 }
 0x64d   : > { %941 = vrot.lane.b32.xlu1 %v2150_v7, %s2048_s16 }
 0x651   : > { %943 = vrot.lane.b32.xlu1 %v2157_v9, %s2048_s16 }
 0x652   : > { %939 = vrot.lane.b32.xlu0 %v2127_v37, %s2048_s16 }
 0x655   : > { %1034 = vrot.lane.b32.xlu1 %v2078_v0, %s2049_s17 }
 0x6b9   : > { %v853_v12 = vpop.xlane.xlu0 %852 }
 0x6ba   : > { %v871_v13 = vsub.f32 %v839_v39, %v853_v12 }
 0x6bc   : > { %v881_v14 = vmul.f32 1.442695, %v871_v13  ;;  %v850_v15 = vpop.xlane.xlu1 %849 }
 0x6bd   : > { %v847_v16 = vpop.xlane.xlu0 %846  ;;  %v870_v18 = vsub.f32 %v838_v45, %v850_v15  ;;  %v2030_v15 = vld [vmem:[%s2075_s11] ss:$8 sps:$4 sm:$0xff]  }
 0x6be   : > { %1966 = vpow2.f32 %v881_v14  ;;  %v869_v36 = vsub.f32 %v837_v42, %v847_v16 }
 0x6bf   : > { %v879_v21 = vmul.f32 1.442695, %v870_v18 }
 0x6c0   : > { %v877_v17 = vmul.f32 1.442695, %v869_v36 }
 0x6c1   : > { %v865_v7 = vpop.xlane.xlu1 %864  ;;  %v856_v19 = vpop.xlane.xlu0 %855 }
 0x6c2   : > { %1968 = vpow2.f32 %v877_v17  ;;  %v872_v9 = vsub.f32 %v840_v47, %v856_v19  ;;  %v875_v37 = vsub.f32 %v843_v50, %v865_v7 }
 0x6c4   : > { %v883_v20 = vmul.f32 1.442695, %v872_v9  ;;  %v889_v38 = vmul.f32 1.442695, %v875_v37 }
 0x6c5   : > { %v859_v22 = vpop.xlane.xlu1 %858  ;;  %v862_v24 = vpop.xlane.xlu0 %861 }
 0x6c6   : > { %1970 = vpow2.f32 %v883_v20  ;;  %v873_v39 = vsub.f32 %v841_v52, %v859_v22  ;;  %v874_v13 = vsub.f32 %v2326_v57, %v862_v24  ;;  %v2031_v57 = vld [vmem:[%s2075_s11 + $0x10] ss:$8 sps:$4 sm:$0xff]  }
 0x6c7   : > { %1972 = vpow2.f32 %v879_v21 }
 0x6c8   : > { %v2342_v0 = vpop.eup %1966  ;;  %1974 = vpow2.f32 %v889_v38  ;;  %v885_v44 = vmul.f32 1.442695, %v873_v39  ;;  %v887_v14 = vmul.f32 1.442695, %v874_v13 }
 0x6c9   : > { %v868_v40 = vpop.xlane.xlu0 %867  ;;  %v899_v41 = vsel %vm252_vm1, %v2342_v0, 0.0  ;;  %v938_v42 = vpop.permute.xlu1 %937 }
 0x6ca   : > { %900 = vadd.xlane.f32.xlu1 %v899_v41  ;;  %1751 = vmatprep.subr.bf16.mxu1 %v938_v42  ;;  %v876_v45 = vsub.f32 %v844_v58, %v868_v40  ;;  %1976 = vpow2.f32 %v885_v44 }
 0x6cb   : > { %1752 = vmatpush3.bf16.msra.mxu1 %v938_v42 }
 0x6cc   : > { %v2346_v43 = vpop.eup %1968  ;;  %v891_v50 = vmul.f32 1.442695, %v876_v45 }
 0x6cd   : > { %v893_v46 = vsel %vm252_vm1, %v2346_v43, 0.0  ;;  %v940_v47 = vpop.permute.xlu0 %939  ;;  %v942_v48 = vpop.permute.xlu1 %941 }
 0x6ce   : > { %894 = vadd.xlane.f32.xlu1 %v893_v46  ;;  %1753 = vmatprep.subr.bf16.mxu1 %v940_v47  ;;  %1978 = vpow2.f32 %v891_v50 }
 0x6cf   : > { %1754 = vmatpush3.bf16.msra.mxu1 %v940_v47  ;;  %1980 = vpow2.f32 %v887_v14 }
 0x6d0   : > { %1755 = vmatprep.subr.bf16.mxu1 %v942_v48  ;;  %v1971_v49 = vpop.eup %1970 }
 0x6d1   : > { %v944_v51 = vpop.permute.xlu1 %943  ;;  %v902_v52 = vsel %vm252_vm1, %v1971_v49, 0.0  ;;  %v1973_v53 = vpop.eup %1972 }
 0x6d2   : > { %903 = vadd.xlane.f32.xlu0 %v902_v52  ;;  %v896_v56 = vsel %vm252_vm1, %v1973_v53, 0.0  ;;  %v2352_v54 = vpop.eup %1974 }
 0x6d3   : > { %1756 = vmatpush3.bf16.msra.mxu1 %v942_v48  ;;  %v911_v58 = vsel %vm252_vm1, %v2352_v54, 0.0 }
 0x6d4   : > { %1757 = vmatprep.subr.bf16.mxu1 %v944_v51  ;;  %v2357_v59 = vpop.eup %1976 }
 0x6d5   : > { %v1035_v55 = vpop.permute.xlu1 %1034  ;;  %v905_v60 = vsel %vm252_vm1, %v2357_v59, 0.0 }
 0x6d6   : > { %897 = vadd.xlane.f32.xlu0 %v896_v56  ;;  %v1055_v44 = vsel %vm154_vm0, %v1035_v55, 0 }
 0x6d7   : > { %1758 = vmatpush3.bf16.msra.mxu1 %v944_v51 }
 0x6d8   : > { %1811 = vmatprep.subr.msk.bf16.mxu1 %vm154_vm0, %v1035_v55  ;;  %v2361_v61 = vpop.eup %1978 }
 0x6d9   : > { %v914_v12 = vsel %vm252_vm1, %v2361_v61, 0.0  ;;  %v1981_v16 = vpop.eup %1980 }
 0x6da   : > { %912 = vadd.xlane.f32.xlu0 %v911_v58  ;;  %v908_v36 = vsel %vm252_vm1, %v1981_v16, 0.0 }
 0x6de   : > { %906 = vadd.xlane.f32.xlu0 %v905_v60 }
 0x6df   : > { %1038 = vrot.lane.b32.xlu1 %v2085_v2, %s2049_s17 }
 0x6e2   : > { %915 = vadd.xlane.f32.xlu0 %v914_v12 }
 0x6f8   : > { %1036 = vrot.lane.b32.xlu0 %v2081_v1, %s2049_s17 }
 0x6fc   : > { %1026 = vrot.lane.b32.xlu0 %v2030_v15, %s2050_s18 }
 0x700   : > { %1030 = vrot.lane.b32.xlu0 %v2085_v2, %s2050_s18 }
 0x703   : > { %909 = vadd.xlane.f32.xlu1 %v908_v36 }
 0x714   : > { %1040 = vrot.lane.b32.xlu1 %v2091_v3, %s2049_s17 }
 0x718   : > { %1028 = vrot.lane.b32.xlu1 %v2031_v57, %s2050_s18 }
 0x71c   : > { %1032 = vrot.lane.b32.xlu1 %v2091_v3, %s2050_s18 }
 0x757   : > { %v901_v1 = vpop.xlane.xlu1 %900 }
 0x75b   : > { %v895_v17 = vpop.xlane.xlu1 %894 }
 0x75f   : > { %v904_v18 = vpop.xlane.xlu0 %903  ;;  %v1039_v46 = vpop.permute.xlu1 %1038 }
 0x760   : > { %1982 = vrcp.f32 %v904_v18 }
 0x761   : > { %1984 = vrcp.f32 %v895_v17 }
 0x762   : > { %1986 = vrcp.f32 %v901_v1 }
 0x763   : > { %v898_v7 = vpop.xlane.xlu0 %897 }
 0x764   : > { %1988 = vrcp.f32 %v898_v7 }
 0x767   : > { %v913_v2 = vpop.xlane.xlu0 %912 }
 0x76a   : > { %v1983_v19 = vpop.eup %1982 }
 0x76b   : > { %v907_v9 = vpop.xlane.xlu0 %906  ;;  %v1985_v20 = vpop.eup %1984  ;;  %v928_v22 = vmul.f32 %v1983_v19, %v1971_v49 }
 0x76c   : > { %v1987_v21 = vpop.eup %1986  ;;  %v925_v38 = vmul.f32 %v1985_v20, %v2346_v43 }
 0x76d   : > { %v927_v3 = vmul.f32 %v1987_v21, %v2342_v0  ;;  %v1061_v0 = vsel %vm154_vm0, %v1039_v46, 0 }
 0x76e   : > { %v1989_v37 = vpop.eup %1988 }
 0x76f   : > { %v916_v24 = vpop.xlane.xlu0 %915  ;;  %v926_v39 = vmul.f32 %v1989_v37, %v1973_v53  ;;  %v934_v41 = vpack.c.bf16 %v928_v22, %v927_v3 }
 0x770   : > { %1990 = vrcp.f32 %v916_v24 }
 0x771   : > { %v933_v40 = vpack.c.bf16 %v926_v39, %v925_v38  ;;  %1992 = vrcp.f32 %v907_v9 }
 0x772   : > { %1994 = vrcp.f32 %v913_v2 }
 0x773   : > { %1759 = vmatprep.mubr.msk.bf16.mxu1 %vm252_vm1, %v933_v40  ;;  %v1037_v42 = vpop.permute.xlu0 %1036 }
 0x774   : > { %1760 = vmatmul.mubr.msk.bf16.vlgmr.msra.gmra.mrb[16].mxu1 %vm252_vm1, %v934_v41  ;;  %v1058_v45 = vsel %vm154_vm0, %v1037_v42, 0 }
 0x775   : > { %1768 = vmatpush3.bf16.xpose.msra.mxu1 %v1055_v44 }
 0x776   : > { %1812 = vmatprep.subr.msk.bf16.mxu1 %vm154_vm0, %v1037_v42 }
 0x777   : > { %v1027_v13 = vpop.permute.xlu0 %1026 }
 0x77a   : > { %v1991_v49 = vpop.eup %1990 }
 0x77b   : > { %v1993_v50 = vpop.eup %1992  ;;  %v932_v53 = vmul.f32 %v1991_v49, %v2361_v61  ;;  %v1031_v15 = vpop.permute.xlu0 %1030 }
 0x77c   : > { %v1995_v51 = vpop.eup %1994  ;;  %v929_v55 = vmul.f32 %v1993_v50, %v2357_v59 }
 0x77d   : > { %1770 = vmatpush3.bf16.xpose.msra.mxu1 %v1058_v45  ;;  %v931_v58 = vmul.f32 %v1995_v51, %v2352_v54 }
 0x77e   : > { %1813 = vmatprep.subr.msk.bf16.mxu1 %vm154_vm0, %v1039_v46 }
 0x77f   : > { %v936_v12 = vpack.c.bf16 %v932_v53, %v931_v58 }
 0x785   : > { %1772 = vmatpush3.bf16.xpose.msra.mxu1 %v1061_v0 }
 0x790   : > { %v910_v43 = vpop.xlane.xlu1 %909 }
 0x791   : > { %1996 = vrcp.f32 %v910_v43 }
 0x794   : > { %v1041_v47 = vpop.permute.xlu1 %1040 }
 0x795   : > { %v1064_v48 = vsel %vm154_vm0, %v1041_v47, 0  ;;  %1814 = vmatprep.subr.msk.bf16.mxu1 %vm154_vm0, %v1041_v47 }
 0x796   : > { %1774 = vmatpush3.bf16.xpose.msra.mxu1 %v1064_v48 }
 0x798   : > { %v1029_v14 = vpop.permute.xlu1 %1028 }
 0x79b   : > { %v1997_v52 = vpop.eup %1996 }
 0x79c   : > { %v930_v56 = vmul.f32 %v1997_v52, %v1981_v16  ;;  %v1033_v61 = vpop.permute.xlu1 %1032 }
 0x79e   : > { %v935_v60 = vpack.c.bf16 %v930_v56, %v929_v55  ;;  %v2032_v56 = vld [vmem:[%s2075_s11 + $0x4] ss:$8 sps:$4 sm:$0xff]  }
 0x7a0   : > { %1763 = vmatprep.mubr.msk.bf16.mxu1 %vm252_vm1, %v935_v60 }
 0x7a1   : > { %1764 = vmatmul.mubr.msk.bf16.gmra.mrb[20].mxu1 %vm252_vm1, %v936_v12 }
 0x7a2   : > { %1775 = vmatprep.mubr.msk.bf16.mxu1 %vm154_vm0, %v1027_v13 }
 0x7a9   : > { %1776 = vmatmul.mubr.msk.bf16.vlgmr.msra.gmra.mrb[24].mxu1 %vm154_vm0, %v1029_v14 }
 0x7aa   : > { %1779 = vmatprep.mubr.msk.bf16.mxu1 %vm154_vm0, %v1031_v15 }
 0x7b1   : > { %1780 = vmatmul.mubr.msk.bf16.gmra.mrb[28].mxu1 %vm154_vm0, %v1033_v61 }
 0x847   : > { %v2401_v59 = vpop.f32.mrb[16].mxu1 }
 0x848   : > { %v2403_v54 = vpop.f32.mrb[17].mxu1 }
 0x849   : > { %v2405_v16 = vpop.f32.mrb[18].mxu1 }
 0x84a   : > { %v1855_v36 = vpack.i.bf16 %v2405_v16, %v2401_v59  ;;  %v2409_v57 = vpop.f32.mrb[19].mxu1 }
 0x84b   : > { %v1850_v1 = vpack.i.bf16 %v2409_v57, %v2403_v54 }
 0x874   : > { %v2413_v17 = vpop.f32.mrb[20].mxu1 }
 0x875   : > { %v2415_v18 = vpop.f32.mrb[21].mxu1 }
 0x876   : > { %v2417_v7 = vpop.f32.mrb[22].mxu1 }
 0x877   : > { %v1865_v2 = vpack.i.bf16 %v2417_v7, %v2413_v17  ;;  %v2421_v19 = vpop.f32.mrb[23].mxu1 }
 0x878   : > { %v1860_v9 = vpack.i.bf16 %v2421_v19, %v2415_v18 }
 0x87c   : > { %v1777_v20 = vpop.f32.mrb[24].mxu1 }
 0x87d   : > { %v1100_v21 = vpop.f32.mrb[25].mxu1  ;;  %v1133_v38 = vmul.f32 0.25, %v1777_v20 }
 0x87e   : > { %v1131_v37 = vmul.f32 0.25, %v1100_v21  ;;  %v1778_v22 = vpop.f32.mrb[26].mxu1 }
 0x87f   : > { %v1103_v24 = vpop.f32.mrb[27].mxu1  ;;  %v1134_v41 = vmul.f32 0.25, %v1778_v22  ;;  %v1145_v44 = vsel %vm252_vm1, %v1133_v38, -inf }
 0x880   : > { %v1132_v39 = vmul.f32 0.25, %v1103_v24  ;;  %v1139_v3 = vsel %vm252_vm1, %v1131_v37, -inf }
 0x881   : > { %1140 = vmax.xlane.f32.xlu0 %v1139_v3  ;;  %v1148_v49 = vsel %vm252_vm1, %v1134_v41, -inf }
 0x882   : > { %v1142_v40 = vsel %vm252_vm1, %v1132_v39, -inf }
 0x883   : > { %1143 = vmax.xlane.f32.xlu1 %v1142_v40 }
 0x884   : > { %v1781_v42 = vpop.f32.mrb[28].mxu1 }
 0x885   : > { %1146 = vmax.xlane.f32.xlu0 %v1145_v44  ;;  %v1116_v45 = vpop.f32.mrb[29].mxu1  ;;  %v1137_v47 = vmul.f32 0.25, %v1781_v42 }
 0x886   : > { %v1135_v46 = vmul.f32 0.25, %v1116_v45  ;;  %v1782_v0 = vpop.f32.mrb[30].mxu1 }
 0x887   : > { %v1119_v43 = vpop.f32.mrb[31].mxu1  ;;  %v1138_v51 = vmul.f32 0.25, %v1782_v0  ;;  %v1157_v52 = vsel %vm252_vm1, %v1137_v47, -inf }
 0x888   : > { %v1136_v48 = vmul.f32 0.25, %v1119_v43  ;;  %v1151_v50 = vsel %vm252_vm1, %v1135_v46, -inf }
 0x889   : > { %1149 = vmax.xlane.f32.xlu0 %v1148_v49  ;;  %1152 = vmax.xlane.f32.xlu1 %v1151_v50  ;;  %v1160_v55 = vsel %vm252_vm1, %v1138_v51, -inf }
 0x88a   : > { %v1154_v53 = vsel %vm252_vm1, %v1136_v48, -inf }
 0x88d   : > { %1158 = vmax.xlane.f32.xlu1 %v1157_v52  ;;  %1155 = vmax.xlane.f32.xlu0 %v1154_v53 }
 0x891   : > { %1161 = vmax.xlane.f32.xlu0 %v1160_v55 }
 0x89e   : > { %1231 = vrot.lane.b32.xlu1 %v2032_v56, %s2050_s18 }
 0x90e   : > { %v1141_v58 = vpop.xlane.xlu0 %1140 }
 0x90f   : > { %v1163_v60 = vsub.f32 %v1131_v37, %v1141_v58 }
 0x910   : > { %v1144_v12 = vpop.xlane.xlu1 %1143 }
 0x911   : > { %v1171_v15 = vmul.f32 1.442695, %v1163_v60  ;;  %v1164_v20 = vsub.f32 %v1132_v39, %v1144_v12 }
 0x912   : > { %v1147_v13 = vpop.xlane.xlu0 %1146 }
 0x913   : > { %v1165_v14 = vsub.f32 %v1133_v38, %v1147_v13  ;;  %v1173_v42 = vmul.f32 1.442695, %v1164_v20 }
 0x915   : > { %v1175_v61 = vmul.f32 1.442695, %v1165_v14 }
 0x916   : > { %v1153_v21 = vpop.xlane.xlu1 %1152  ;;  %v1150_v22 = vpop.xlane.xlu0 %1149 }
 0x917   : > { %1998 = vpow2.f32 %v1175_v61  ;;  %v1166_v24 = vsub.f32 %v1134_v41, %v1150_v22  ;;  %v1167_v3 = vsub.f32 %v1135_v46, %v1153_v21  ;;  %v2033_v22 = vld [vmem:[%s2075_s11 + $0x24] ss:$8 sps:$4 sm:$0xff]  }
 0x918   : > { %2000 = vpow2.f32 %v1171_v15 }
 0x919   : > { %v1177_v40 = vmul.f32 1.442695, %v1166_v24  ;;  %v1179_v43 = vmul.f32 1.442695, %v1167_v3  ;;  %v2034_v24 = vld [vmem:[%s2075_s11 + $0x34] ss:$8 sps:$4 sm:$0xff]  }
 0x91a   : > { %v1159_v44 = vpop.xlane.xlu1 %1158  ;;  %v1156_v45 = vpop.xlane.xlu0 %1155  ;;  %v2035_v3 = vld [vmem:[%s2075_s11 + $0x14] ss:$8 sps:$4 sm:$0xff]  }
 0x91b   : > { %v1169_v0 = vsub.f32 %v1137_v47, %v1159_v44  ;;  %2002 = vpow2.f32 %v1177_v40  ;;  %v1168_v49 = vsub.f32 %v1136_v48, %v1156_v45 }
 0x91c   : > { %2004 = vpow2.f32 %v1173_v42 }
 0x91d   : > { %v1183_v37 = vmul.f32 1.442695, %v1169_v0  ;;  %v1181_v46 = vmul.f32 1.442695, %v1168_v49 }
 0x91e   : > { %v1162_v38 = vpop.xlane.xlu0 %1161  ;;  %v1232_v50 = vpop.permute.xlu1 %1231 }
 0x91f   : > { %2006 = vpow2.f32 %v1183_v37  ;;  %v1170_v39 = vsub.f32 %v1138_v51, %v1162_v38  ;;  %1783 = vmatprep.subr.bf16.mxu0 %v1232_v50 }
 0x920   : > { %1784 = vmatpush3.bf16.msra.mxu0 %v1232_v50  ;;  %2008 = vpow2.f32 %v1179_v43 }
 0x921   : > { %v2435_v52 = vpop.eup %1998  ;;  %v1185_v41 = vmul.f32 1.442695, %v1170_v39 }
 0x922   : > { %v1193_v53 = vsel %vm252_vm1, %v2435_v52, 0.0  ;;  %v2001_v47 = vpop.eup %2000 }
 0x923   : > { %2010 = vpow2.f32 %v1185_v41  ;;  %1194 = vadd.xlane.f32.xlu1 %v1193_v53  ;;  %v1187_v48 = vsel %vm252_vm1, %v2001_v47, 0.0 }
 0x924   : > { %2012 = vpow2.f32 %v1181_v46 }
 0x925   : > { %v2439_v55 = vpop.eup %2002 }
 0x926   : > { %v1196_v51 = vsel %vm252_vm1, %v2439_v55, 0.0  ;;  %v2005_v56 = vpop.eup %2004 }
 0x927   : > { %1188 = vadd.xlane.f32.xlu1 %v1187_v48  ;;  %1197 = vadd.xlane.f32.xlu0 %v1196_v51  ;;  %v1190_v13 = vsel %vm252_vm1, %v2005_v56, 0.0 }
 0x929   : > { %v2444_v58 = vpop.eup %2006 }
 0x92a   : > { %v1205_v60 = vsel %vm252_vm1, %v2444_v58, 0.0  ;;  %v2448_v12 = vpop.eup %2008 }
 0x92b   : > { %1206 = vadd.xlane.f32.xlu1 %v1205_v60  ;;  %1191 = vadd.xlane.f32.xlu0 %v1190_v13  ;;  %v1199_v15 = vsel %vm252_vm1, %v2448_v12, 0.0 }
 0x92d   : > { %v2451_v14 = vpop.eup %2010 }
 0x92e   : > { %v1208_v61 = vsel %vm252_vm1, %v2451_v14, 0.0  ;;  %v2013_v20 = vpop.eup %2012 }
 0x92f   : > { %1200 = vadd.xlane.f32.xlu1 %v1199_v15  ;;  %1209 = vadd.xlane.f32.xlu0 %v1208_v61  ;;  %v1202_v21 = vsel %vm252_vm1, %v2013_v20, 0.0 }
 0x933   : > { %1203 = vadd.xlane.f32.xlu0 %v1202_v21 }
 0x940   : > { %1235 = vrot.lane.b32.xlu1 %v2033_v22, %s2050_s18 }
 0x944   : > { %1237 = vrot.lane.b32.xlu1 %v2034_v24, %s2050_s18 }
 0x948   : > { %1836 = vrot.lane.b32.xlu1 %v1835_v27, %s2049_s17 }
 0x949   : > { %1233 = vrot.lane.b32.xlu0 %v2035_v3, %s2050_s18 }
 0x94c   : > { %1846 = vrot.lane.b32.xlu1 %v1845_v31, %s2049_s17 }
 0x94d   : > { %1831 = vrot.lane.b32.xlu0 %v1830_v29, %s2049_s17 }
 0x950   : > { %1856 = vrot.lane.b32.xlu1 %v1855_v36, %s2047_s15 }
 0x951   : > { %1841 = vrot.lane.b32.xlu0 %v1840_v35, %s2049_s17 }
 0x954   : > { %1866 = vrot.lane.b32.xlu1 %v1865_v2, %s2047_s15 }
 0x955   : > { %1851 = vrot.lane.b32.xlu0 %v1850_v1, %s2047_s15 }
 0x959   : > { %1861 = vrot.lane.b32.xlu0 %v1860_v9, %s2047_s15 }
 0x9b0   : > { %v1195_v25 = vpop.xlane.xlu1 %1194 }
 0x9b4   : > { %v1189_v23 = vpop.xlane.xlu1 %1188  ;;  %v1198_v26 = vpop.xlane.xlu0 %1197 }
 0x9b5   : > { %2014 = vrcp.f32 %v1189_v23 }
 0x9b8   : > { %v1207_v27 = vpop.xlane.xlu1 %1206  ;;  %v1192_v28 = vpop.xlane.xlu0 %1191 }
 0x9b9   : > { %2016 = vrcp.f32 %v1192_v28 }
 0x9ba   : > { %2018 = vrcp.f32 %v1198_v26 }
 0x9bb   : > { %2020 = vrcp.f32 %v1195_v25 }
 0x9bc   : > { %v1210_v29 = vpop.xlane.xlu0 %1209  ;;  %v1201_v30 = vpop.xlane.xlu1 %1200 }
 0x9bd   : > { %2022 = vrcp.f32 %v1201_v30 }
 0x9bf   : > { %v2015_v33 = vpop.eup %2014 }
 0x9c0   : > { %v1204_v32 = vpop.xlane.xlu0 %1203  ;;  %v1236_v34 = vpop.permute.xlu1 %1235  ;;  %v1219_v59 = vmul.f32 %v2015_v33, %v2001_v47 }
 0x9c1   : > { %2024 = vrcp.f32 %v1204_v32 }
 0x9c2   : > { %2026 = vrcp.f32 %v1210_v29 }
 0x9c3   : > { %v2017_v31 = vpop.eup %2016  ;;  %2028 = vrcp.f32 %v1207_v27 }
 0x9c4   : > { %v1234_v35 = vpop.permute.xlu0 %1233  ;;  %v1220_v54 = vmul.f32 %v2017_v31, %v2005_v56  ;;  %v2019_v36 = vpop.eup %2018 }
 0x9c5   : > { %1785 = vmatprep.subr.bf16.mxu0 %v1234_v35  ;;  %v2021_v57 = vpop.eup %2020  ;;  %v1238_v17 = vpop.permute.xlu1 %1237  ;;  %v1222_v7 = vmul.f32 %v2019_v36, %v2439_v55 }
 0x9c6   : > { %1786 = vmatpush3.bf16.msra.mxu0 %v1234_v35  ;;  %v1227_v16 = vpack.c.bf16 %v1220_v54, %v1219_v59  ;;  %v1221_v19 = vmul.f32 %v2021_v57, %v2435_v52 }
 0x9c7   : > { %1787 = vmatprep.subr.bf16.mxu0 %v1236_v34  ;;  %v2023_v1 = vpop.eup %2022 }
 0x9c8   : > { %1791 = vmatprep.mubr.msk.bf16.mxu0 %vm252_vm1, %v1227_v16  ;;  %v1223_v9 = vmul.f32 %v2023_v1, %v2448_v12  ;;  %v1228_v40 = vpack.c.bf16 %v1222_v7, %v1221_v19 }
 0x9c9   : > { %v1837_v56 = vpop.permute.xlu1 %1836 }
 0x9ca   : > { %1788 = vmatpush3.bf16.msra.mxu0 %v1236_v34  ;;  %v1839_v15 = vunpack.i.h.bf16 %v1837_v56  ;;  %v1838_v61 = vunpack.i.l.bf16 %v1837_v56 }
 0x9cb   : > { %v2025_v18 = vpop.eup %2024  ;;  %1789 = vmatprep.subr.bf16.mxu0 %v1238_v17 }
 0x9cc   : > { %v1224_v2 = vmul.f32 %v2025_v18, %v2013_v20  ;;  %v2027_v42 = vpop.eup %2026  ;;  %v1419_v26 = vsel %vm154_vm0, %v2205_v4, %v1839_v15  ;;  %v1418_v27 = vsel %vm154_vm0, %v2201_v62, %v1838_v61 }
 0x9cd   : > { %v2029_v45 = vpop.eup %2028  ;;  %v1226_v0 = vmul.f32 %v2027_v42, %v2451_v14  ;;  %v1847_v60 = vpop.permute.xlu1 %1846 }
 0x9ce   : > { %1790 = vmatpush3.bf16.msra.mxu0 %v1238_v17  ;;  %v1229_v44 = vpack.c.bf16 %v1224_v2, %v1223_v9  ;;  %v1225_v43 = vmul.f32 %v2029_v45, %v2444_v58  ;;  %v1832_v58 = vpop.permute.xlu0 %1831  ;;  %v1849_v32 = vunpack.i.h.bf16 %v1847_v60  ;;  %v1848_v31 = vunpack.i.l.bf16 %v1847_v60 }
 0x9cf   : > { %v1834_v20 = vunpack.i.h.bf16 %v1832_v58  ;;  %v1833_v21 = vunpack.i.l.bf16 %v1832_v58 }
 0x9d0   : > { %v1230_v37 = vpack.c.bf16 %v1226_v0, %v1225_v43  ;;  %v1423_v43 = vsel %vm154_vm0, %v2213_v10, %v1849_v32 }
 0x9d1   : > { %1792 = vmatmul.mubr.msk.bf16.vlgmr.msra.gmra.mrb[24].mxu0 %vm252_vm1, %v1228_v40  ;;  %v1857_v13 = vpop.permute.xlu1 %1856  ;;  %v1417_v29 = vsel %vm154_vm0, %v2207_v5, %v1834_v20  ;;  %v1416_v30 = vsel %vm154_vm0, %v2203_v63, %v1833_v21 }
 0x9d2   : > { %1795 = vmatprep.mubr.msk.bf16.mxu0 %vm252_vm1, %v1229_v44  ;;  %v1842_v12 = vpop.permute.xlu0 %1841  ;;  %v1858_v24 = vunpack.i.l.bf16 %v1857_v13  ;;  %v1859_v25 = vunpack.i.h.bf16 %v1857_v13 }
 0x9d3   : > { %v1844_v2 = vunpack.i.h.bf16 %v1842_v12  ;;  %v1843_v19 = vunpack.i.l.bf16 %v1842_v12 }
 0x9d4   : > { %v1427_v34 = vsel %vm1424_vm2, %v1418_v27, %v1858_v24  ;;  %v1428_v54 = vsel %vm1424_vm2, %v1419_v26, %v1859_v25 }
 0x9d5   : > { %v1867_v22 = vpop.permute.xlu1 %1866 }
 0x9d6   : > { %v1852_v14 = vpop.permute.xlu0 %1851  ;;  %v1869_v42 = vunpack.i.h.bf16 %v1867_v22  ;;  %v1868_v44 = vunpack.i.l.bf16 %v1867_v22 }
 0x9d7   : > { %v1853_v23 = vunpack.i.l.bf16 %v1852_v14  ;;  %v1854_v28 = vunpack.i.h.bf16 %v1852_v14 }
 0x9d8   : > { %v1432_v10 = vsel %vm1424_vm2, %v1423_v43, %v1869_v42 }
 0x9d9   : > { %1796 = vmatmul.mubr.msk.bf16.gmra.mrb[28].mxu0 %vm252_vm1, %v1230_v37  ;;  %v1425_v62 = vsel %vm1424_vm2, %v1416_v30, %v1853_v23  ;;  %v1426_v5 = vsel %vm1424_vm2, %v1417_v29, %v1854_v28  ;;  %v1422_v37 = vsel %vm154_vm0, %v2209_v6, %v1848_v31 }
 0x9da   : > { %v1862_v3 = vpop.permute.xlu0 %1861 }
 0x9db   : > { %v1864_v45 = vunpack.i.h.bf16 %v1862_v3  ;;  %v1863_v0 = vunpack.i.l.bf16 %v1862_v3 }
 0xaa4   : > { %v1793_v49 = vpop.f32.mrb[24].mxu0 }
 0xaa5   : > { %v1289_v38 = vpop.f32.mrb[25].mxu0 }
 0xaa6   : > { %v1794_v50 = vpop.f32.mrb[26].mxu0 }
 0xaa7   : > { %v1870_v39 = vpack.i.bf16 %v1794_v50, %v1793_v49  ;;  %v1292_v52 = vpop.f32.mrb[27].mxu0  ;;  %v1420_v50 = vsel %vm154_vm0, %v2211_v8, %v1843_v19 }
 0xaa8   : > { %v1875_v41 = vpack.i.bf16 %v1292_v52, %v1289_v38  ;;  %v1421_v38 = vsel %vm154_vm0, %v2215_v11, %v1844_v2 }
 0xaa9   : > { %1871 = vrot.lane.b32.xlu1 %v1870_v39, %s2045_s13  ;;  %v1430_v11 = vsel %vm1424_vm2, %v1421_v38, %v1864_v45 }
 0xaaa   : > { %1876 = vrot.lane.b32.xlu0 %v1875_v41, %s2045_s13 }
 0xaac   : > { %v1797_v46 = vpop.f32.mrb[28].mxu0 }
 0xaad   : > { %v1305_v53 = vpop.f32.mrb[29].mxu0 }
 0xaae   : > { %v1798_v47 = vpop.f32.mrb[30].mxu0 }
 0xaaf   : > { %v1885_v55 = vpack.i.bf16 %v1798_v47, %v1797_v46  ;;  %v1308_v48 = vpop.f32.mrb[31].mxu0  ;;  %v1431_v46 = vsel %vm1424_vm2, %v1422_v37, %v1868_v44  ;;  %v1429_v47 = vsel %vm1424_vm2, %v1420_v50, %v1863_v0 }
 0xab0   : > { %v1880_v51 = vpack.i.bf16 %v1308_v48, %v1305_v53 }
 0xab1   : > { %1886 = vrot.lane.b32.xlu1 %v1885_v55, %s2045_s13 }
 0xab2   : > { %1881 = vrot.lane.b32.xlu0 %v1880_v51, %s2045_s13 }
 0xb1b   : > { %v1872_v33 = vpop.permute.xlu1 %1871 }
 0xb1c   : > { %v1874_v35 = vunpack.i.h.bf16 %v1872_v33  ;;  %v1873_v59 = vunpack.i.l.bf16 %v1872_v33  ;;  %v1877_v4 = vpop.permute.xlu0 %1876 }
 0xb1d   : > { %v1879_v16 = vunpack.i.h.bf16 %v1877_v4  ;;  %v1878_v36 = vunpack.i.l.bf16 %v1877_v4 }
 0xb1e   : > { %v1437_v63 = vsel %vm1433_vm3, %v1428_v54, %v1874_v35  ;;  %v1436_v57 = vsel %vm1433_vm3, %v1427_v34, %v1873_v59 }
 0xb1f   : > { %v1602_v1 = vpack.c.bf16 %v1437_v63, %v1437_v63  ;;  %v1601_v17 = vpack.c.bf16 %v1436_v57, %v1436_v57  ;;  %v1434_v18 = vsel %vm1433_vm3, %v1425_v62, %v1878_v36  ;;  %v1435_v7 = vsel %vm1433_vm3, %v1426_v5, %v1879_v16 }
 0xb20   : > { %v1599_v9 = vpack.c.bf16 %v1434_v18, %v1434_v18  ;;  %v1600_v40 = vpack.c.bf16 %v1435_v7, %v1435_v7 }
 0xb21   : > { %1478 = vst.msk [vmem:[%s2525_s22 + $0xc] sm:$0xf] %vm1474_vm4, %v1602_v1  ;;  %1477 = vst.msk [vmem:[%s2525_s22 + $0x8] sm:$0xf] %vm1474_vm4, %v1601_v17 }
 0xb22   : > { %1475 = vst.msk [vmem:[%s2525_s22] sm:$0xf] %vm1474_vm4, %v1599_v9  ;;  %1476 = vst.msk [vmem:[%s2525_s22 + $0x4] sm:$0xf] %vm1474_vm4, %v1600_v40 }
 0xb23   : > { %v1887_v49 = vpop.permute.xlu1 %1886 }
 0xb24   : > { %v1889_v39 = vunpack.i.h.bf16 %v1887_v49  ;;  %v1888_v52 = vunpack.i.l.bf16 %v1887_v49  ;;  %v1882_v41 = vpop.permute.xlu0 %1881 }
 0xb25   : > { %v1884_v53 = vunpack.i.h.bf16 %v1882_v41  ;;  %v1883_v6 = vunpack.i.l.bf16 %v1882_v41 }
 0xb26   : > { %v1441_v55 = vsel %vm1433_vm3, %v1432_v10, %v1889_v39  ;;  %v1440_v8 = vsel %vm1433_vm3, %v1431_v46, %v1888_v52 }
 0xb27   : > { %v1606_v48 = vpack.c.bf16 %v1441_v55, %v1441_v55  ;;  %v1605_v51 = vpack.c.bf16 %v1440_v8, %v1440_v8  ;;  %v1438_v56 = vsel %vm1433_vm3, %v1429_v47, %v1883_v6  ;;  %v1439_v58 = vsel %vm1433_vm3, %v1430_v11, %v1884_v53 }
 0xb28   : > { %v1603_v60 = vpack.c.bf16 %v1438_v56, %v1438_v56  ;;  %v1604_v12 = vpack.c.bf16 %v1439_v58, %v1439_v58 }
 0xb29   : > { %1482 = vst.msk [vmem:[%s2525_s22 + $0x1c] sm:$0xf] %vm1474_vm4, %v1606_v48  ;;  %1481 = vst.msk [vmem:[%s2525_s22 + $0x18] sm:$0xf] %vm1474_vm4, %v1605_v51 }
 0xb2a   : > { %1479 = vst.msk [vmem:[%s2525_s22 + $0x10] sm:$0xf] %vm1474_vm4, %v1603_v60  ;;  %1480 = vst.msk [vmem:[%s2525_s22 + $0x14] sm:$0xf] %vm1474_vm4, %v1604_v12 }
 0xb2b PF: > { %s11_s6 = sadd.s32 1, %s2042_s6  }
 0xb2c   : > { %p8_p4 = scmp.ge.s32.totalorder %s11_s6, 4  }
 0xb2e   :  { %10 = sbr.rel (!%p8_p4) target bundleno = 1 (0x1), region = 54 }

// kernel: transformer_forward.14
= control target key start
LH: loop header
LB: loop body
LE: loop exit
PB: predicated region body
PF: predicated region fallthrough
CT: control target
= control target key end

     0   :  { %vm378_vm0 = vcmask 523264   ;;  %s806_s1 = inlined_call_operand.vmem [shape: bf16[256,64], index: 1, kind: input, shape index: {}]   ;;  %s807_s0 = inlined_call_operand.vmem [shape: bf16[128,256], index: 0, kind: input, shape index: {}]   ;;  %s808_s2 = inlined_call_operand.vmem [shape: f32[1,64], index: 2, kind: input, shape index: {}]   ;;  %s809_s3 = inlined_call_operand.vmem [shape: f32[128,64], index: 3, kind: input, shape index: {}]   ;;  %s810_s4 = inlined_call_operand.vmem [shape: f32[128,64], index: 4, kind: output, shape index: {}]  }
   0x1   :  { %v512_v0 = vld [vmem:[%s806_s1 + $0x40] sm:$0xff]   ;;  %v514_v2 = vld [vmem:[%s806_s1 + $0x48] sm:$0xff]   ;;  %v516_v4 = vld [vmem:[%s806_s1 + $0x50] sm:$0xff]  }
   0x2   :  { %v513_v1 = vld [vmem:[%s806_s1] sm:$0xff]   ;;  %432 = vmatprep.subr.bf16.mxu0 %v512_v0  ;;  %496 = vmatprep.subr.bf16.mxu1 %v512_v0  ;;  %v515_v3 = vld [vmem:[%s806_s1 + $0x8] sm:$0xff]   ;;  %v517_v5 = vld [vmem:[%s806_s1 + $0x10] sm:$0xff]  }
   0x3   :  { %433 = vmatpush3.bf16.msra.mxu0 %v513_v1  ;;  %504 = vmatpush3.bf16.msra.mxu1 %v513_v1  ;;  %v518_v6 = vld [vmem:[%s806_s1 + $0x58] sm:$0xff]   ;;  %v520_v8 = vld [vmem:[%s806_s1 + $0x60] sm:$0xff]   ;;  %v522_v10 = vld [vmem:[%s806_s1 + $0x68] sm:$0xff]  }
   0x4   :  { %434 = vmatprep.subr.bf16.mxu0 %v514_v2  ;;  %497 = vmatprep.subr.bf16.mxu1 %v514_v2  ;;  %v519_v7 = vld [vmem:[%s806_s1 + $0x18] sm:$0xff]   ;;  %v521_v9 = vld [vmem:[%s806_s1 + $0x20] sm:$0xff]   ;;  %v523_v13 = vld [vmem:[%s806_s1 + $0x28] sm:$0xff]  }
   0x5   :  { %v530_v11 = vld [vmem:[%s807_s0 + $0x4] ss:$8 sps:$4 sm:$0xff]   ;;  %v524_v14 = vld [vmem:[%s806_s1 + $0x70] sm:$0xff]   ;;  %v526_v16 = vld [vmem:[%s806_s1 + $0x78] sm:$0xff]  }
   0x6   :  { %v533_v12 = vld [vmem:[%s807_s0 + $0x44] ss:$8 sps:$4 sm:$0xff]   ;;  %281 = vmatprep.mubr.bf16.mxu0 %v530_v11  ;;  %v525_v15 = vld [vmem:[%s806_s1 + $0x30] sm:$0xff]   ;;  %v527_v17 = vld [vmem:[%s806_s1 + $0x38] sm:$0xff]  }
   0x7   :  { %435 = vmatpush3.bf16.msra.mxu0 %v515_v3  ;;  %505 = vmatpush3.bf16.msra.mxu1 %v515_v3  ;;  %v528_v18 = vld [vmem:[%s807_s0] ss:$8 sps:$4 sm:$0xff]   ;;  %v534_v20 = vld [vmem:[%s807_s0 + $0x14] ss:$8 sps:$4 sm:$0xff]   ;;  %v538_v22 = vld [vmem:[%s807_s0 + $0x10] ss:$8 sps:$4 sm:$0xff]  }
   0x8   :  { %436 = vmatprep.subr.bf16.mxu0 %v516_v4  ;;  %498 = vmatprep.subr.bf16.mxu1 %v516_v4  ;;  %v531_v19 = vld [vmem:[%s807_s0 + $0x40] ss:$8 sps:$4 sm:$0xff]   ;;  %v536_v21 = vld [vmem:[%s807_s0 + $0x54] ss:$8 sps:$4 sm:$0xff]   ;;  %v539_v23 = vld [vmem:[%s807_s0 + $0x50] ss:$8 sps:$4 sm:$0xff]  }
   0x9   :  { %313 = vmatprep.mubr.bf16.mxu1 %v533_v12  ;;  %v540_v24 = vld [vmem:[%s807_s0 + $0x24] ss:$8 sps:$4 sm:$0xff]   ;;  %v544_v26 = vld [vmem:[%s807_s0 + $0x20] ss:$8 sps:$4 sm:$0xff]   ;;  %v546_v28 = vld [vmem:[%s807_s0 + $0x34] ss:$8 sps:$4 sm:$0xff]  }
   0xa   :  { %v542_v25 = vld [vmem:[%s807_s0 + $0x64] ss:$8 sps:$4 sm:$0xff]   ;;  %v545_v27 = vld [vmem:[%s807_s0 + $0x60] ss:$8 sps:$4 sm:$0xff]   ;;  %v548_v29 = vld [vmem:[%s807_s0 + $0x74] ss:$8 sps:$4 sm:$0xff]  }
   0xb   :  { %437 = vmatpush3.bf16.msra.mxu0 %v517_v5  ;;  %506 = vmatpush3.bf16.msra.mxu1 %v517_v5  ;;  %v550_v30 = vld [vmem:[%s807_s0 + $0x30] ss:$8 sps:$4 sm:$0xff]   ;;  %v676_v34 = vld [vmem:[%s808_s2] ss:$0 sm:$0xff]  ;;  %v347_v49 = vld [vmem:[%s809_s3 + $0x8] sm:$0xff] }
   0xc   :  { %438 = vmatprep.subr.bf16.mxu0 %v518_v6  ;;  %499 = vmatprep.subr.bf16.mxu1 %v518_v6  ;;  %v551_v31 = vld [vmem:[%s807_s0 + $0x70] ss:$8 sps:$4 sm:$0xff]   ;;  %v346_v41 = vld [vmem:[%s809_s3] sm:$0xff]  ;;  %v355_v50 = vld [vmem:[%s809_s3 + $0x48] sm:$0xff] }
   0xd   :  { %v354_v42 = vld [vmem:[%s809_s3 + $0x40] sm:$0xff]  ;;  %v348_v1 = vld [vmem:[%s809_s3 + $0x10] sm:$0xff] }
   0xe   :  { %v356_v2 = vld [vmem:[%s809_s3 + $0x50] sm:$0xff] }
   0xf   :  { %439 = vmatpush3.bf16.msra.mxu0 %v519_v7  ;;  %507 = vmatpush3.bf16.msra.mxu1 %v519_v7 }
  0x10   :  { %440 = vmatprep.subr.bf16.mxu0 %v520_v8  ;;  %500 = vmatprep.subr.bf16.mxu1 %v520_v8 }
  0x13   :  { %441 = vmatpush3.bf16.msra.mxu0 %v521_v9  ;;  %508 = vmatpush3.bf16.msra.mxu1 %v521_v9  ;;  %v349_v9 = vld [vmem:[%s809_s3 + $0x18] sm:$0xff] }
  0x14   :  { %442 = vmatprep.subr.bf16.mxu0 %v522_v10  ;;  %501 = vmatprep.subr.bf16.mxu1 %v522_v10  ;;  %v357_v10 = vld [vmem:[%s809_s3 + $0x58] sm:$0xff] }
  0x17   :  { %443 = vmatpush3.bf16.msra.mxu0 %v523_v13  ;;  %509 = vmatpush3.bf16.msra.mxu1 %v523_v13 }
  0x18   :  { %444 = vmatprep.subr.bf16.mxu0 %v524_v14  ;;  %502 = vmatprep.subr.bf16.mxu1 %v524_v14 }
  0x1b   :  { %445 = vmatpush3.bf16.msra.mxu0 %v525_v15  ;;  %510 = vmatpush3.bf16.msra.mxu1 %v525_v15 }
  0x1c   :  { %446 = vmatprep.subr.bf16.mxu0 %v526_v16  ;;  %503 = vmatprep.subr.bf16.mxu1 %v526_v16 }
  0x1f   :  { %447 = vmatpush3.bf16.msra.mxu0 %v527_v17  ;;  %511 = vmatpush3.bf16.msra.mxu1 %v527_v17 }
  0x22   :  { %282 = vmatmul.mubr.bf16.vlgmr.msra.gmra.mrb[0].mxu0 %v528_v18  ;;  %314 = vmatmul.mubr.bf16.vlgmr.msra.gmra.mrb[0].mxu1 %v531_v19 }
  0x23   :  { %289 = vmatprep.mubr.bf16.mxu0 %v534_v20  ;;  %321 = vmatprep.mubr.bf16.mxu1 %v536_v21 }
  0x2a   :  { %290 = vmatmul.mubr.bf16.gmra.mrb[4].mxu0 %v538_v22  ;;  %322 = vmatmul.mubr.bf16.gmra.mrb[4].mxu1 %v539_v23 }
  0x2b   :  { %297 = vmatprep.mubr.bf16.mxu0 %v540_v24  ;;  %329 = vmatprep.mubr.bf16.mxu1 %v542_v25  ;;  %v350_v25 = vld [vmem:[%s809_s3 + $0x20] sm:$0xff] }
  0x32   :  { %298 = vmatmul.mubr.bf16.gmra.mrb[8].mxu0 %v544_v26  ;;  %330 = vmatmul.mubr.bf16.gmra.mrb[8].mxu1 %v545_v27  ;;  %v358_v26 = vld [vmem:[%s809_s3 + $0x60] sm:$0xff] }
  0x33   :  { %305 = vmatprep.mubr.bf16.mxu0 %v546_v28  ;;  %337 = vmatprep.mubr.bf16.mxu1 %v548_v29 }
  0x3a   :  { %306 = vmatmul.mubr.bf16.gmra.mrb[12].mxu0 %v550_v30  ;;  %338 = vmatmul.mubr.bf16.gmra.mrb[12].mxu1 %v551_v31 }
  0xf5   :  { %v448_v32 = vpop.f32.mrb[0].mxu0  ;;  %v472_v33 = vpop.f32.mrb[0].mxu1 }
  0xf6   :  { %v449_v35 = vpop.f32.mrb[1].mxu0  ;;  %v473_v36 = vpop.f32.mrb[1].mxu1 }
  0xf7   :  { %v450_v37 = vadd.f32 %v449_v35, %v448_v32  ;;  %v474_v38 = vadd.f32 %v473_v36, %v472_v33  ;;  %v451_v39 = vpop.f32.mrb[2].mxu0  ;;  %v475_v40 = vpop.f32.mrb[2].mxu1  ;;  %v351_v33 = vld [vmem:[%s809_s3 + $0x28] sm:$0xff] }
  0xf8   :  { %v452_v43 = vpop.f32.mrb[3].mxu0  ;;  %v476_v44 = vpop.f32.mrb[3].mxu1  ;;  %v359_v35 = vld [vmem:[%s809_s3 + $0x68] sm:$0xff] }
  0xf9   :  { %v284_v45 = vadd.f32 %v450_v37, %v676_v34  ;;  %v316_v46 = vadd.f32 %v474_v38, %v676_v34  ;;  %v453_v47 = vadd.f32 %v452_v43, %v451_v39  ;;  %v477_v48 = vadd.f32 %v476_v44, %v475_v40 }
  0xfb   :  { %v362_v51 = vadd.f32 %v346_v41, %v284_v45  ;;  %v370_v52 = vadd.f32 %v354_v42, %v316_v46  ;;  %v287_v53 = vadd.f32 %v453_v47, %v676_v34  ;;  %v319_v54 = vadd.f32 %v477_v48, %v676_v34 }
  0xfd   :  { %379 = vst.msk [vmem:[%s810_s4] sm:$0xff] %vm378_vm0, %v362_v51  ;;  %387 = vst.msk [vmem:[%s810_s4 + $0x40] sm:$0xff] %vm378_vm0, %v370_v52  ;;  %v363_v55 = vadd.f32 %v347_v49, %v287_v53  ;;  %v371_v56 = vadd.f32 %v355_v50, %v319_v54  ;;  %v454_v57 = vpop.f32.mrb[4].mxu0  ;;  %v478_v58 = vpop.f32.mrb[4].mxu1  ;;  %v352_v50 = vld [vmem:[%s809_s3 + $0x30] sm:$0xff] }
  0xfe   :  { %v455_v59 = vpop.f32.mrb[5].mxu0  ;;  %v479_v60 = vpop.f32.mrb[5].mxu1  ;;  %v360_v51 = vld [vmem:[%s809_s3 + $0x70] sm:$0xff] }
  0xff   :  { %380 = vst.msk [vmem:[%s810_s4 + $0x8] sm:$0xff] %vm378_vm0, %v363_v55  ;;  %388 = vst.msk [vmem:[%s810_s4 + $0x48] sm:$0xff] %vm378_vm0, %v371_v56  ;;  %v456_v61 = vadd.f32 %v455_v59, %v454_v57  ;;  %v480_v62 = vadd.f32 %v479_v60, %v478_v58  ;;  %v457_v63 = vpop.f32.mrb[6].mxu0  ;;  %v481_v0 = vpop.f32.mrb[6].mxu1  ;;  %v353_v58 = vld [vmem:[%s809_s3 + $0x38] sm:$0xff] }
 0x100   :  { %v458_v3 = vpop.f32.mrb[7].mxu0  ;;  %v482_v4 = vpop.f32.mrb[7].mxu1  ;;  %v361_v59 = vld [vmem:[%s809_s3 + $0x78] sm:$0xff] }
 0x101   :  { %v292_v5 = vadd.f32 %v456_v61, %v676_v34  ;;  %v324_v6 = vadd.f32 %v480_v62, %v676_v34  ;;  %v459_v7 = vadd.f32 %v458_v3, %v457_v63  ;;  %v483_v8 = vadd.f32 %v482_v4, %v481_v0 }
 0x103   :  { %v364_v11 = vadd.f32 %v348_v1, %v292_v5  ;;  %v372_v12 = vadd.f32 %v356_v2, %v324_v6  ;;  %v295_v13 = vadd.f32 %v459_v7, %v676_v34  ;;  %v327_v14 = vadd.f32 %v483_v8, %v676_v34 }
 0x105   :  { %381 = vst.msk [vmem:[%s810_s4 + $0x10] sm:$0xff] %vm378_vm0, %v364_v11  ;;  %389 = vst.msk [vmem:[%s810_s4 + $0x50] sm:$0xff] %vm378_vm0, %v372_v12  ;;  %v365_v15 = vadd.f32 %v349_v9, %v295_v13  ;;  %v373_v16 = vadd.f32 %v357_v10, %v327_v14  ;;  %v460_v17 = vpop.f32.mrb[8].mxu0  ;;  %v484_v18 = vpop.f32.mrb[8].mxu1 }
 0x106   :  { %v461_v19 = vpop.f32.mrb[9].mxu0  ;;  %v485_v20 = vpop.f32.mrb[9].mxu1 }
 0x107   :  { %382 = vst.msk [vmem:[%s810_s4 + $0x18] sm:$0xff] %vm378_vm0, %v365_v15  ;;  %390 = vst.msk [vmem:[%s810_s4 + $0x58] sm:$0xff] %vm378_vm0, %v373_v16  ;;  %v462_v21 = vadd.f32 %v461_v19, %v460_v17  ;;  %v486_v22 = vadd.f32 %v485_v20, %v484_v18  ;;  %v463_v23 = vpop.f32.mrb[10].mxu0  ;;  %v487_v24 = vpop.f32.mrb[10].mxu1 }
 0x108   :  { %v464_v27 = vpop.f32.mrb[11].mxu0  ;;  %v488_v28 = vpop.f32.mrb[11].mxu1 }
 0x109   :  { %v300_v29 = vadd.f32 %v462_v21, %v676_v34  ;;  %v332_v30 = vadd.f32 %v486_v22, %v676_v34  ;;  %v465_v31 = vadd.f32 %v464_v27, %v463_v23  ;;  %v489_v32 = vadd.f32 %v488_v28, %v487_v24 }
 0x10b   :  { %v366_v36 = vadd.f32 %v350_v25, %v300_v29  ;;  %v374_v37 = vadd.f32 %v358_v26, %v332_v30  ;;  %v303_v38 = vadd.f32 %v465_v31, %v676_v34  ;;  %v335_v39 = vadd.f32 %v489_v32, %v676_v34 }
 0x10d   :  { %383 = vst.msk [vmem:[%s810_s4 + $0x20] sm:$0xff] %vm378_vm0, %v366_v36  ;;  %391 = vst.msk [vmem:[%s810_s4 + $0x60] sm:$0xff] %vm378_vm0, %v374_v37  ;;  %v367_v40 = vadd.f32 %v351_v33, %v303_v38  ;;  %v375_v41 = vadd.f32 %v359_v35, %v335_v39  ;;  %v466_v42 = vpop.f32.mrb[12].mxu0  ;;  %v490_v43 = vpop.f32.mrb[12].mxu1 }
 0x10e   :  { %v467_v44 = vpop.f32.mrb[13].mxu0  ;;  %v491_v45 = vpop.f32.mrb[13].mxu1 }
 0x10f   :  { %384 = vst.msk [vmem:[%s810_s4 + $0x28] sm:$0xff] %vm378_vm0, %v367_v40  ;;  %392 = vst.msk [vmem:[%s810_s4 + $0x68] sm:$0xff] %vm378_vm0, %v375_v41  ;;  %v468_v46 = vadd.f32 %v467_v44, %v466_v42  ;;  %v492_v47 = vadd.f32 %v491_v45, %v490_v43  ;;  %v469_v48 = vpop.f32.mrb[14].mxu0  ;;  %v493_v49 = vpop.f32.mrb[14].mxu1 }
 0x110   :  { %v470_v52 = vpop.f32.mrb[15].mxu0  ;;  %v494_v53 = vpop.f32.mrb[15].mxu1 }
 0x111   :  { %v308_v54 = vadd.f32 %v468_v46, %v676_v34  ;;  %v340_v55 = vadd.f32 %v492_v47, %v676_v34  ;;  %v471_v56 = vadd.f32 %v470_v52, %v469_v48  ;;  %v495_v57 = vadd.f32 %v494_v53, %v493_v49 }
 0x113   :  { %v368_v60 = vadd.f32 %v352_v50, %v308_v54  ;;  %v376_v61 = vadd.f32 %v360_v51, %v340_v55  ;;  %v311_v62 = vadd.f32 %v471_v56, %v676_v34  ;;  %v343_v63 = vadd.f32 %v495_v57, %v676_v34 }
 0x115   :  { %385 = vst.msk [vmem:[%s810_s4 + $0x30] sm:$0xff] %vm378_vm0, %v368_v60  ;;  %393 = vst.msk [vmem:[%s810_s4 + $0x70] sm:$0xff] %vm378_vm0, %v376_v61  ;;  %v369_v0 = vadd.f32 %v353_v58, %v311_v62  ;;  %v377_v1 = vadd.f32 %v361_v59, %v343_v63 }
 0x117   :  { %386 = vst.msk [vmem:[%s810_s4 + $0x38] sm:$0xff] %vm378_vm0, %v369_v0  ;;  %394 = vst.msk [vmem:[%s810_s4 + $0x78] sm:$0xff] %vm378_vm0, %v377_v1 }

// kernel: transformer_forward.19
= control target key start
LH: loop header
LB: loop body
LE: loop exit
PB: predicated region body
PF: predicated region fallthrough
CT: control target
= control target key end

     0   :  { %s813_s0 = inlined_call_operand.vmem [shape: bf16[128,256], index: 0, kind: input, shape index: {}]   ;;  %s814_s1 = inlined_call_operand.vmem [shape: bf16[256,64], index: 1, kind: input, shape index: {}]   ;;  %s815_s2 = inlined_call_operand.vmem [shape: f32[1,64], index: 2, kind: input, shape index: {}]   ;;  %s816_s3 = inlined_call_operand.vmem [shape: f32[128,64], index: 3, kind: input, shape index: {}]   ;;  %s817_s4 = inlined_call_operand.hbm [shape: f32[128,64], index: 4, kind: output, shape index: {}]  }
   0x1   :  { %v528_v0 = vld [vmem:[%s814_s1 + $0x40] sm:$0xff]   ;;  %v530_v2 = vld [vmem:[%s814_s1 + $0x48] sm:$0xff]   ;;  %v532_v4 = vld [vmem:[%s814_s1 + $0x50] sm:$0xff]  }
   0x2   :  { %v529_v1 = vld [vmem:[%s814_s1] sm:$0xff]   ;;  %445 = vmatprep.subr.bf16.mxu0 %v528_v0  ;;  %509 = vmatprep.subr.bf16.mxu1 %v528_v0  ;;  %v531_v3 = vld [vmem:[%s814_s1 + $0x8] sm:$0xff]   ;;  %v533_v5 = vld [vmem:[%s814_s1 + $0x10] sm:$0xff]  }
   0x3   :  { %446 = vmatpush3.bf16.msra.mxu0 %v529_v1  ;;  %517 = vmatpush3.bf16.msra.mxu1 %v529_v1  ;;  %v534_v6 = vld [vmem:[%s814_s1 + $0x58] sm:$0xff]   ;;  %v536_v8 = vld [vmem:[%s814_s1 + $0x60] sm:$0xff]   ;;  %v538_v10 = vld [vmem:[%s814_s1 + $0x68] sm:$0xff]  }
   0x4   :  { %447 = vmatprep.subr.bf16.mxu0 %v530_v2  ;;  %510 = vmatprep.subr.bf16.mxu1 %v530_v2  ;;  %v535_v7 = vld [vmem:[%s814_s1 + $0x18] sm:$0xff]   ;;  %v537_v9 = vld [vmem:[%s814_s1 + $0x20] sm:$0xff]   ;;  %v539_v13 = vld [vmem:[%s814_s1 + $0x28] sm:$0xff]  }
   0x5   :  { %v546_v11 = vld [vmem:[%s813_s0 + $0x4] ss:$8 sps:$4 sm:$0xff]   ;;  %v540_v14 = vld [vmem:[%s814_s1 + $0x70] sm:$0xff]   ;;  %v542_v16 = vld [vmem:[%s814_s1 + $0x78] sm:$0xff]  }
   0x6   :  { %v549_v12 = vld [vmem:[%s813_s0 + $0x44] ss:$8 sps:$4 sm:$0xff]   ;;  %282 = vmatprep.mubr.bf16.mxu0 %v546_v11  ;;  %v541_v15 = vld [vmem:[%s814_s1 + $0x30] sm:$0xff]  }
   0x7   :  { %448 = vmatpush3.bf16.msra.mxu0 %v531_v3  ;;  %518 = vmatpush3.bf16.msra.mxu1 %v531_v3 }
   0x8   :  { %449 = vmatprep.subr.bf16.mxu0 %v532_v4  ;;  %511 = vmatprep.subr.bf16.mxu1 %v532_v4 }
   0x9   :  { %314 = vmatprep.mubr.bf16.mxu1 %v549_v12 }
   0xb   :  { %450 = vmatpush3.bf16.msra.mxu0 %v533_v5  ;;  %519 = vmatpush3.bf16.msra.mxu1 %v533_v5 }
   0xc   :  { %451 = vmatprep.subr.bf16.mxu0 %v534_v6  ;;  %512 = vmatprep.subr.bf16.mxu1 %v534_v6 }
   0xf   :  { %452 = vmatpush3.bf16.msra.mxu0 %v535_v7  ;;  %520 = vmatpush3.bf16.msra.mxu1 %v535_v7 }
  0x10   :  { %453 = vmatprep.subr.bf16.mxu0 %v536_v8  ;;  %513 = vmatprep.subr.bf16.mxu1 %v536_v8 }
  0x13   :  { %454 = vmatpush3.bf16.msra.mxu0 %v537_v9  ;;  %521 = vmatpush3.bf16.msra.mxu1 %v537_v9 }
  0x14   :  { %455 = vmatprep.subr.bf16.mxu0 %v538_v10  ;;  %514 = vmatprep.subr.bf16.mxu1 %v538_v10 }
  0x17   :  { %456 = vmatpush3.bf16.msra.mxu0 %v539_v13  ;;  %522 = vmatpush3.bf16.msra.mxu1 %v539_v13 }
  0x18   :  { %457 = vmatprep.subr.bf16.mxu0 %v540_v14  ;;  %515 = vmatprep.subr.bf16.mxu1 %v540_v14 }
  0x19   :  { %9 = vsyncpa [#allocation3], 0  ;;  %v543_v17 = vld [vmem:[%s814_s1 + $0x38] sm:$0xff]   ;;  %v544_v18 = vld [vmem:[%s813_s0] ss:$8 sps:$4 sm:$0xff]   ;;  %vm379_vm0 = vcmask 523264  }
  0x1a   :  { %v547_v19 = vld [vmem:[%s813_s0 + $0x40] ss:$8 sps:$4 sm:$0xff]   ;;  %v550_v20 = vld [vmem:[%s813_s0 + $0x14] ss:$8 sps:$4 sm:$0xff]   ;;  %v554_v22 = vld [vmem:[%s813_s0 + $0x10] ss:$8 sps:$4 sm:$0xff]  }
  0x1b   :  { %458 = vmatpush3.bf16.msra.mxu0 %v541_v15  ;;  %523 = vmatpush3.bf16.msra.mxu1 %v541_v15  ;;  %v552_v21 = vld [vmem:[%s813_s0 + $0x54] ss:$8 sps:$4 sm:$0xff]   ;;  %v555_v23 = vld [vmem:[%s813_s0 + $0x50] ss:$8 sps:$4 sm:$0xff]   ;;  %v556_v24 = vld [vmem:[%s813_s0 + $0x24] ss:$8 sps:$4 sm:$0xff]  }
  0x1c   :  { %459 = vmatprep.subr.bf16.mxu0 %v542_v16  ;;  %516 = vmatprep.subr.bf16.mxu1 %v542_v16  ;;  %v558_v25 = vld [vmem:[%s813_s0 + $0x64] ss:$8 sps:$4 sm:$0xff]   ;;  %v560_v26 = vld [vmem:[%s813_s0 + $0x20] ss:$8 sps:$4 sm:$0xff]   ;;  %v562_v28 = vld [vmem:[%s813_s0 + $0x34] ss:$8 sps:$4 sm:$0xff]  }
  0x1d   :  { %v561_v27 = vld [vmem:[%s813_s0 + $0x60] ss:$8 sps:$4 sm:$0xff]   ;;  %v564_v29 = vld [vmem:[%s813_s0 + $0x74] ss:$8 sps:$4 sm:$0xff]   ;;  %v566_v30 = vld [vmem:[%s813_s0 + $0x30] ss:$8 sps:$4 sm:$0xff]  }
  0x1e   :  { %v567_v31 = vld [vmem:[%s813_s0 + $0x70] ss:$8 sps:$4 sm:$0xff]   ;;  %v719_v34 = vld [vmem:[%s815_s2] ss:$0 sm:$0xff]  ;;  %v348_v49 = vld [vmem:[%s816_s3 + $0x8] sm:$0xff]  ;;  %s592_s27 = smov [#allocation2]  }
  0x1f   :  { %460 = vmatpush3.bf16.msra.mxu0 %v543_v17  ;;  %524 = vmatpush3.bf16.msra.mxu1 %v543_v17  ;;  %v347_v41 = vld [vmem:[%s816_s3] sm:$0xff]  ;;  %v356_v50 = vld [vmem:[%s816_s3 + $0x48] sm:$0xff]  ;;  %v349_v1 = vld [vmem:[%s816_s3 + $0x10] sm:$0xff]  ;;  %s401_s28 = sshll.u32 %s592_s27, 4  ;;  %s402_s28 = int_to_ptr.vmem [resolvable:$true] %s401_s28 }
  0x20   :  { %v355_v42 = vld [vmem:[%s816_s3 + $0x40] sm:$0xff]  ;;  %v357_v2 = vld [vmem:[%s816_s3 + $0x50] sm:$0xff]  ;;  %v350_v9 = vld [vmem:[%s816_s3 + $0x18] sm:$0xff]  ;;  %s568_s5 = scalar_lea.vmem %s402_s28, 2048  ;;  %p573_p1 = scmp.lt.s32.totalorder %s402_s28, %s402_s28 }
  0x21   :  { %v358_v10 = vld [vmem:[%s816_s3 + $0x58] sm:$0xff]  ;;  %p569_p0 = scmp.ne.s32.totalorder %s402_s28, %s568_s5  ;;  %p574_p2 = scmp.lt.s32.totalorder %s568_s5, %s568_s5 }
  0x22   :  { %283 = vmatmul.mubr.bf16.vlgmr.msra.gmra.mrb[0].mxu0 %v544_v18  ;;  %315 = vmatmul.mubr.bf16.vlgmr.msra.gmra.mrb[0].mxu1 %v547_v19 }
  0x23   :  { %290 = vmatprep.mubr.bf16.mxu0 %v550_v20  ;;  %322 = vmatprep.mubr.bf16.mxu1 %v552_v21  ;;  %p575_p3 = por %p574_p2, %p573_p1 }
  0x25   :  { %p576_p4 = pnand %p575_p3, %p569_p0 }
  0x2a   :  { %291 = vmatmul.mubr.bf16.gmra.mrb[4].mxu0 %v554_v22  ;;  %323 = vmatmul.mubr.bf16.gmra.mrb[4].mxu1 %v555_v23 }
  0x2b   :  { %298 = vmatprep.mubr.bf16.mxu0 %v556_v24  ;;  %330 = vmatprep.mubr.bf16.mxu1 %v558_v25  ;;  %v351_v25 = vld [vmem:[%s816_s3 + $0x20] sm:$0xff] }
  0x32   :  { %299 = vmatmul.mubr.bf16.gmra.mrb[8].mxu0 %v560_v26  ;;  %331 = vmatmul.mubr.bf16.gmra.mrb[8].mxu1 %v561_v27  ;;  %v359_v26 = vld [vmem:[%s816_s3 + $0x60] sm:$0xff] }
  0x33   :  { %306 = vmatprep.mubr.bf16.mxu0 %v562_v28  ;;  %338 = vmatprep.mubr.bf16.mxu1 %v564_v29 }
  0x3a   :  { %307 = vmatmul.mubr.bf16.gmra.mrb[12].mxu0 %v566_v30  ;;  %339 = vmatmul.mubr.bf16.gmra.mrb[12].mxu1 %v567_v31 }
  0xf5   :  { %v461_v32 = vpop.f32.mrb[0].mxu0  ;;  %v485_v33 = vpop.f32.mrb[0].mxu1 }
  0xf6   :  { %v462_v35 = vpop.f32.mrb[1].mxu0  ;;  %v486_v36 = vpop.f32.mrb[1].mxu1 }
  0xf7   :  { %v463_v37 = vadd.f32 %v462_v35, %v461_v32  ;;  %v487_v38 = vadd.f32 %v486_v36, %v485_v33  ;;  %v464_v39 = vpop.f32.mrb[2].mxu0  ;;  %v488_v40 = vpop.f32.mrb[2].mxu1  ;;  %v352_v33 = vld [vmem:[%s816_s3 + $0x28] sm:$0xff] }
  0xf8   :  { %v465_v43 = vpop.f32.mrb[3].mxu0  ;;  %v489_v44 = vpop.f32.mrb[3].mxu1  ;;  %v360_v35 = vld [vmem:[%s816_s3 + $0x68] sm:$0xff] }
  0xf9   :  { %v285_v45 = vadd.f32 %v463_v37, %v719_v34  ;;  %v317_v46 = vadd.f32 %v487_v38, %v719_v34  ;;  %v466_v47 = vadd.f32 %v465_v43, %v464_v39  ;;  %v490_v48 = vadd.f32 %v489_v44, %v488_v40 }
  0xfb   :  { %v363_v51 = vadd.f32 %v347_v41, %v285_v45  ;;  %v371_v52 = vadd.f32 %v355_v42, %v317_v46  ;;  %v288_v53 = vadd.f32 %v466_v47, %v719_v34  ;;  %v320_v54 = vadd.f32 %v490_v48, %v719_v34 }
  0xfd   :  { %380 = vst.msk [vmem:[#allocation2] sm:$0xff] %vm379_vm0, %v363_v51  ;;  %388 = vst.msk [vmem:[#allocation2 + $0x40] sm:$0xff] %vm379_vm0, %v371_v52  ;;  %v364_v55 = vadd.f32 %v348_v49, %v288_v53  ;;  %v372_v56 = vadd.f32 %v356_v50, %v320_v54  ;;  %v467_v57 = vpop.f32.mrb[4].mxu0  ;;  %v491_v58 = vpop.f32.mrb[4].mxu1  ;;  %v353_v50 = vld [vmem:[%s816_s3 + $0x30] sm:$0xff] }
  0xfe   :  { %v468_v59 = vpop.f32.mrb[5].mxu0  ;;  %v492_v60 = vpop.f32.mrb[5].mxu1  ;;  %v361_v51 = vld [vmem:[%s816_s3 + $0x70] sm:$0xff] }
  0xff   :  { %381 = vst.msk [vmem:[#allocation2 + $0x8] sm:$0xff] %vm379_vm0, %v364_v55  ;;  %389 = vst.msk [vmem:[#allocation2 + $0x48] sm:$0xff] %vm379_vm0, %v372_v56  ;;  %v469_v61 = vadd.f32 %v468_v59, %v467_v57  ;;  %v493_v62 = vadd.f32 %v492_v60, %v491_v58  ;;  %v470_v63 = vpop.f32.mrb[6].mxu0  ;;  %v494_v0 = vpop.f32.mrb[6].mxu1  ;;  %v354_v58 = vld [vmem:[%s816_s3 + $0x38] sm:$0xff] }
 0x100   :  { %v471_v3 = vpop.f32.mrb[7].mxu0  ;;  %v495_v4 = vpop.f32.mrb[7].mxu1  ;;  %v362_v59 = vld [vmem:[%s816_s3 + $0x78] sm:$0xff] }
 0x101   :  { %v293_v5 = vadd.f32 %v469_v61, %v719_v34  ;;  %v325_v6 = vadd.f32 %v493_v62, %v719_v34  ;;  %v472_v7 = vadd.f32 %v471_v3, %v470_v63  ;;  %v496_v8 = vadd.f32 %v495_v4, %v494_v0 }
 0x103   :  { %v365_v11 = vadd.f32 %v349_v1, %v293_v5  ;;  %v373_v12 = vadd.f32 %v357_v2, %v325_v6  ;;  %v296_v13 = vadd.f32 %v472_v7, %v719_v34  ;;  %v328_v14 = vadd.f32 %v496_v8, %v719_v34 }
 0x105   :  { %382 = vst.msk [vmem:[#allocation2 + $0x10] sm:$0xff] %vm379_vm0, %v365_v11  ;;  %390 = vst.msk [vmem:[#allocation2 + $0x50] sm:$0xff] %vm379_vm0, %v373_v12  ;;  %v366_v15 = vadd.f32 %v350_v9, %v296_v13  ;;  %v374_v16 = vadd.f32 %v358_v10, %v328_v14  ;;  %v473_v17 = vpop.f32.mrb[8].mxu0  ;;  %v497_v18 = vpop.f32.mrb[8].mxu1 }
 0x106   :  { %v474_v19 = vpop.f32.mrb[9].mxu0  ;;  %v498_v20 = vpop.f32.mrb[9].mxu1 }
 0x107   :  { %383 = vst.msk [vmem:[#allocation2 + $0x18] sm:$0xff] %vm379_vm0, %v366_v15  ;;  %391 = vst.msk [vmem:[#allocation2 + $0x58] sm:$0xff] %vm379_vm0, %v374_v16  ;;  %v475_v21 = vadd.f32 %v474_v19, %v473_v17  ;;  %v499_v22 = vadd.f32 %v498_v20, %v497_v18  ;;  %v476_v23 = vpop.f32.mrb[10].mxu0  ;;  %v500_v24 = vpop.f32.mrb[10].mxu1 }
 0x108   :  { %v477_v27 = vpop.f32.mrb[11].mxu0  ;;  %v501_v28 = vpop.f32.mrb[11].mxu1 }
 0x109   :  { %v301_v29 = vadd.f32 %v475_v21, %v719_v34  ;;  %v333_v30 = vadd.f32 %v499_v22, %v719_v34  ;;  %v478_v31 = vadd.f32 %v477_v27, %v476_v23  ;;  %v502_v32 = vadd.f32 %v501_v28, %v500_v24 }
 0x10b   :  { %v367_v36 = vadd.f32 %v351_v25, %v301_v29  ;;  %v375_v37 = vadd.f32 %v359_v26, %v333_v30  ;;  %v304_v38 = vadd.f32 %v478_v31, %v719_v34  ;;  %v336_v39 = vadd.f32 %v502_v32, %v719_v34 }
 0x10d   :  { %384 = vst.msk [vmem:[#allocation2 + $0x20] sm:$0xff] %vm379_vm0, %v367_v36  ;;  %392 = vst.msk [vmem:[#allocation2 + $0x60] sm:$0xff] %vm379_vm0, %v375_v37  ;;  %v368_v40 = vadd.f32 %v352_v33, %v304_v38  ;;  %v376_v41 = vadd.f32 %v360_v35, %v336_v39  ;;  %v479_v42 = vpop.f32.mrb[12].mxu0  ;;  %v503_v43 = vpop.f32.mrb[12].mxu1 }
 0x10e   :  { %v480_v44 = vpop.f32.mrb[13].mxu0  ;;  %v504_v45 = vpop.f32.mrb[13].mxu1 }
 0x10f   :  { %385 = vst.msk [vmem:[#allocation2 + $0x28] sm:$0xff] %vm379_vm0, %v368_v40  ;;  %393 = vst.msk [vmem:[#allocation2 + $0x68] sm:$0xff] %vm379_vm0, %v376_v41  ;;  %v481_v46 = vadd.f32 %v480_v44, %v479_v42  ;;  %v505_v47 = vadd.f32 %v504_v45, %v503_v43  ;;  %v482_v48 = vpop.f32.mrb[14].mxu0  ;;  %v506_v49 = vpop.f32.mrb[14].mxu1 }
 0x110   :  { %v483_v52 = vpop.f32.mrb[15].mxu0  ;;  %v507_v53 = vpop.f32.mrb[15].mxu1 }
 0x111   :  { %v309_v54 = vadd.f32 %v481_v46, %v719_v34  ;;  %v341_v55 = vadd.f32 %v505_v47, %v719_v34  ;;  %v484_v56 = vadd.f32 %v483_v52, %v482_v48  ;;  %v508_v57 = vadd.f32 %v507_v53, %v506_v49 }
 0x113   :  { %v369_v60 = vadd.f32 %v353_v50, %v309_v54  ;;  %v377_v61 = vadd.f32 %v361_v51, %v341_v55  ;;  %v312_v62 = vadd.f32 %v484_v56, %v719_v34  ;;  %v344_v63 = vadd.f32 %v508_v57, %v719_v34 }
 0x115   :  { %386 = vst.msk [vmem:[#allocation2 + $0x30] sm:$0xff] %vm379_vm0, %v369_v60  ;;  %394 = vst.msk [vmem:[#allocation2 + $0x70] sm:$0xff] %vm379_vm0, %v377_v61  ;;  %v370_v0 = vadd.f32 %v354_v58, %v312_v62  ;;  %v378_v1 = vadd.f32 %v362_v59, %v344_v63 }
 0x117   :  { %387 = vst.msk [vmem:[#allocation2 + $0x38] sm:$0xff] %vm379_vm0, %v370_v0  ;;  %395 = vst.msk [vmem:[#allocation2 + $0x78] sm:$0xff] %vm379_vm0, %v378_v1 }
 0x118   :  { %579 = shalt.err (!%p576_p4)
}
 0x119   :  { %s580_s1 = scalar_lea.hbm %s817_s4, 2048 }
 0x11a   :  { %p581_p5 = scmp.ne.s32.totalorder %s817_s4, %s580_s1  ;;  %p584_p6 = scmp.lt.u32.totalorder %s580_s1, %s817_s4 }
 0x11c   :  { %p586_p7 = pnand %p584_p6, %p581_p5 }
 0x11e   :  { %589 = shalt.err (!%p586_p7)
}
 0x11f   :  { %s593_s11 = smov 128   ;;  %s594_s12 = smov 8  }
 0x120   :  { %407 = dma.vmem_to_hbm [thread:$0]  %s402_s28, 2048, %s817_s4, [#allocation3], %s593_s11, %s593_s11, %s594_s12  }
 0x121   :  { %590 = dma.done.wait [#allocation3], 2048  }
 0x122   :  { %591 = vsyncadd [#allocation3], 4294965248 }
 0x123   :  { %411 = vsyncpa [#allocation3], 1 }

</bundles_post_ra>
